<compile_context>
chip_gen: v5e
topology: v5e:2x2
jax: 0.10.0
libtpu: 0.0.40
codegen_flags: <defaults>
</compile_context>

<pallas_src>
import functools

import jax
import jax.numpy as jnp
from jax.experimental import pallas as pl
from jax.experimental.pallas import tpu as pltpu

EXPANSION = 4          # ResNet50 bottleneck expansion
BN_EPS = 1e-5
LANE = 128             # TPU lane width: channel padding granularity


def _round_up(x, m):
    return (x + m - 1) // m * m


# --------------------------- per-generation config --------------------------

@functools.lru_cache(maxsize=1)
def _tpu_config():
    kind = ""
    try:
        kind = jax.devices()[0].device_kind.lower()
    except Exception:
        pass
    vmem_bytes = 128 * 1024 * 1024
    try:
        info = pltpu.get_tpu_info()
        v = getattr(info, "vmem_capacity_bytes", None)
        if v:
            vmem_bytes = int(v)
    except Exception:
        pass
    small_vmem = vmem_bytes <= 80 * 1024 * 1024        # v7x-class: 64 MiB / TC
    is_v5e = ("v5 lite" in kind) or ("v5e" in kind)
    if small_vmem:
        # v7x: cap VMEM budget well under 64 MiB, and make sure the parallel
        # grid axes produce >=2 tiles so both TensorCores get work.
        return {"tm_max": 512, "tn_max": 512, "tk_max": 512,
                "vmem_limit": 40 * 1024 * 1024,
                "split_parallel": True, "deep_buffer": False}
    # v5e / v6e: 128 MiB physical VMEM -> larger tiles, bigger scoped limit.
    return {"tm_max": 512, "tn_max": 512, "tk_max": 1024,
            "vmem_limit": 64 * 1024 * 1024,
            "split_parallel": False, "deep_buffer": is_v5e}


def _maybe_buffered(shape, index_map, deep):
    """A/W BlockSpec; on v5e request 3-deep pipelining (guarded)."""
    if deep:
        try:
            return pl.BlockSpec(shape, index_map, pipeline_mode=pl.Buffered(3))
        except Exception:
            pass
    return pl.BlockSpec(shape, index_map)


# ----------------------------- Pallas kernels ------------------------------

def _mm_single_kernel(*refs, relu, has_res):
    """Single-K-step matmul: out = relu(x @ w + bias [+ residual]).  No scratch."""
    if has_res:
        x_ref, w_ref, b_ref, r_ref, o_ref = refs
    else:
        x_ref, w_ref, b_ref, o_ref = refs
        r_ref = None
    out = jnp.dot(x_ref[...], w_ref[...],
                  preferred_element_type=jnp.float32) + b_ref[...]
    if r_ref is not None:
        out = out + r_ref[...].astype(jnp.float32)
    if relu:
        out = jnp.maximum(out, 0.0)
    o_ref[...] = out.astype(o_ref.dtype)


def _mm_multi_kernel(*refs, relu, has_res):
    """K-tiled matmul with f32 VMEM accumulator.  First K step writes the dot
    result directly (no zero-init + add round-trip)."""
    if has_res:
        x_ref, w_ref, b_ref, r_ref, o_ref, acc_ref = refs
    else:
        x_ref, w_ref, b_ref, o_ref, acc_ref = refs
        r_ref = None

    k = pl.program_id(2)
    prod = jnp.dot(x_ref[...], w_ref[...], preferred_element_type=jnp.float32)

    @pl.when(k == 0)
    def _():
        acc_ref[...] = prod

    @pl.when(k > 0)
    def _():
        acc_ref[...] += prod

    @pl.when(k == pl.num_programs(2) - 1)
    def _():
        out = acc_ref[...] + b_ref[...]
        if r_ref is not None:
            out = out + r_ref[...].astype(jnp.float32)
        if relu:
            out = jnp.maximum(out, 0.0)
        o_ref[...] = out.astype(o_ref.dtype)


# ----------------------------- Pallas wrapper ------------------------------

def _choose_tk(K, tk_max):
    if K % 128 == 0:
        for t in (1024, 768, 512, 384, 256, 128):
            if t <= tk_max and K % t == 0:
                return t
    return K  # full-K block (e.g. stem K = 49*3 = 147)


def _matmul_fused(a, w, bias, relu, residual=None):
    """a:(M,K) bf16, w:(K,Np) bf16 (BN scale pre-folded), bias:(1,Np) f32,
    residual:(M,Np) bf16 or None.  Returns (Mp,Np) bf16 (Mp==M except for the
    tiny unaligned-M fallback; caller slices)."""
    M, K = a.shape
    Np = w.shape[1]
    cfg = _tpu_config()

    # --- M tiling: prefer a TM that divides M exactly (no jnp.pad pass). ---
    TM = None
    for t in (512, 256, 128):
        if t <= cfg["tm_max"] and M % t == 0:
            TM = t
            break
    if TM is not None:
        Mp = M
    elif M % 16 == 0:
        TM, Mp = M, M                          # small M: one full-height tile
    else:
        Mp = _round_up(M, 16)                  # tiny-M fallback only (M=2, 8)
        TM = Mp
        a = jnp.pad(a, ((0, Mp - M), (0, 0)))
        if residual is not None:
            residual = jnp.pad(residual, ((0, Mp - M), (0, 0)))

    # --- N tiling (Np is always a multiple of 128). ---
    TN = 128
    for t in (512, 256, 128):
        if t <= cfg["tn_max"] and Np % t == 0:
            TN = t
            break

    TK = _choose_tk(K, cfg["tk_max"])

    # v7x: if the parallel axes collapse to a single tile, split so both
    # TensorCores get work (keep tiles >= 128).
    if cfg["split_parallel"] and (Mp // TM) * (Np // TN) < 2:
        if TM % 256 == 0:
            TM //= 2
        elif TN % 256 == 0:
            TN //= 2

    gm, gn, gk = Mp // TM, Np // TN, K // TK
    has_res = residual is not None
    deep = cfg["deep_buffer"]

    if gk > 1:
        grid = (gm, gn, gk)
        sem = ("parallel", "parallel", "arbitrary")
        a_map = lambda i, j, k: (i, k)
        w_map = lambda i, j, k: (k, j)
        v_map = lambda i, j, k: (0, j)
        o_map = lambda i, j, k: (i, j)
        scratch = [pltpu.VMEM((TM, TN), jnp.float32)]
        kernel = functools.partial(_mm_multi_kernel, relu=relu, has_res=has_res)
    else:
        grid = (gm, gn)
        sem = ("parallel", "parallel")
        a_map = lambda i, j: (i, 0)
        w_map = lambda i, j: (0, j)
        v_map = lambda i, j: (0, j)
        o_map = lambda i, j: (i, j)
        scratch = []
        kernel = functools.partial(_mm_single_kernel, relu=relu, has_res=has_res)

    in_specs = [_maybe_buffered((TM, TK), a_map, deep),
                _maybe_buffered((TK, TN), w_map, deep),
                pl.BlockSpec((1, TN), v_map)]
    operands = [a, w, bias]
    if has_res:
        in_specs.append(pl.BlockSpec((TM, TN), o_map))
        operands.append(residual)

    bytes_accessed = (Mp * K + K * Np + Mp * Np) * 2 + Np * 4
    if has_res:
        bytes_accessed += Mp * Np * 2

    out = pl.pallas_call(
        kernel,
        out_shape=jax.ShapeDtypeStruct((Mp, Np), jnp.bfloat16),
        grid=grid,
        in_specs=in_specs,
        out_specs=pl.BlockSpec((TM, TN), o_map),
        scratch_shapes=scratch,
        compiler_params=pltpu.CompilerParams(
            dimension_semantics=sem,
            vmem_limit_bytes=cfg["vmem_limit"]),
        cost_estimate=pl.CostEstimate(
            flops=2 * Mp * Np * K, transcendentals=0,
            bytes_accessed=bytes_accessed),
    )(*operands)
    return out


# ------------------------------- conv glue ---------------------------------

def _im2col(x, kh, kw, stride, pad):
    """NHWC -> (N*Ho*Wo, kh*kw*C) patch matrix.  1x1 convs are pure reshapes."""
    n, h, w, c = x.shape
    if kh == 1 and kw == 1 and pad == 0:
        xs = x[:, ::stride, ::stride, :] if stride > 1 else x
        ho, wo = xs.shape[1], xs.shape[2]
        return xs.reshape(n * ho * wo, c), ho, wo
    # TODO(synk): 3x3/7x7 path still materializes the patch matrix in HBM;
    # folding the kh*kw taps into the K grid axis (element-offset index maps
    # or manual DMA on the padded NHWC activation) would remove this traffic.
    xp = jnp.pad(x, ((0, 0), (pad, pad), (pad, pad), (0, 0)))
    ho = (h + 2 * pad - kh) // stride + 1
    wo = (w + 2 * pad - kw) // stride + 1
    views = [xp[:, dy:dy + stride * ho:stride, dx:dx + stride * wo:stride, :]
             for dy in range(kh) for dx in range(kw)]
    patches = jnp.stack(views, axis=3)                 # (N, Ho, Wo, kh*kw, C)
    return patches.reshape(n * ho * wo, kh * kw * c), ho, wo


def conv_bn(x, p, stride, pad, relu, residual=None):
    """Conv2d (no bias) + folded eval-mode BN (+ ReLU, + fused residual).

    x: NHWC bf16 with channels already padded to the layout stored in p["wm"].
    Output: NHWC bf16 with padded output channels.
    """
    n = x.shape[0]
    kh = kw = p["k"]
    a, ho, wo = _im2col(x, kh, kw, stride, pad)
    wm, bias = p["wm"], p["bias"]
    cout_p = wm.shape[1]
    M = n * ho * wo
    res2 = residual.reshape(M, cout_p) if residual is not None else None
    y = _matmul_fused(a, wm, bias, relu, res2)
    if y.shape[0] != M:
        y = y[:M]
    return y.reshape(n, ho, wo, cout_p)


def maxpool_3x3_s2_p1(x):
    """MaxPool 3x3 stride 2 pad 1, NHWC bf16.  Input is post-ReLU (>=0), so a
    zero pad is equivalent to PyTorch's -inf pad; pairwise max folds, no
    (9,M,C) HBM stack."""
    n, h, w, c = x.shape
    k, stride, pad = 3, 2, 1
    xp = jnp.pad(x, ((0, 0), (pad, pad), (pad, pad), (0, 0)))
    ho = (h + 2 * pad - k) // stride + 1
    wo = (w + 2 * pad - k) // stride + 1
    out = None
    for dy in range(k):
        for dx in range(k):
            v = xp[:, dy:dy + stride * ho:stride, dx:dx + stride * wo:stride, :]
            out = v if out is None else jnp.maximum(out, v)
    return out
    # TODO(synk): if xprof shows XLA failing to fuse the 9 strided maxima,
    # replace with a one-tile Pallas kernel reading the padded block once.


# ----------------------------- parameter init ------------------------------

def _init_conv_bn(key, cin, cout, k, cin_pad):
    """Conv weight + eval-mode BN folded into the weight columns + bias,
    pre-padded & pre-packed into matmul layout (kh*kw*cin_pad, cout_pad) bf16."""
    cout_pad = _round_up(cout, LANE)
    k1, k2, k3, k4, k5 = jax.random.split(key, 5)
    w = 0.1 * jax.random.normal(k1, (cout, cin, k, k), jnp.float32)
    gamma = 1.0 + 0.1 * jax.random.normal(k2, (cout,), jnp.float32)
    beta = 0.1 * jax.random.normal(k3, (cout,), jnp.float32)
    mean = 0.1 * jax.random.normal(k4, (cout,), jnp.float32)
    var = jax.random.uniform(k5, (cout,), jnp.float32, 0.5, 1.5)
    # TODO(synk): eval-mode BN (running stats) folded; training-mode batch
    # statistics are not implemented.
    scale = gamma / jnp.sqrt(var + BN_EPS)
    bias = beta - mean * scale

    # Fold BN scale into the weight columns (per output channel): the kernel
    # epilogue then only adds bias (+ residual) -> one fewer operand/multiply.
    wm_core = jnp.transpose(w, (2, 3, 1, 0)).reshape(k * k, cin, cout)
    wm_core = wm_core * scale[None, None, :]
    wm = jnp.zeros((k * k, cin_pad, cout_pad), jnp.float32)
    wm = wm.at[:, :cin, :cout].set(wm_core)
    wm = wm.reshape(k * k * cin_pad, cout_pad).astype(jnp.bfloat16)

    bias_p = jnp.zeros((1, cout_pad), jnp.float32).at[0, :cout].set(bias)
    return {"wm": wm, "bias": bias_p, "k": k, "cout": cout}


def _init_bottleneck(key, cin, planes, stride):
    keys = jax.random.split(key, 4)
    cin_pad = _round_up(cin, LANE)
    planes_pad = _round_up(planes, LANE)
    p = {
        "conv1": _init_conv_bn(keys[0], cin, planes, 1, cin_pad),
        "conv2": _init_conv_bn(keys[1], planes, planes, 3, planes_pad),
        "conv3": _init_conv_bn(keys[2], planes, planes * EXPANSION, 1, planes_pad),
        "stride": stride,
    }
    if stride != 1 or cin != planes * EXPANSION:
        p["down"] = _init_conv_bn(keys[3], cin, planes * EXPANSION, 1, cin_pad)
    return p


def init_features_params(key, width=8, blocks=(3, 4, 6, 3)):
    keys = jax.random.split(key, 5)
    params = {"stem": _init_conv_bn(keys[0], 3, width, 7, cin_pad=3),
              "layers": []}
    cin = width
    for i, (nblk, mult, stride) in enumerate(zip(blocks, (1, 2, 4, 8), (1, 2, 2, 2))):
        planes = width * mult
        lkeys = jax.random.split(keys[i + 1], nblk)
        layer = []
        for b in range(nblk):
            s = stride if b == 0 else 1
            layer.append(_init_bottleneck(lkeys[b], cin, planes, s))
            cin = planes * EXPANSION
        params["layers"].append(layer)
    return params


# --------------------------------- forward ---------------------------------

def bottleneck_forward(x, p):
    out = conv_bn(x, p["conv1"], 1, 0, True)
    out = conv_bn(out, p["conv2"], p["stride"], 1, True)
    if "down" in p:
        identity = conv_bn(x, p["down"], p["stride"], 0, False)
    else:
        identity = x
    # conv3 + BN + residual add + ReLU fused into one pallas_call epilogue.
    return conv_bn(out, p["conv3"], 1, 0, True, residual=identity)


def features_forward(x_nchw, params):
    """Mirrors Features.forward: returns (x1, x2, x3) = layer2/3/4 outputs (NCHW)."""
    x = jnp.transpose(x_nchw, (0, 2, 3, 1)).astype(jnp.bfloat16)   # NCHW -> NHWC
    x = conv_bn(x, params["stem"], 2, 3, True)          # net_layer_0,1,2
    x = maxpool_3x3_s2_p1(x)                            # net_layer_3
    for blk in params["layers"][0]:                     # net_layer_4 (layer1)
        x = bottleneck_forward(x, blk)
    x1 = x
    for blk in params["layers"][1]:                     # net_layer_5 (layer2)
        x1 = bottleneck_forward(x1, blk)
    x2 = x1
    for blk in params["layers"][2]:                     # net_layer_6 (layer3)
        x2 = bottleneck_forward(x2, blk)
    x3 = x2
    for blk in params["layers"][3]:                     # net_layer_7 (layer4)
        x3 = bottleneck_forward(x3, blk)

    def finish(t, layer_idx):
        c_real = params["layers"][layer_idx][-1]["conv3"]["cout"]
        return jnp.transpose(t[..., :c_real], (0, 3, 1, 2)).astype(jnp.float32)

    return finish(x1, 1), finish(x2, 2), finish(x3, 3)


if __name__ == "__main__":
    key = jax.random.PRNGKey(0)
    pkey, xkey = jax.random.split(key)
    # Full ResNet50 block structure (3,4,6,3), width scaled 64 -> 8 for a small demo.
    params = init_features_params(pkey, width=8, blocks=(3, 4, 6, 3))
    x = jax.random.normal(xkey, (2, 3, 32, 32), jnp.float32)   # NCHW, like PyTorch

    fwd = jax.jit(lambda inp: features_forward(inp, params))
    x1, x2, x3 = fwd(x)
    jax.block_until_ready((x1, x2, x3))

    assert x1.shape == (2, 8 * 2 * EXPANSION, 4, 4)    # (2, 64, 4, 4)
    assert x2.shape == (2, 8 * 4 * EXPANSION, 2, 2)    # (2, 128, 2, 2)
    assert x3.shape == (2, 8 * 8 * EXPANSION, 1, 1)    # (2, 256, 1, 1)
    print("KERNEL_OK")
</pallas_src>

<mosaic_0001>
module attributes {stable_mosaic.version = 11 : i64} {
  func.func @_mm_single_kernel(%arg0: i32, %arg1: i32, %arg2: memref<512x147xbf16, #tpu.memory_space<vmem>>, %arg3: memref<147x128xbf16, #tpu.memory_space<vmem>>, %arg4: memref<1x128xf32, #tpu.memory_space<vmem>>, %arg5: memref<512x128xbf16, #tpu.memory_space<vmem>>) attributes {dimension_semantics = [#tpu.dimension_semantics<parallel>, #tpu.dimension_semantics<parallel>], iteration_bounds = array<i64: 1, 1>, scalar_prefetch = 0 : i64, scratch_operands = 0 : i64, tpu.core_type = #tpu.core_type<tc>, window_params = [{transform_indices = @transform_0, window_bounds = array<i64: 512, 147>}, {transform_indices = @transform_1, window_bounds = array<i64: 147, 128>}, {transform_indices = @transform_2, window_bounds = array<i64: 1, 128>}, {transform_indices = @transform_3, window_bounds = array<i64: 512, 128>}]} {
    %c0 = arith.constant 0 : index
    %c0_0 = arith.constant 0 : index
    %0 = vector.load %arg2[%c0, %c0_0] : memref<512x147xbf16, #tpu.memory_space<vmem>>, vector<512x147xbf16>
    %c0_1 = arith.constant 0 : index
    %c0_2 = arith.constant 0 : index
    %1 = vector.load %arg3[%c0_1, %c0_2] : memref<147x128xbf16, #tpu.memory_space<vmem>>, vector<147x128xbf16>
    %cst = arith.constant dense<0.000000e+00> : vector<512x128xf32>
    %2 = tpu.matmul %0, %1, %cst {dimension_numbers = #tpu.dot_dimension_numbers<[1], [0], [0], [1], [0, 0, 1, 1], [], []>} : vector<512x147xbf16>, vector<147x128xbf16>, vector<512x128xf32> -> vector<512x128xf32>
    %c0_3 = arith.constant 0 : index
    %c0_4 = arith.constant 0 : index
    %3 = vector.load %arg4[%c0_3, %c0_4] : memref<1x128xf32, #tpu.memory_space<vmem>>, vector<1x128xf32>
    %4 = vector.broadcast %3 : vector<1x128xf32> to vector<512x128xf32>
    %5 = arith.addf %2, %4 : vector<512x128xf32>
    %cst_5 = arith.constant 0.000000e+00 : f32
    %6 = vector.broadcast %cst_5 : f32 to vector<512x128xf32>
    %7 = arith.maximumf %5, %6 : vector<512x128xf32>
    %8 = arith.truncf %7 : vector<512x128xf32> to vector<512x128xbf16>
    %c0_6 = arith.constant 0 : index
    %c0_7 = arith.constant 0 : index
    %9 = vector.load %arg5[%c0_6, %c0_7] : memref<512x128xbf16, #tpu.memory_space<vmem>>, vector<512x128xbf16>
    tpu.vector_store %arg5[%c0_6, %c0_7], %8 {strides = array<i32>} : memref<512x128xbf16, #tpu.memory_space<vmem>>, vector<512x128xbf16>,
    return
  }
  func.func @transform_0(%arg0: i32, %arg1: i32) -> (i32, i32) {
    %c0_i32 = arith.constant 0 : i32
    %c0_i32_0 = arith.constant 0 : i32
    return %arg0, %c0_i32 : i32, i32
  }
  func.func @transform_1(%arg0: i32, %arg1: i32) -> (i32, i32) {
    %c0_i32 = arith.constant 0 : i32
    %c0_i32_0 = arith.constant 0 : i32
    return %c0_i32, %arg1 : i32, i32
  }
  func.func @transform_2(%arg0: i32, %arg1: i32) -> (i32, i32) {
    %c0_i32 = arith.constant 0 : i32
    %c0_i32_0 = arith.constant 0 : i32
    return %c0_i32, %arg1 : i32, i32
  }
  func.func @transform_3(%arg0: i32, %arg1: i32) -> (i32, i32) {
    %c0_i32 = arith.constant 0 : i32
    return %arg0, %arg1 : i32, i32
  }
}

module attributes {stable_mosaic.version = 11 : i64} {
  func.func @_mm_single_kernel(%arg0: i32, %arg1: i32, %arg2: memref<128x128xbf16, #tpu.memory_space<vmem>>, %arg3: memref<128x128xbf16, #tpu.memory_space<vmem>>, %arg4: memref<1x128xf32, #tpu.memory_space<vmem>>, %arg5: memref<128x128xbf16, #tpu.memory_space<vmem>>) attributes {dimension_semantics = [#tpu.dimension_semantics<parallel>, #tpu.dimension_semantics<parallel>], iteration_bounds = array<i64: 1, 1>, scalar_prefetch = 0 : i64, scratch_operands = 0 : i64, tpu.core_type = #tpu.core_type<tc>, window_params = [{transform_indices = @transform_0, window_bounds = array<i64: 128, 128>}, {transform_indices = @transform_1, window_bounds = array<i64: 128, 128>}, {transform_indices = @transform_2, window_bounds = array<i64: 1, 128>}, {transform_indices = @transform_3, window_bounds = array<i64: 128, 128>}]} {
    %c0 = arith.constant 0 : index
    %c0_0 = arith.constant 0 : index
    %0 = vector.load %arg2[%c0, %c0_0] : memref<128x128xbf16, #tpu.memory_space<vmem>>, vector<128x128xbf16>
    %c0_1 = arith.constant 0 : index
    %c0_2 = arith.constant 0 : index
    %1 = vector.load %arg3[%c0_1, %c0_2] : memref<128x128xbf16, #tpu.memory_space<vmem>>, vector<128x128xbf16>
    %cst = arith.constant dense<0.000000e+00> : vector<128x128xf32>
    %2 = tpu.matmul %0, %1, %cst {dimension_numbers = #tpu.dot_dimension_numbers<[1], [0], [0], [1], [0, 0, 1, 1], [], []>} : vector<128x128xbf16>, vector<128x128xbf16>, vector<128x128xf32> -> vector<128x128xf32>
    %c0_3 = arith.constant 0 : index
    %c0_4 = arith.constant 0 : index
    %3 = vector.load %arg4[%c0_3, %c0_4] : memref<1x128xf32, #tpu.memory_space<vmem>>, vector<1x128xf32>
    %4 = vector.broadcast %3 : vector<1x128xf32> to vector<128x128xf32>
    %5 = arith.addf %2, %4 : vector<128x128xf32>
    %cst_5 = arith.constant 0.000000e+00 : f32
    %6 = vector.broadcast %cst_5 : f32 to vector<128x128xf32>
    %7 = arith.maximumf %5, %6 : vector<128x128xf32>
    %8 = arith.truncf %7 : vector<128x128xf32> to vector<128x128xbf16>
    %c0_6 = arith.constant 0 : index
    %c0_7 = arith.constant 0 : index
    %9 = vector.load %arg5[%c0_6, %c0_7] : memref<128x128xbf16, #tpu.memory_space<vmem>>, vector<128x128xbf16>
    tpu.vector_store %arg5[%c0_6, %c0_7], %8 {strides = array<i32>} : memref<128x128xbf16, #tpu.memory_space<vmem>>, vector<128x128xbf16>,
    return
  }
  func.func @transform_0(%arg0: i32, %arg1: i32) -> (i32, i32) {
    %c0_i32 = arith.constant 0 : i32
    %c0_i32_0 = arith.constant 0 : i32
    return %arg0, %c0_i32 : i32, i32
  }
  func.func @transform_1(%arg0: i32, %arg1: i32) -> (i32, i32) {
    %c0_i32 = arith.constant 0 : i32
    %c0_i32_0 = arith.constant 0 : i32
    return %c0_i32, %arg1 : i32, i32
  }
  func.func @transform_2(%arg0: i32, %arg1: i32) -> (i32, i32) {
    %c0_i32 = arith.constant 0 : i32
    %c0_i32_0 = arith.constant 0 : i32
    return %c0_i32, %arg1 : i32, i32
  }
  func.func @transform_3(%arg0: i32, %arg1: i32) -> (i32, i32) {
    %c0_i32 = arith.constant 0 : i32
    return %arg0, %arg1 : i32, i32
  }
}

module attributes {stable_mosaic.version = 11 : i64} {
  func.func @_mm_multi_kernel(%arg0: i32, %arg1: i32, %arg2: i32, %arg3: memref<128x384xbf16, #tpu.memory_space<vmem>>, %arg4: memref<384x128xbf16, #tpu.memory_space<vmem>>, %arg5: memref<1x128xf32, #tpu.memory_space<vmem>>, %arg6: memref<128x128xbf16, #tpu.memory_space<vmem>>, %arg7: memref<128x128xf32, #tpu.memory_space<vmem>>) attributes {dimension_semantics = [#tpu.dimension_semantics<parallel>, #tpu.dimension_semantics<parallel>, #tpu.dimension_semantics<arbitrary>], iteration_bounds = array<i64: 1, 1, 3>, scalar_prefetch = 0 : i64, scratch_operands = 1 : i64, tpu.core_type = #tpu.core_type<tc>, window_params = [{transform_indices = @transform_0, window_bounds = array<i64: 128, 384>}, {transform_indices = @transform_1, window_bounds = array<i64: 384, 128>}, {transform_indices = @transform_2, window_bounds = array<i64: 1, 128>}, {transform_indices = @transform_3, window_bounds = array<i64: 128, 128>}]} {
    %c0 = arith.constant 0 : index
    %c0_0 = arith.constant 0 : index
    %0 = vector.load %arg3[%c0, %c0_0] : memref<128x384xbf16, #tpu.memory_space<vmem>>, vector<128x384xbf16>
    %c0_1 = arith.constant 0 : index
    %c0_2 = arith.constant 0 : index
    %1 = vector.load %arg4[%c0_1, %c0_2] : memref<384x128xbf16, #tpu.memory_space<vmem>>, vector<384x128xbf16>
    %cst = arith.constant dense<0.000000e+00> : vector<128x128xf32>
    %2 = tpu.matmul %0, %1, %cst {dimension_numbers = #tpu.dot_dimension_numbers<[1], [0], [0], [1], [0, 0, 1, 1], [], []>} : vector<128x384xbf16>, vector<384x128xbf16>, vector<128x128xf32> -> vector<128x128xf32>
    %c0_i32 = arith.constant 0 : i32
    %3 = arith.cmpi eq, %arg2, %c0_i32 : i32
    %4 = arith.extui %3 : i1 to i32
    %c0_i32_3 = arith.constant 0 : i32
    %5 = arith.cmpi ne, %4, %c0_i32_3 : i32
    scf.if %5 {
      %c0_7 = arith.constant 0 : index
      %c0_8 = arith.constant 0 : index
      %12 = vector.load %arg7[%c0_7, %c0_8] : memref<128x128xf32, #tpu.memory_space<vmem>>, vector<128x128xf32>
      tpu.vector_store %arg7[%c0_7, %c0_8], %2 {strides = array<i32>} : memref<128x128xf32, #tpu.memory_space<vmem>>, vector<128x128xf32>,
    } else {
    }
    %c0_i32_4 = arith.constant 0 : i32
    %6 = arith.cmpi sgt, %arg2, %c0_i32_4 : i32
    %7 = arith.extui %6 : i1 to i32
    %c0_i32_5 = arith.constant 0 : i32
    %8 = arith.cmpi ne, %7, %c0_i32_5 : i32
    scf.if %8 {
      %c0_7 = arith.constant 0 : index
      %c0_8 = arith.constant 0 : index
      %12 = vector.load %arg7[%c0_7, %c0_8] : memref<128x128xf32, #tpu.memory_space<vmem>>, vector<128x128xf32>
      %13 = arith.addf %12, %2 : vector<128x128xf32>
      %c0_9 = arith.constant 0 : index
      %c0_10 = arith.constant 0 : index
      %14 = vector.load %arg7[%c0_9, %c0_10] : memref<128x128xf32, #tpu.memory_space<vmem>>, vector<128x128xf32>
      tpu.vector_store %arg7[%c0_9, %c0_10], %13 {strides = array<i32>} : memref<128x128xf32, #tpu.memory_space<vmem>>, vector<128x128xf32>,
    } else {
    }
    %c2_i32 = arith.constant 2 : i32
    %9 = arith.cmpi eq, %arg2, %c2_i32 : i32
    %10 = arith.extui %9 : i1 to i32
    %c0_i32_6 = arith.constant 0 : i32
    %11 = arith.cmpi ne, %10, %c0_i32_6 : i32
    scf.if %11 {
      %c0_7 = arith.constant 0 : index
      %c0_8 = arith.constant 0 : index
      %12 = vector.load %arg7[%c0_7, %c0_8] : memref<128x128xf32, #tpu.memory_space<vmem>>, vector<128x128xf32>
      %c0_9 = arith.constant 0 : index
      %c0_10 = arith.constant 0 : index
      %13 = vector.load %arg5[%c0_9, %c0_10] : memref<1x128xf32, #tpu.memory_space<vmem>>, vector<1x128xf32>
      %14 = vector.broadcast %13 : vector<1x128xf32> to vector<128x128xf32>
      %15 = arith.addf %12, %14 : vector<128x128xf32>
      %cst_11 = arith.constant 0.000000e+00 : f32
      %16 = vector.broadcast %cst_11 : f32 to vector<128x128xf32>
      %17 = arith.maximumf %15, %16 : vector<128x128xf32>
      %18 = arith.truncf %17 : vector<128x128xf32> to vector<128x128xbf16>
      %c0_12 = arith.constant 0 : index
      %c0_13 = arith.constant 0 : index
      %19 = vector.load %arg6[%c0_12, %c0_13] : memref<128x128xbf16, #tpu.memory_space<vmem>>, vector<128x128xbf16>
      tpu.vector_store %arg6[%c0_12, %c0_13], %18 {strides = array<i32>} : memref<128x128xbf16, #tpu.memory_space<vmem>>, vector<128x128xbf16>,
    } else {
    }
    return
  }
  func.func @transform_0(%arg0: i32, %arg1: i32, %arg2: i32) -> (i32, i32) {
    %c0_i32 = arith.constant 0 : i32
    return %arg0, %arg2 : i32, i32
  }
  func.func @transform_1(%arg0: i32, %arg1: i32, %arg2: i32) -> (i32, i32) {
    %c0_i32 = arith.constant 0 : i32
    return %arg2, %arg1 : i32, i32
  }
  func.func @transform_2(%arg0: i32, %arg1: i32, %arg2: i32) -> (i32, i32) {
    %c0_i32 = arith.constant 0 : i32
    %c0_i32_0 = arith.constant 0 : i32
    return %c0_i32, %arg1 : i32, i32
  }
  func.func @transform_3(%arg0: i32, %arg1: i32, %arg2: i32) -> (i32, i32) {
    %c0_i32 = arith.constant 0 : i32
    return %arg0, %arg1 : i32, i32
  }
}

module attributes {stable_mosaic.version = 11 : i64} {
  func.func @_mm_single_kernel(%arg0: i32, %arg1: i32, %arg2: memref<128x128xbf16, #tpu.memory_space<vmem>>, %arg3: memref<128x128xbf16, #tpu.memory_space<vmem>>, %arg4: memref<1x128xf32, #tpu.memory_space<vmem>>, %arg5: memref<128x128xbf16, #tpu.memory_space<vmem>>, %arg6: memref<128x128xbf16, #tpu.memory_space<vmem>>) attributes {dimension_semantics = [#tpu.dimension_semantics<parallel>, #tpu.dimension_semantics<parallel>], iteration_bounds = array<i64: 1, 1>, scalar_prefetch = 0 : i64, scratch_operands = 0 : i64, tpu.core_type = #tpu.core_type<tc>, window_params = [{transform_indices = @transform_0, window_bounds = array<i64: 128, 128>}, {transform_indices = @transform_1, window_bounds = array<i64: 128, 128>}, {transform_indices = @transform_2, window_bounds = array<i64: 1, 128>}, {transform_indices = @transform_3, window_bounds = array<i64: 128, 128>}, {transform_indices = @transform_4, window_bounds = array<i64: 128, 128>}]} {
    %c0 = arith.constant 0 : index
    %c0_0 = arith.constant 0 : index
    %0 = vector.load %arg2[%c0, %c0_0] : memref<128x128xbf16, #tpu.memory_space<vmem>>, vector<128x128xbf16>
    %c0_1 = arith.constant 0 : index
    %c0_2 = arith.constant 0 : index
    %1 = vector.load %arg3[%c0_1, %c0_2] : memref<128x128xbf16, #tpu.memory_space<vmem>>, vector<128x128xbf16>
    %cst = arith.constant dense<0.000000e+00> : vector<128x128xf32>
    %2 = tpu.matmul %0, %1, %cst {dimension_numbers = #tpu.dot_dimension_numbers<[1], [0], [0], [1], [0, 0, 1, 1], [], []>} : vector<128x128xbf16>, vector<128x128xbf16>, vector<128x128xf32> -> vector<128x128xf32>
    %c0_3 = arith.constant 0 : index
    %c0_4 = arith.constant 0 : index
    %3 = vector.load %arg4[%c0_3, %c0_4] : memref<1x128xf32, #tpu.memory_space<vmem>>, vector<1x128xf32>
    %4 = vector.broadcast %3 : vector<1x128xf32> to vector<128x128xf32>
    %5 = arith.addf %2, %4 : vector<128x128xf32>
    %c0_5 = arith.constant 0 : index
    %c0_6 = arith.constant 0 : index
    %6 = vector.load %arg5[%c0_5, %c0_6] : memref<128x128xbf16, #tpu.memory_space<vmem>>, vector<128x128xbf16>
    %7 = arith.extf %6 : vector<128x128xbf16> to vector<128x128xf32>
    %8 = arith.addf %5, %7 : vector<128x128xf32>
    %cst_7 = arith.constant 0.000000e+00 : f32
    %9 = vector.broadcast %cst_7 : f32 to vector<128x128xf32>
    %10 = arith.maximumf %8, %9 : vector<128x128xf32>
    %11 = arith.truncf %10 : vector<128x128xf32> to vector<128x128xbf16>
    %c0_8 = arith.constant 0 : index
    %c0_9 = arith.constant 0 : index
    %12 = vector.load %arg6[%c0_8, %c0_9] : memref<128x128xbf16, #tpu.memory_space<vmem>>, vector<128x128xbf16>
    tpu.vector_store %arg6[%c0_8, %c0_9], %11 {strides = array<i32>} : memref<128x128xbf16, #tpu.memory_space<vmem>>, vector<128x128xbf16>,
    return
  }
  func.func @transform_0(%arg0: i32, %arg1: i32) -> (i32, i32) {
    %c0_i32 = arith.constant 0 : i32
    %c0_i32_0 = arith.constant 0 : i32
    return %arg0, %c0_i32 : i32, i32
  }
  func.func @transform_1(%arg0: i32, %arg1: i32) -> (i32, i32) {
    %c0_i32 = arith.constant 0 : i32
    %c0_i32_0 = arith.constant 0 : i32
    return %c0_i32, %arg1 : i32, i32
  }
  func.func @transform_2(%arg0: i32, %arg1: i32) -> (i32, i32) {
    %c0_i32 = arith.constant 0 : i32
    %c0_i32_0 = arith.constant 0 : i32
    return %c0_i32, %arg1 : i32, i32
  }
  func.func @transform_3(%arg0: i32, %arg1: i32) -> (i32, i32) {
    %c0_i32 = arith.constant 0 : i32
    return %arg0, %arg1 : i32, i32
  }
  func.func @transform_4(%arg0: i32, %arg1: i32) -> (i32, i32) {
    %c0_i32 = arith.constant 0 : i32
    return %arg0, %arg1 : i32, i32
  }
}

module attributes {stable_mosaic.version = 11 : i64} {
  func.func @_mm_single_kernel(%arg0: i32, %arg1: i32, %arg2: memref<128x128xbf16, #tpu.memory_space<vmem>>, %arg3: memref<128x128xbf16, #tpu.memory_space<vmem>>, %arg4: memref<1x128xf32, #tpu.memory_space<vmem>>, %arg5: memref<128x128xbf16, #tpu.memory_space<vmem>>) attributes {dimension_semantics = [#tpu.dimension_semantics<parallel>, #tpu.dimension_semantics<parallel>], iteration_bounds = array<i64: 1, 1>, scalar_prefetch = 0 : i64, scratch_operands = 0 : i64, tpu.core_type = #tpu.core_type<tc>, window_params = [{transform_indices = @transform_0, window_bounds = array<i64: 128, 128>}, {transform_indices = @transform_1, window_bounds = array<i64: 128, 128>}, {transform_indices = @transform_2, window_bounds = array<i64: 1, 128>}, {transform_indices = @transform_3, window_bounds = array<i64: 128, 128>}]} {
    %c0 = arith.constant 0 : index
    %c0_0 = arith.constant 0 : index
    %0 = vector.load %arg2[%c0, %c0_0] : memref<128x128xbf16, #tpu.memory_space<vmem>>, vector<128x128xbf16>
    %c0_1 = arith.constant 0 : index
    %c0_2 = arith.constant 0 : index
    %1 = vector.load %arg3[%c0_1, %c0_2] : memref<128x128xbf16, #tpu.memory_space<vmem>>, vector<128x128xbf16>
    %cst = arith.constant dense<0.000000e+00> : vector<128x128xf32>
    %2 = tpu.matmul %0, %1, %cst {dimension_numbers = #tpu.dot_dimension_numbers<[1], [0], [0], [1], [0, 0, 1, 1], [], []>} : vector<128x128xbf16>, vector<128x128xbf16>, vector<128x128xf32> -> vector<128x128xf32>
    %c0_3 = arith.constant 0 : index
    %c0_4 = arith.constant 0 : index
    %3 = vector.load %arg4[%c0_3, %c0_4] : memref<1x128xf32, #tpu.memory_space<vmem>>, vector<1x128xf32>
    %4 = vector.broadcast %3 : vector<1x128xf32> to vector<128x128xf32>
    %5 = arith.addf %2, %4 : vector<128x128xf32>
    %6 = arith.truncf %5 : vector<128x128xf32> to vector<128x128xbf16>
    %c0_5 = arith.constant 0 : index
    %c0_6 = arith.constant 0 : index
    %7 = vector.load %arg5[%c0_5, %c0_6] : memref<128x128xbf16, #tpu.memory_space<vmem>>, vector<128x128xbf16>
    tpu.vector_store %arg5[%c0_5, %c0_6], %6 {strides = array<i32>} : memref<128x128xbf16, #tpu.memory_space<vmem>>, vector<128x128xbf16>,
    return
  }
  func.func @transform_0(%arg0: i32, %arg1: i32) -> (i32, i32) {
    %c0_i32 = arith.constant 0 : i32
    %c0_i32_0 = arith.constant 0 : i32
    return %arg0, %c0_i32 : i32, i32
  }
  func.func @transform_1(%arg0: i32, %arg1: i32) -> (i32, i32) {
    %c0_i32 = arith.constant 0 : i32
    %c0_i32_0 = arith.constant 0 : i32
    return %c0_i32, %arg1 : i32, i32
  }
  func.func @transform_2(%arg0: i32, %arg1: i32) -> (i32, i32) {
    %c0_i32 = arith.constant 0 : i32
    %c0_i32_0 = arith.constant 0 : i32
    return %c0_i32, %arg1 : i32, i32
  }
  func.func @transform_3(%arg0: i32, %arg1: i32) -> (i32, i32) {
    %c0_i32 = arith.constant 0 : i32
    return %arg0, %arg1 : i32, i32
  }
}

module attributes {stable_mosaic.version = 11 : i64} {
  func.func @_mm_single_kernel(%arg0: i32, %arg1: i32, %arg2: memref<32x128xbf16, #tpu.memory_space<vmem>>, %arg3: memref<128x128xbf16, #tpu.memory_space<vmem>>, %arg4: memref<1x128xf32, #tpu.memory_space<vmem>>, %arg5: memref<32x128xbf16, #tpu.memory_space<vmem>>, %arg6: memref<32x128xbf16, #tpu.memory_space<vmem>>) attributes {dimension_semantics = [#tpu.dimension_semantics<parallel>, #tpu.dimension_semantics<parallel>], iteration_bounds = array<i64: 1, 1>, scalar_prefetch = 0 : i64, scratch_operands = 0 : i64, tpu.core_type = #tpu.core_type<tc>, window_params = [{transform_indices = @transform_0, window_bounds = array<i64: 32, 128>}, {transform_indices = @transform_1, window_bounds = array<i64: 128, 128>}, {transform_indices = @transform_2, window_bounds = array<i64: 1, 128>}, {transform_indices = @transform_3, window_bounds = array<i64: 32, 128>}, {transform_indices = @transform_4, window_bounds = array<i64: 32, 128>}]} {
    %c0 = arith.constant 0 : index
    %c0_0 = arith.constant 0 : index
    %0 = vector.load %arg2[%c0, %c0_0] : memref<32x128xbf16, #tpu.memory_space<vmem>>, vector<32x128xbf16>
    %c0_1 = arith.constant 0 : index
    %c0_2 = arith.constant 0 : index
    %1 = vector.load %arg3[%c0_1, %c0_2] : memref<128x128xbf16, #tpu.memory_space<vmem>>, vector<128x128xbf16>
    %cst = arith.constant dense<0.000000e+00> : vector<32x128xf32>
    %2 = tpu.matmul %0, %1, %cst {dimension_numbers = #tpu.dot_dimension_numbers<[1], [0], [0], [1], [0, 0, 1, 1], [], []>} : vector<32x128xbf16>, vector<128x128xbf16>, vector<32x128xf32> -> vector<32x128xf32>
    %c0_3 = arith.constant 0 : index
    %c0_4 = arith.constant 0 : index
    %3 = vector.load %arg4[%c0_3, %c0_4] : memref<1x128xf32, #tpu.memory_space<vmem>>, vector<1x128xf32>
    %4 = vector.broadcast %3 : vector<1x128xf32> to vector<32x128xf32>
    %5 = arith.addf %2, %4 : vector<32x128xf32>
    %c0_5 = arith.constant 0 : index
    %c0_6 = arith.constant 0 : index
    %6 = vector.load %arg5[%c0_5, %c0_6] : memref<32x128xbf16, #tpu.memory_space<vmem>>, vector<32x128xbf16>
    %7 = arith.extf %6 : vector<32x128xbf16> to vector<32x128xf32>
    %8 = arith.addf %5, %7 : vector<32x128xf32>
    %cst_7 = arith.constant 0.000000e+00 : f32
    %9 = vector.broadcast %cst_7 : f32 to vector<32x128xf32>
    %10 = arith.maximumf %8, %9 : vector<32x128xf32>
    %11 = arith.truncf %10 : vector<32x128xf32> to vector<32x128xbf16>
    %c0_8 = arith.constant 0 : index
    %c0_9 = arith.constant 0 : index
    %12 = vector.load %arg6[%c0_8, %c0_9] : memref<32x128xbf16, #tpu.memory_space<vmem>>, vector<32x128xbf16>
    tpu.vector_store %arg6[%c0_8, %c0_9], %11 {strides = array<i32>} : memref<32x128xbf16, #tpu.memory_space<vmem>>, vector<32x128xbf16>,
    return
  }
  func.func @transform_0(%arg0: i32, %arg1: i32) -> (i32, i32) {
    %c0_i32 = arith.constant 0 : i32
    %c0_i32_0 = arith.constant 0 : i32
    return %arg0, %c0_i32 : i32, i32
  }
  func.func @transform_1(%arg0: i32, %arg1: i32) -> (i32, i32) {
    %c0_i32 = arith.constant 0 : i32
    %c0_i32_0 = arith.constant 0 : i32
    return %c0_i32, %arg1 : i32, i32
  }
  func.func @transform_2(%arg0: i32, %arg1: i32) -> (i32, i32) {
    %c0_i32 = arith.constant 0 : i32
    %c0_i32_0 = arith.constant 0 : i32
    return %c0_i32, %arg1 : i32, i32
  }
  func.func @transform_3(%arg0: i32, %arg1: i32) -> (i32, i32) {
    %c0_i32 = arith.constant 0 : i32
    return %arg0, %arg1 : i32, i32
  }
  func.func @transform_4(%arg0: i32, %arg1: i32) -> (i32, i32) {
    %c0_i32 = arith.constant 0 : i32
    return %arg0, %arg1 : i32, i32
  }
}

module attributes {stable_mosaic.version = 11 : i64} {
  func.func @_mm_multi_kernel(%arg0: i32, %arg1: i32, %arg2: i32, %arg3: memref<32x384xbf16, #tpu.memory_space<vmem>>, %arg4: memref<384x128xbf16, #tpu.memory_space<vmem>>, %arg5: memref<1x128xf32, #tpu.memory_space<vmem>>, %arg6: memref<32x128xbf16, #tpu.memory_space<vmem>>, %arg7: memref<32x128xf32, #tpu.memory_space<vmem>>) attributes {dimension_semantics = [#tpu.dimension_semantics<parallel>, #tpu.dimension_semantics<parallel>, #tpu.dimension_semantics<arbitrary>], iteration_bounds = array<i64: 1, 1, 3>, scalar_prefetch = 0 : i64, scratch_operands = 1 : i64, tpu.core_type = #tpu.core_type<tc>, window_params = [{transform_indices = @transform_0, window_bounds = array<i64: 32, 384>}, {transform_indices = @transform_1, window_bounds = array<i64: 384, 128>}, {transform_indices = @transform_2, window_bounds = array<i64: 1, 128>}, {transform_indices = @transform_3, window_bounds = array<i64: 32, 128>}]} {
    %c0 = arith.constant 0 : index
    %c0_0 = arith.constant 0 : index
    %0 = vector.load %arg3[%c0, %c0_0] : memref<32x384xbf16, #tpu.memory_space<vmem>>, vector<32x384xbf16>
    %c0_1 = arith.constant 0 : index
    %c0_2 = arith.constant 0 : index
    %1 = vector.load %arg4[%c0_1, %c0_2] : memref<384x128xbf16, #tpu.memory_space<vmem>>, vector<384x128xbf16>
    %cst = arith.constant dense<0.000000e+00> : vector<32x128xf32>
    %2 = tpu.matmul %0, %1, %cst {dimension_numbers = #tpu.dot_dimension_numbers<[1], [0], [0], [1], [0, 0, 1, 1], [], []>} : vector<32x384xbf16>, vector<384x128xbf16>, vector<32x128xf32> -> vector<32x128xf32>
    %c0_i32 = arith.constant 0 : i32
    %3 = arith.cmpi eq, %arg2, %c0_i32 : i32
    %4 = arith.extui %3 : i1 to i32
    %c0_i32_3 = arith.constant 0 : i32
    %5 = arith.cmpi ne, %4, %c0_i32_3 : i32
    scf.if %5 {
      %c0_7 = arith.constant 0 : index
      %c0_8 = arith.constant 0 : index
      %12 = vector.load %arg7[%c0_7, %c0_8] : memref<32x128xf32, #tpu.memory_space<vmem>>, vector<32x128xf32>
      tpu.vector_store %arg7[%c0_7, %c0_8], %2 {strides = array<i32>} : memref<32x128xf32, #tpu.memory_space<vmem>>, vector<32x128xf32>,
    } else {
    }
    %c0_i32_4 = arith.constant 0 : i32
    %6 = arith.cmpi sgt, %arg2, %c0_i32_4 : i32
    %7 = arith.extui %6 : i1 to i32
    %c0_i32_5 = arith.constant 0 : i32
    %8 = arith.cmpi ne, %7, %c0_i32_5 : i32
    scf.if %8 {
      %c0_7 = arith.constant 0 : index
      %c0_8 = arith.constant 0 : index
      %12 = vector.load %arg7[%c0_7, %c0_8] : memref<32x128xf32, #tpu.memory_space<vmem>>, vector<32x128xf32>
      %13 = arith.addf %12, %2 : vector<32x128xf32>
      %c0_9 = arith.constant 0 : index
      %c0_10 = arith.constant 0 : index
      %14 = vector.load %arg7[%c0_9, %c0_10] : memref<32x128xf32, #tpu.memory_space<vmem>>, vector<32x128xf32>
      tpu.vector_store %arg7[%c0_9, %c0_10], %13 {strides = array<i32>} : memref<32x128xf32, #tpu.memory_space<vmem>>, vector<32x128xf32>,
    } else {
    }
    %c2_i32 = arith.constant 2 : i32
    %9 = arith.cmpi eq, %arg2, %c2_i32 : i32
    %10 = arith.extui %9 : i1 to i32
    %c0_i32_6 = arith.constant 0 : i32
    %11 = arith.cmpi ne, %10, %c0_i32_6 : i32
    scf.if %11 {
      %c0_7 = arith.constant 0 : index
      %c0_8 = arith.constant 0 : index
      %12 = vector.load %arg7[%c0_7, %c0_8] : memref<32x128xf32, #tpu.memory_space<vmem>>, vector<32x128xf32>
      %c0_9 = arith.constant 0 : index
      %c0_10 = arith.constant 0 : index
      %13 = vector.load %arg5[%c0_9, %c0_10] : memref<1x128xf32, #tpu.memory_space<vmem>>, vector<1x128xf32>
      %14 = vector.broadcast %13 : vector<1x128xf32> to vector<32x128xf32>
      %15 = arith.addf %12, %14 : vector<32x128xf32>
      %cst_11 = arith.constant 0.000000e+00 : f32
      %16 = vector.broadcast %cst_11 : f32 to vector<32x128xf32>
      %17 = arith.maximumf %15, %16 : vector<32x128xf32>
      %18 = arith.truncf %17 : vector<32x128xf32> to vector<32x128xbf16>
      %c0_12 = arith.constant 0 : index
      %c0_13 = arith.constant 0 : index
      %19 = vector.load %arg6[%c0_12, %c0_13] : memref<32x128xbf16, #tpu.memory_space<vmem>>, vector<32x128xbf16>
      tpu.vector_store %arg6[%c0_12, %c0_13], %18 {strides = array<i32>} : memref<32x128xbf16, #tpu.memory_space<vmem>>, vector<32x128xbf16>,
    } else {
    }
    return
  }
  func.func @transform_0(%arg0: i32, %arg1: i32, %arg2: i32) -> (i32, i32) {
    %c0_i32 = arith.constant 0 : i32
    return %arg0, %arg2 : i32, i32
  }
  func.func @transform_1(%arg0: i32, %arg1: i32, %arg2: i32) -> (i32, i32) {
    %c0_i32 = arith.constant 0 : i32
    return %arg2, %arg1 : i32, i32
  }
  func.func @transform_2(%arg0: i32, %arg1: i32, %arg2: i32) -> (i32, i32) {
    %c0_i32 = arith.constant 0 : i32
    %c0_i32_0 = arith.constant 0 : i32
    return %c0_i32, %arg1 : i32, i32
  }
  func.func @transform_3(%arg0: i32, %arg1: i32, %arg2: i32) -> (i32, i32) {
    %c0_i32 = arith.constant 0 : i32
    return %arg0, %arg1 : i32, i32
  }
}

module attributes {stable_mosaic.version = 11 : i64} {
  func.func @_mm_single_kernel(%arg0: i32, %arg1: i32, %arg2: memref<32x128xbf16, #tpu.memory_space<vmem>>, %arg3: memref<128x128xbf16, #tpu.memory_space<vmem>>, %arg4: memref<1x128xf32, #tpu.memory_space<vmem>>, %arg5: memref<32x128xbf16, #tpu.memory_space<vmem>>) attributes {dimension_semantics = [#tpu.dimension_semantics<parallel>, #tpu.dimension_semantics<parallel>], iteration_bounds = array<i64: 1, 1>, scalar_prefetch = 0 : i64, scratch_operands = 0 : i64, tpu.core_type = #tpu.core_type<tc>, window_params = [{transform_indices = @transform_0, window_bounds = array<i64: 32, 128>}, {transform_indices = @transform_1, window_bounds = array<i64: 128, 128>}, {transform_indices = @transform_2, window_bounds = array<i64: 1, 128>}, {transform_indices = @transform_3, window_bounds = array<i64: 32, 128>}]} {
    %c0 = arith.constant 0 : index
    %c0_0 = arith.constant 0 : index
    %0 = vector.load %arg2[%c0, %c0_0] : memref<32x128xbf16, #tpu.memory_space<vmem>>, vector<32x128xbf16>
    %c0_1 = arith.constant 0 : index
    %c0_2 = arith.constant 0 : index
    %1 = vector.load %arg3[%c0_1, %c0_2] : memref<128x128xbf16, #tpu.memory_space<vmem>>, vector<128x128xbf16>
    %cst = arith.constant dense<0.000000e+00> : vector<32x128xf32>
    %2 = tpu.matmul %0, %1, %cst {dimension_numbers = #tpu.dot_dimension_numbers<[1], [0], [0], [1], [0, 0, 1, 1], [], []>} : vector<32x128xbf16>, vector<128x128xbf16>, vector<32x128xf32> -> vector<32x128xf32>
    %c0_3 = arith.constant 0 : index
    %c0_4 = arith.constant 0 : index
    %3 = vector.load %arg4[%c0_3, %c0_4] : memref<1x128xf32, #tpu.memory_space<vmem>>, vector<1x128xf32>
    %4 = vector.broadcast %3 : vector<1x128xf32> to vector<32x128xf32>
    %5 = arith.addf %2, %4 : vector<32x128xf32>
    %6 = arith.truncf %5 : vector<32x128xf32> to vector<32x128xbf16>
    %c0_5 = arith.constant 0 : index
    %c0_6 = arith.constant 0 : index
    %7 = vector.load %arg5[%c0_5, %c0_6] : memref<32x128xbf16, #tpu.memory_space<vmem>>, vector<32x128xbf16>
    tpu.vector_store %arg5[%c0_5, %c0_6], %6 {strides = array<i32>} : memref<32x128xbf16, #tpu.memory_space<vmem>>, vector<32x128xbf16>,
    return
  }
  func.func @transform_0(%arg0: i32, %arg1: i32) -> (i32, i32) {
    %c0_i32 = arith.constant 0 : i32
    %c0_i32_0 = arith.constant 0 : i32
    return %arg0, %c0_i32 : i32, i32
  }
  func.func @transform_1(%arg0: i32, %arg1: i32) -> (i32, i32) {
    %c0_i32 = arith.constant 0 : i32
    %c0_i32_0 = arith.constant 0 : i32
    return %c0_i32, %arg1 : i32, i32
  }
  func.func @transform_2(%arg0: i32, %arg1: i32) -> (i32, i32) {
    %c0_i32 = arith.constant 0 : i32
    %c0_i32_0 = arith.constant 0 : i32
    return %c0_i32, %arg1 : i32, i32
  }
  func.func @transform_3(%arg0: i32, %arg1: i32) -> (i32, i32) {
    %c0_i32 = arith.constant 0 : i32
    return %arg0, %arg1 : i32, i32
  }
}

module attributes {stable_mosaic.version = 11 : i64} {
  func.func @_mm_single_kernel(%arg0: i32, %arg1: i32, %arg2: memref<32x128xbf16, #tpu.memory_space<vmem>>, %arg3: memref<128x128xbf16, #tpu.memory_space<vmem>>, %arg4: memref<1x128xf32, #tpu.memory_space<vmem>>, %arg5: memref<32x128xbf16, #tpu.memory_space<vmem>>) attributes {dimension_semantics = [#tpu.dimension_semantics<parallel>, #tpu.dimension_semantics<parallel>], iteration_bounds = array<i64: 1, 1>, scalar_prefetch = 0 : i64, scratch_operands = 0 : i64, tpu.core_type = #tpu.core_type<tc>, window_params = [{transform_indices = @transform_0, window_bounds = array<i64: 32, 128>}, {transform_indices = @transform_1, window_bounds = array<i64: 128, 128>}, {transform_indices = @transform_2, window_bounds = array<i64: 1, 128>}, {transform_indices = @transform_3, window_bounds = array<i64: 32, 128>}]} {
    %c0 = arith.constant 0 : index
    %c0_0 = arith.constant 0 : index
    %0 = vector.load %arg2[%c0, %c0_0] : memref<32x128xbf16, #tpu.memory_space<vmem>>, vector<32x128xbf16>
    %c0_1 = arith.constant 0 : index
    %c0_2 = arith.constant 0 : index
    %1 = vector.load %arg3[%c0_1, %c0_2] : memref<128x128xbf16, #tpu.memory_space<vmem>>, vector<128x128xbf16>
    %cst = arith.constant dense<0.000000e+00> : vector<32x128xf32>
    %2 = tpu.matmul %0, %1, %cst {dimension_numbers = #tpu.dot_dimension_numbers<[1], [0], [0], [1], [0, 0, 1, 1], [], []>} : vector<32x128xbf16>, vector<128x128xbf16>, vector<32x128xf32> -> vector<32x128xf32>
    %c0_3 = arith.constant 0 : index
    %c0_4 = arith.constant 0 : index
    %3 = vector.load %arg4[%c0_3, %c0_4] : memref<1x128xf32, #tpu.memory_space<vmem>>, vector<1x128xf32>
    %4 = vector.broadcast %3 : vector<1x128xf32> to vector<32x128xf32>
    %5 = arith.addf %2, %4 : vector<32x128xf32>
    %cst_5 = arith.constant 0.000000e+00 : f32
    %6 = vector.broadcast %cst_5 : f32 to vector<32x128xf32>
    %7 = arith.maximumf %5, %6 : vector<32x128xf32>
    %8 = arith.truncf %7 : vector<32x128xf32> to vector<32x128xbf16>
    %c0_6 = arith.constant 0 : index
    %c0_7 = arith.constant 0 : index
    %9 = vector.load %arg5[%c0_6, %c0_7] : memref<32x128xbf16, #tpu.memory_space<vmem>>, vector<32x128xbf16>
    tpu.vector_store %arg5[%c0_6, %c0_7], %8 {strides = array<i32>} : memref<32x128xbf16, #tpu.memory_space<vmem>>, vector<32x128xbf16>,
    return
  }
  func.func @transform_0(%arg0: i32, %arg1: i32) -> (i32, i32) {
    %c0_i32 = arith.constant 0 : i32
    %c0_i32_0 = arith.constant 0 : i32
    return %arg0, %c0_i32 : i32, i32
  }
  func.func @transform_1(%arg0: i32, %arg1: i32) -> (i32, i32) {
    %c0_i32 = arith.constant 0 : i32
    %c0_i32_0 = arith.constant 0 : i32
    return %c0_i32, %arg1 : i32, i32
  }
  func.func @transform_2(%arg0: i32, %arg1: i32) -> (i32, i32) {
    %c0_i32 = arith.constant 0 : i32
    %c0_i32_0 = arith.constant 0 : i32
    return %c0_i32, %arg1 : i32, i32
  }
  func.func @transform_3(%arg0: i32, %arg1: i32) -> (i32, i32) {
    %c0_i32 = arith.constant 0 : i32
    return %arg0, %arg1 : i32, i32
  }
}

module attributes {stable_mosaic.version = 11 : i64} {
  func.func @_mm_single_kernel(%arg0: i32, %arg1: i32, %arg2: memref<16x128xbf16, #tpu.memory_space<vmem>>, %arg3: memref<128x128xbf16, #tpu.memory_space<vmem>>, %arg4: memref<1x128xf32, #tpu.memory_space<vmem>>, %arg5: memref<16x128xbf16, #tpu.memory_space<vmem>>) attributes {dimension_semantics = [#tpu.dimension_semantics<parallel>, #tpu.dimension_semantics<parallel>], iteration_bounds = array<i64: 1, 1>, scalar_prefetch = 0 : i64, scratch_operands = 0 : i64, tpu.core_type = #tpu.core_type<tc>, window_params = [{transform_indices = @transform_0, window_bounds = array<i64: 16, 128>}, {transform_indices = @transform_1, window_bounds = array<i64: 128, 128>}, {transform_indices = @transform_2, window_bounds = array<i64: 1, 128>}, {transform_indices = @transform_3, window_bounds = array<i64: 16, 128>}]} {
    %c0 = arith.constant 0 : index
    %c0_0 = arith.constant 0 : index
    %0 = vector.load %arg2[%c0, %c0_0] : memref<16x128xbf16, #tpu.memory_space<vmem>>, vector<16x128xbf16>
    %c0_1 = arith.constant 0 : index
    %c0_2 = arith.constant 0 : index
    %1 = vector.load %arg3[%c0_1, %c0_2] : memref<128x128xbf16, #tpu.memory_space<vmem>>, vector<128x128xbf16>
    %cst = arith.constant dense<0.000000e+00> : vector<16x128xf32>
    %2 = tpu.matmul %0, %1, %cst {dimension_numbers = #tpu.dot_dimension_numbers<[1], [0], [0], [1], [0, 0, 1, 1], [], []>} : vector<16x128xbf16>, vector<128x128xbf16>, vector<16x128xf32> -> vector<16x128xf32>
    %c0_3 = arith.constant 0 : index
    %c0_4 = arith.constant 0 : index
    %3 = vector.load %arg4[%c0_3, %c0_4] : memref<1x128xf32, #tpu.memory_space<vmem>>, vector<1x128xf32>
    %4 = vector.broadcast %3 : vector<1x128xf32> to vector<16x128xf32>
    %5 = arith.addf %2, %4 : vector<16x128xf32>
    %6 = arith.truncf %5 : vector<16x128xf32> to vector<16x128xbf16>
    %c0_5 = arith.constant 0 : index
    %c0_6 = arith.constant 0 : index
    %7 = vector.load %arg5[%c0_5, %c0_6] : memref<16x128xbf16, #tpu.memory_space<vmem>>, vector<16x128xbf16>
    tpu.vector_store %arg5[%c0_5, %c0_6], %6 {strides = array<i32>} : memref<16x128xbf16, #tpu.memory_space<vmem>>, vector<16x128xbf16>,
    return
  }
  func.func @transform_0(%arg0: i32, %arg1: i32) -> (i32, i32) {
    %c0_i32 = arith.constant 0 : i32
    %c0_i32_0 = arith.constant 0 : i32
    return %arg0, %c0_i32 : i32, i32
  }
  func.func @transform_1(%arg0: i32, %arg1: i32) -> (i32, i32) {
    %c0_i32 = arith.constant 0 : i32
    %c0_i32_0 = arith.constant 0 : i32
    return %c0_i32, %arg1 : i32, i32
  }
  func.func @transform_2(%arg0: i32, %arg1: i32) -> (i32, i32) {
    %c0_i32 = arith.constant 0 : i32
    %c0_i32_0 = arith.constant 0 : i32
    return %c0_i32, %arg1 : i32, i32
  }
  func.func @transform_3(%arg0: i32, %arg1: i32) -> (i32, i32) {
    %c0_i32 = arith.constant 0 : i32
    return %arg0, %arg1 : i32, i32
  }
}

module attributes {stable_mosaic.version = 11 : i64} {
  func.func @_mm_single_kernel(%arg0: i32, %arg1: i32, %arg2: memref<16x128xbf16, #tpu.memory_space<vmem>>, %arg3: memref<128x128xbf16, #tpu.memory_space<vmem>>, %arg4: memref<1x128xf32, #tpu.memory_space<vmem>>, %arg5: memref<16x128xbf16, #tpu.memory_space<vmem>>, %arg6: memref<16x128xbf16, #tpu.memory_space<vmem>>) attributes {dimension_semantics = [#tpu.dimension_semantics<parallel>, #tpu.dimension_semantics<parallel>], iteration_bounds = array<i64: 1, 1>, scalar_prefetch = 0 : i64, scratch_operands = 0 : i64, tpu.core_type = #tpu.core_type<tc>, window_params = [{transform_indices = @transform_0, window_bounds = array<i64: 16, 128>}, {transform_indices = @transform_1, window_bounds = array<i64: 128, 128>}, {transform_indices = @transform_2, window_bounds = array<i64: 1, 128>}, {transform_indices = @transform_3, window_bounds = array<i64: 16, 128>}, {transform_indices = @transform_4, window_bounds = array<i64: 16, 128>}]} {
    %c0 = arith.constant 0 : index
    %c0_0 = arith.constant 0 : index
    %0 = vector.load %arg2[%c0, %c0_0] : memref<16x128xbf16, #tpu.memory_space<vmem>>, vector<16x128xbf16>
    %c0_1 = arith.constant 0 : index
    %c0_2 = arith.constant 0 : index
    %1 = vector.load %arg3[%c0_1, %c0_2] : memref<128x128xbf16, #tpu.memory_space<vmem>>, vector<128x128xbf16>
    %cst = arith.constant dense<0.000000e+00> : vector<16x128xf32>
    %2 = tpu.matmul %0, %1, %cst {dimension_numbers = #tpu.dot_dimension_numbers<[1], [0], [0], [1], [0, 0, 1, 1], [], []>} : vector<16x128xbf16>, vector<128x128xbf16>, vector<16x128xf32> -> vector<16x128xf32>
    %c0_3 = arith.constant 0 : index
    %c0_4 = arith.constant 0 : index
    %3 = vector.load %arg4[%c0_3, %c0_4] : memref<1x128xf32, #tpu.memory_space<vmem>>, vector<1x128xf32>
    %4 = vector.broadcast %3 : vector<1x128xf32> to vector<16x128xf32>
    %5 = arith.addf %2, %4 : vector<16x128xf32>
    %c0_5 = arith.constant 0 : index
    %c0_6 = arith.constant 0 : index
    %6 = vector.load %arg5[%c0_5, %c0_6] : memref<16x128xbf16, #tpu.memory_space<vmem>>, vector<16x128xbf16>
    %7 = arith.extf %6 : vector<16x128xbf16> to vector<16x128xf32>
    %8 = arith.addf %5, %7 : vector<16x128xf32>
    %cst_7 = arith.constant 0.000000e+00 : f32
    %9 = vector.broadcast %cst_7 : f32 to vector<16x128xf32>
    %10 = arith.maximumf %8, %9 : vector<16x128xf32>
    %11 = arith.truncf %10 : vector<16x128xf32> to vector<16x128xbf16>
    %c0_8 = arith.constant 0 : index
    %c0_9 = arith.constant 0 : index
    %12 = vector.load %arg6[%c0_8, %c0_9] : memref<16x128xbf16, #tpu.memory_space<vmem>>, vector<16x128xbf16>
    tpu.vector_store %arg6[%c0_8, %c0_9], %11 {strides = array<i32>} : memref<16x128xbf16, #tpu.memory_space<vmem>>, vector<16x128xbf16>,
    return
  }
  func.func @transform_0(%arg0: i32, %arg1: i32) -> (i32, i32) {
    %c0_i32 = arith.constant 0 : i32
    %c0_i32_0 = arith.constant 0 : i32
    return %arg0, %c0_i32 : i32, i32
  }
  func.func @transform_1(%arg0: i32, %arg1: i32) -> (i32, i32) {
    %c0_i32 = arith.constant 0 : i32
    %c0_i32_0 = arith.constant 0 : i32
    return %c0_i32, %arg1 : i32, i32
  }
  func.func @transform_2(%arg0: i32, %arg1: i32) -> (i32, i32) {
    %c0_i32 = arith.constant 0 : i32
    %c0_i32_0 = arith.constant 0 : i32
    return %c0_i32, %arg1 : i32, i32
  }
  func.func @transform_3(%arg0: i32, %arg1: i32) -> (i32, i32) {
    %c0_i32 = arith.constant 0 : i32
    return %arg0, %arg1 : i32, i32
  }
  func.func @transform_4(%arg0: i32, %arg1: i32) -> (i32, i32) {
    %c0_i32 = arith.constant 0 : i32
    return %arg0, %arg1 : i32, i32
  }
}

module attributes {stable_mosaic.version = 11 : i64} {
  func.func @_mm_multi_kernel(%arg0: i32, %arg1: i32, %arg2: i32, %arg3: memref<16x384xbf16, #tpu.memory_space<vmem>>, %arg4: memref<384x128xbf16, #tpu.memory_space<vmem>>, %arg5: memref<1x128xf32, #tpu.memory_space<vmem>>, %arg6: memref<16x128xbf16, #tpu.memory_space<vmem>>, %arg7: memref<16x128xf32, #tpu.memory_space<vmem>>) attributes {dimension_semantics = [#tpu.dimension_semantics<parallel>, #tpu.dimension_semantics<parallel>, #tpu.dimension_semantics<arbitrary>], iteration_bounds = array<i64: 1, 1, 3>, scalar_prefetch = 0 : i64, scratch_operands = 1 : i64, tpu.core_type = #tpu.core_type<tc>, window_params = [{transform_indices = @transform_0, window_bounds = array<i64: 16, 384>}, {transform_indices = @transform_1, window_bounds = array<i64: 384, 128>}, {transform_indices = @transform_2, window_bounds = array<i64: 1, 128>}, {transform_indices = @transform_3, window_bounds = array<i64: 16, 128>}]} {
    %c0 = arith.constant 0 : index
    %c0_0 = arith.constant 0 : index
    %0 = vector.load %arg3[%c0, %c0_0] : memref<16x384xbf16, #tpu.memory_space<vmem>>, vector<16x384xbf16>
    %c0_1 = arith.constant 0 : index
    %c0_2 = arith.constant 0 : index
    %1 = vector.load %arg4[%c0_1, %c0_2] : memref<384x128xbf16, #tpu.memory_space<vmem>>, vector<384x128xbf16>
    %cst = arith.constant dense<0.000000e+00> : vector<16x128xf32>
    %2 = tpu.matmul %0, %1, %cst {dimension_numbers = #tpu.dot_dimension_numbers<[1], [0], [0], [1], [0, 0, 1, 1], [], []>} : vector<16x384xbf16>, vector<384x128xbf16>, vector<16x128xf32> -> vector<16x128xf32>
    %c0_i32 = arith.constant 0 : i32
    %3 = arith.cmpi eq, %arg2, %c0_i32 : i32
    %4 = arith.extui %3 : i1 to i32
    %c0_i32_3 = arith.constant 0 : i32
    %5 = arith.cmpi ne, %4, %c0_i32_3 : i32
    scf.if %5 {
      %c0_7 = arith.constant 0 : index
      %c0_8 = arith.constant 0 : index
      %12 = vector.load %arg7[%c0_7, %c0_8] : memref<16x128xf32, #tpu.memory_space<vmem>>, vector<16x128xf32>
      tpu.vector_store %arg7[%c0_7, %c0_8], %2 {strides = array<i32>} : memref<16x128xf32, #tpu.memory_space<vmem>>, vector<16x128xf32>,
    } else {
    }
    %c0_i32_4 = arith.constant 0 : i32
    %6 = arith.cmpi sgt, %arg2, %c0_i32_4 : i32
    %7 = arith.extui %6 : i1 to i32
    %c0_i32_5 = arith.constant 0 : i32
    %8 = arith.cmpi ne, %7, %c0_i32_5 : i32
    scf.if %8 {
      %c0_7 = arith.constant 0 : index
      %c0_8 = arith.constant 0 : index
      %12 = vector.load %arg7[%c0_7, %c0_8] : memref<16x128xf32, #tpu.memory_space<vmem>>, vector<16x128xf32>
      %13 = arith.addf %12, %2 : vector<16x128xf32>
      %c0_9 = arith.constant 0 : index
      %c0_10 = arith.constant 0 : index
      %14 = vector.load %arg7[%c0_9, %c0_10] : memref<16x128xf32, #tpu.memory_space<vmem>>, vector<16x128xf32>
      tpu.vector_store %arg7[%c0_9, %c0_10], %13 {strides = array<i32>} : memref<16x128xf32, #tpu.memory_space<vmem>>, vector<16x128xf32>,
    } else {
    }
    %c2_i32 = arith.constant 2 : i32
    %9 = arith.cmpi eq, %arg2, %c2_i32 : i32
    %10 = arith.extui %9 : i1 to i32
    %c0_i32_6 = arith.constant 0 : i32
    %11 = arith.cmpi ne, %10, %c0_i32_6 : i32
    scf.if %11 {
      %c0_7 = arith.constant 0 : index
      %c0_8 = arith.constant 0 : index
      %12 = vector.load %arg7[%c0_7, %c0_8] : memref<16x128xf32, #tpu.memory_space<vmem>>, vector<16x128xf32>
      %c0_9 = arith.constant 0 : index
      %c0_10 = arith.constant 0 : index
      %13 = vector.load %arg5[%c0_9, %c0_10] : memref<1x128xf32, #tpu.memory_space<vmem>>, vector<1x128xf32>
      %14 = vector.broadcast %13 : vector<1x128xf32> to vector<16x128xf32>
      %15 = arith.addf %12, %14 : vector<16x128xf32>
      %cst_11 = arith.constant 0.000000e+00 : f32
      %16 = vector.broadcast %cst_11 : f32 to vector<16x128xf32>
      %17 = arith.maximumf %15, %16 : vector<16x128xf32>
      %18 = arith.truncf %17 : vector<16x128xf32> to vector<16x128xbf16>
      %c0_12 = arith.constant 0 : index
      %c0_13 = arith.constant 0 : index
      %19 = vector.load %arg6[%c0_12, %c0_13] : memref<16x128xbf16, #tpu.memory_space<vmem>>, vector<16x128xbf16>
      tpu.vector_store %arg6[%c0_12, %c0_13], %18 {strides = array<i32>} : memref<16x128xbf16, #tpu.memory_space<vmem>>, vector<16x128xbf16>,
    } else {
    }
    return
  }
  func.func @transform_0(%arg0: i32, %arg1: i32, %arg2: i32) -> (i32, i32) {
    %c0_i32 = arith.constant 0 : i32
    return %arg0, %arg2 : i32, i32
  }
  func.func @transform_1(%arg0: i32, %arg1: i32, %arg2: i32) -> (i32, i32) {
    %c0_i32 = arith.constant 0 : i32
    return %arg2, %arg1 : i32, i32
  }
  func.func @transform_2(%arg0: i32, %arg1: i32, %arg2: i32) -> (i32, i32) {
    %c0_i32 = arith.constant 0 : i32
    %c0_i32_0 = arith.constant 0 : i32
    return %c0_i32, %arg1 : i32, i32
  }
  func.func @transform_3(%arg0: i32, %arg1: i32, %arg2: i32) -> (i32, i32) {
    %c0_i32 = arith.constant 0 : i32
    return %arg0, %arg1 : i32, i32
  }
}

module attributes {stable_mosaic.version = 11 : i64} {
  func.func @_mm_single_kernel(%arg0: i32, %arg1: i32, %arg2: memref<16x128xbf16, #tpu.memory_space<vmem>>, %arg3: memref<128x128xbf16, #tpu.memory_space<vmem>>, %arg4: memref<1x128xf32, #tpu.memory_space<vmem>>, %arg5: memref<16x128xbf16, #tpu.memory_space<vmem>>) attributes {dimension_semantics = [#tpu.dimension_semantics<parallel>, #tpu.dimension_semantics<parallel>], iteration_bounds = array<i64: 1, 1>, scalar_prefetch = 0 : i64, scratch_operands = 0 : i64, tpu.core_type = #tpu.core_type<tc>, window_params = [{transform_indices = @transform_0, window_bounds = array<i64: 16, 128>}, {transform_indices = @transform_1, window_bounds = array<i64: 128, 128>}, {transform_indices = @transform_2, window_bounds = array<i64: 1, 128>}, {transform_indices = @transform_3, window_bounds = array<i64: 16, 128>}]} {
    %c0 = arith.constant 0 : index
    %c0_0 = arith.constant 0 : index
    %0 = vector.load %arg2[%c0, %c0_0] : memref<16x128xbf16, #tpu.memory_space<vmem>>, vector<16x128xbf16>
    %c0_1 = arith.constant 0 : index
    %c0_2 = arith.constant 0 : index
    %1 = vector.load %arg3[%c0_1, %c0_2] : memref<128x128xbf16, #tpu.memory_space<vmem>>, vector<128x128xbf16>
    %cst = arith.constant dense<0.000000e+00> : vector<16x128xf32>
    %2 = tpu.matmul %0, %1, %cst {dimension_numbers = #tpu.dot_dimension_numbers<[1], [0], [0], [1], [0, 0, 1, 1], [], []>} : vector<16x128xbf16>, vector<128x128xbf16>, vector<16x128xf32> -> vector<16x128xf32>
    %c0_3 = arith.constant 0 : index
    %c0_4 = arith.constant 0 : index
    %3 = vector.load %arg4[%c0_3, %c0_4] : memref<1x128xf32, #tpu.memory_space<vmem>>, vector<1x128xf32>
    %4 = vector.broadcast %3 : vector<1x128xf32> to vector<16x128xf32>
    %5 = arith.addf %2, %4 : vector<16x128xf32>
    %cst_5 = arith.constant 0.000000e+00 : f32
    %6 = vector.broadcast %cst_5 : f32 to vector<16x128xf32>
    %7 = arith.maximumf %5, %6 : vector<16x128xf32>
    %8 = arith.truncf %7 : vector<16x128xf32> to vector<16x128xbf16>
    %c0_6 = arith.constant 0 : index
    %c0_7 = arith.constant 0 : index
    %9 = vector.load %arg5[%c0_6, %c0_7] : memref<16x128xbf16, #tpu.memory_space<vmem>>, vector<16x128xbf16>
    tpu.vector_store %arg5[%c0_6, %c0_7], %8 {strides = array<i32>} : memref<16x128xbf16, #tpu.memory_space<vmem>>, vector<16x128xbf16>,
    return
  }
  func.func @transform_0(%arg0: i32, %arg1: i32) -> (i32, i32) {
    %c0_i32 = arith.constant 0 : i32
    %c0_i32_0 = arith.constant 0 : i32
    return %arg0, %c0_i32 : i32, i32
  }
  func.func @transform_1(%arg0: i32, %arg1: i32) -> (i32, i32) {
    %c0_i32 = arith.constant 0 : i32
    %c0_i32_0 = arith.constant 0 : i32
    return %c0_i32, %arg1 : i32, i32
  }
  func.func @transform_2(%arg0: i32, %arg1: i32) -> (i32, i32) {
    %c0_i32 = arith.constant 0 : i32
    %c0_i32_0 = arith.constant 0 : i32
    return %c0_i32, %arg1 : i32, i32
  }
  func.func @transform_3(%arg0: i32, %arg1: i32) -> (i32, i32) {
    %c0_i32 = arith.constant 0 : i32
    return %arg0, %arg1 : i32, i32
  }
}

module attributes {stable_mosaic.version = 11 : i64} {
  func.func @_mm_single_kernel(%arg0: i32, %arg1: i32, %arg2: memref<16x128xbf16, #tpu.memory_space<vmem>>, %arg3: memref<128x128xbf16, #tpu.memory_space<vmem>>, %arg4: memref<1x128xf32, #tpu.memory_space<vmem>>, %arg5: memref<16x128xbf16, #tpu.memory_space<vmem>>, %arg6: memref<16x128xbf16, #tpu.memory_space<vmem>>) attributes {dimension_semantics = [#tpu.dimension_semantics<parallel>, #tpu.dimension_semantics<parallel>], iteration_bounds = array<i64: 1, 1>, scalar_prefetch = 0 : i64, scratch_operands = 0 : i64, tpu.core_type = #tpu.core_type<tc>, window_params = [{transform_indices = @transform_0, window_bounds = array<i64: 16, 128>}, {transform_indices = @transform_1, window_bounds = array<i64: 128, 128>}, {transform_indices = @transform_2, window_bounds = array<i64: 1, 128>}, {transform_indices = @transform_3, window_bounds = array<i64: 16, 128>}, {transform_indices = @transform_4, window_bounds = array<i64: 16, 128>}]} {
    %c0 = arith.constant 0 : index
    %c0_0 = arith.constant 0 : index
    %0 = vector.load %arg2[%c0, %c0_0] : memref<16x128xbf16, #tpu.memory_space<vmem>>, vector<16x128xbf16>
    %c0_1 = arith.constant 0 : index
    %c0_2 = arith.constant 0 : index
    %1 = vector.load %arg3[%c0_1, %c0_2] : memref<128x128xbf16, #tpu.memory_space<vmem>>, vector<128x128xbf16>
    %cst = arith.constant dense<0.000000e+00> : vector<16x128xf32>
    %2 = tpu.matmul %0, %1, %cst {dimension_numbers = #tpu.dot_dimension_numbers<[1], [0], [0], [1], [0, 0, 1, 1], [], []>} : vector<16x128xbf16>, vector<128x128xbf16>, vector<16x128xf32> -> vector<16x128xf32>
    %c0_3 = arith.constant 0 : index
    %c0_4 = arith.constant 0 : index
    %3 = vector.load %arg4[%c0_3, %c0_4] : memref<1x128xf32, #tpu.memory_space<vmem>>, vector<1x128xf32>
    %4 = vector.broadcast %3 : vector<1x128xf32> to vector<16x128xf32>
    %5 = arith.addf %2, %4 : vector<16x128xf32>
    %c0_5 = arith.constant 0 : index
    %c0_6 = arith.constant 0 : index
    %6 = vector.load %arg5[%c0_5, %c0_6] : memref<16x128xbf16, #tpu.memory_space<vmem>>, vector<16x128xbf16>
    %7 = arith.extf %6 : vector<16x128xbf16> to vector<16x128xf32>
    %8 = arith.addf %5, %7 : vector<16x128xf32>
    %cst_7 = arith.constant 0.000000e+00 : f32
    %9 = vector.broadcast %cst_7 : f32 to vector<16x128xf32>
    %10 = arith.maximumf %8, %9 : vector<16x128xf32>
    %11 = arith.truncf %10 : vector<16x128xf32> to vector<16x128xbf16>
    %c0_8 = arith.constant 0 : index
    %c0_9 = arith.constant 0 : index
    %12 = vector.load %arg6[%c0_8, %c0_9] : memref<16x128xbf16, #tpu.memory_space<vmem>>, vector<16x128xbf16>
    tpu.vector_store %arg6[%c0_8, %c0_9], %11 {strides = array<i32>} : memref<16x128xbf16, #tpu.memory_space<vmem>>, vector<16x128xbf16>,
    return
  }
  func.func @transform_0(%arg0: i32, %arg1: i32) -> (i32, i32) {
    %c0_i32 = arith.constant 0 : i32
    %c0_i32_0 = arith.constant 0 : i32
    return %arg0, %c0_i32 : i32, i32
  }
  func.func @transform_1(%arg0: i32, %arg1: i32) -> (i32, i32) {
    %c0_i32 = arith.constant 0 : i32
    %c0_i32_0 = arith.constant 0 : i32
    return %c0_i32, %arg1 : i32, i32
  }
  func.func @transform_2(%arg0: i32, %arg1: i32) -> (i32, i32) {
    %c0_i32 = arith.constant 0 : i32
    %c0_i32_0 = arith.constant 0 : i32
    return %c0_i32, %arg1 : i32, i32
  }
  func.func @transform_3(%arg0: i32, %arg1: i32) -> (i32, i32) {
    %c0_i32 = arith.constant 0 : i32
    return %arg0, %arg1 : i32, i32
  }
  func.func @transform_4(%arg0: i32, %arg1: i32) -> (i32, i32) {
    %c0_i32 = arith.constant 0 : i32
    return %arg0, %arg1 : i32, i32
  }
}

module attributes {stable_mosaic.version = 11 : i64} {
  func.func @_mm_single_kernel(%arg0: i32, %arg1: i32, %arg2: memref<16x128xbf16, #tpu.memory_space<vmem>>, %arg3: memref<128x256xbf16, #tpu.memory_space<vmem>>, %arg4: memref<1x256xf32, #tpu.memory_space<vmem>>, %arg5: memref<16x256xbf16, #tpu.memory_space<vmem>>) attributes {dimension_semantics = [#tpu.dimension_semantics<parallel>, #tpu.dimension_semantics<parallel>], iteration_bounds = array<i64: 1, 1>, scalar_prefetch = 0 : i64, scratch_operands = 0 : i64, tpu.core_type = #tpu.core_type<tc>, window_params = [{transform_indices = @transform_0, window_bounds = array<i64: 16, 128>}, {transform_indices = @transform_1, window_bounds = array<i64: 128, 256>}, {transform_indices = @transform_2, window_bounds = array<i64: 1, 256>}, {transform_indices = @transform_3, window_bounds = array<i64: 16, 256>}]} {
    %c0 = arith.constant 0 : index
    %c0_0 = arith.constant 0 : index
    %0 = vector.load %arg2[%c0, %c0_0] : memref<16x128xbf16, #tpu.memory_space<vmem>>, vector<16x128xbf16>
    %c0_1 = arith.constant 0 : index
    %c0_2 = arith.constant 0 : index
    %1 = vector.load %arg3[%c0_1, %c0_2] : memref<128x256xbf16, #tpu.memory_space<vmem>>, vector<128x256xbf16>
    %cst = arith.constant dense<0.000000e+00> : vector<16x256xf32>
    %2 = tpu.matmul %0, %1, %cst {dimension_numbers = #tpu.dot_dimension_numbers<[1], [0], [0], [1], [0, 0, 1, 1], [], []>} : vector<16x128xbf16>, vector<128x256xbf16>, vector<16x256xf32> -> vector<16x256xf32>
    %c0_3 = arith.constant 0 : index
    %c0_4 = arith.constant 0 : index
    %3 = vector.load %arg4[%c0_3, %c0_4] : memref<1x256xf32, #tpu.memory_space<vmem>>, vector<1x256xf32>
    %4 = vector.broadcast %3 : vector<1x256xf32> to vector<16x256xf32>
    %5 = arith.addf %2, %4 : vector<16x256xf32>
    %6 = arith.truncf %5 : vector<16x256xf32> to vector<16x256xbf16>
    %c0_5 = arith.constant 0 : index
    %c0_6 = arith.constant 0 : index
    %7 = vector.load %arg5[%c0_5, %c0_6] : memref<16x256xbf16, #tpu.memory_space<vmem>>, vector<16x256xbf16>
    tpu.vector_store %arg5[%c0_5, %c0_6], %6 {strides = array<i32>} : memref<16x256xbf16, #tpu.memory_space<vmem>>, vector<16x256xbf16>,
    return
  }
  func.func @transform_0(%arg0: i32, %arg1: i32) -> (i32, i32) {
    %c0_i32 = arith.constant 0 : i32
    %c0_i32_0 = arith.constant 0 : i32
    return %arg0, %c0_i32 : i32, i32
  }
  func.func @transform_1(%arg0: i32, %arg1: i32) -> (i32, i32) {
    %c0_i32 = arith.constant 0 : i32
    %c0_i32_0 = arith.constant 0 : i32
    return %c0_i32, %arg1 : i32, i32
  }
  func.func @transform_2(%arg0: i32, %arg1: i32) -> (i32, i32) {
    %c0_i32 = arith.constant 0 : i32
    %c0_i32_0 = arith.constant 0 : i32
    return %c0_i32, %arg1 : i32, i32
  }
  func.func @transform_3(%arg0: i32, %arg1: i32) -> (i32, i32) {
    %c0_i32 = arith.constant 0 : i32
    return %arg0, %arg1 : i32, i32
  }
}

module attributes {stable_mosaic.version = 11 : i64} {
  func.func @_mm_single_kernel(%arg0: i32, %arg1: i32, %arg2: memref<16x128xbf16, #tpu.memory_space<vmem>>, %arg3: memref<128x256xbf16, #tpu.memory_space<vmem>>, %arg4: memref<1x256xf32, #tpu.memory_space<vmem>>, %arg5: memref<16x256xbf16, #tpu.memory_space<vmem>>, %arg6: memref<16x256xbf16, #tpu.memory_space<vmem>>) attributes {dimension_semantics = [#tpu.dimension_semantics<parallel>, #tpu.dimension_semantics<parallel>], iteration_bounds = array<i64: 1, 1>, scalar_prefetch = 0 : i64, scratch_operands = 0 : i64, tpu.core_type = #tpu.core_type<tc>, window_params = [{transform_indices = @transform_0, window_bounds = array<i64: 16, 128>}, {transform_indices = @transform_1, window_bounds = array<i64: 128, 256>}, {transform_indices = @transform_2, window_bounds = array<i64: 1, 256>}, {transform_indices = @transform_3, window_bounds = array<i64: 16, 256>}, {transform_indices = @transform_4, window_bounds = array<i64: 16, 256>}]} {
    %c0 = arith.constant 0 : index
    %c0_0 = arith.constant 0 : index
    %0 = vector.load %arg2[%c0, %c0_0] : memref<16x128xbf16, #tpu.memory_space<vmem>>, vector<16x128xbf16>
    %c0_1 = arith.constant 0 : index
    %c0_2 = arith.constant 0 : index
    %1 = vector.load %arg3[%c0_1, %c0_2] : memref<128x256xbf16, #tpu.memory_space<vmem>>, vector<128x256xbf16>
    %cst = arith.constant dense<0.000000e+00> : vector<16x256xf32>
    %2 = tpu.matmul %0, %1, %cst {dimension_numbers = #tpu.dot_dimension_numbers<[1], [0], [0], [1], [0, 0, 1, 1], [], []>} : vector<16x128xbf16>, vector<128x256xbf16>, vector<16x256xf32> -> vector<16x256xf32>
    %c0_3 = arith.constant 0 : index
    %c0_4 = arith.constant 0 : index
    %3 = vector.load %arg4[%c0_3, %c0_4] : memref<1x256xf32, #tpu.memory_space<vmem>>, vector<1x256xf32>
    %4 = vector.broadcast %3 : vector<1x256xf32> to vector<16x256xf32>
    %5 = arith.addf %2, %4 : vector<16x256xf32>
    %c0_5 = arith.constant 0 : index
    %c0_6 = arith.constant 0 : index
    %6 = vector.load %arg5[%c0_5, %c0_6] : memref<16x256xbf16, #tpu.memory_space<vmem>>, vector<16x256xbf16>
    %7 = arith.extf %6 : vector<16x256xbf16> to vector<16x256xf32>
    %8 = arith.addf %5, %7 : vector<16x256xf32>
    %cst_7 = arith.constant 0.000000e+00 : f32
    %9 = vector.broadcast %cst_7 : f32 to vector<16x256xf32>
    %10 = arith.maximumf %8, %9 : vector<16x256xf32>
    %11 = arith.truncf %10 : vector<16x256xf32> to vector<16x256xbf16>
    %c0_8 = arith.constant 0 : index
    %c0_9 = arith.constant 0 : index
    %12 = vector.load %arg6[%c0_8, %c0_9] : memref<16x256xbf16, #tpu.memory_space<vmem>>, vector<16x256xbf16>
    tpu.vector_store %arg6[%c0_8, %c0_9], %11 {strides = array<i32>} : memref<16x256xbf16, #tpu.memory_space<vmem>>, vector<16x256xbf16>,
    return
  }
  func.func @transform_0(%arg0: i32, %arg1: i32) -> (i32, i32) {
    %c0_i32 = arith.constant 0 : i32
    %c0_i32_0 = arith.constant 0 : i32
    return %arg0, %c0_i32 : i32, i32
  }
  func.func @transform_1(%arg0: i32, %arg1: i32) -> (i32, i32) {
    %c0_i32 = arith.constant 0 : i32
    %c0_i32_0 = arith.constant 0 : i32
    return %c0_i32, %arg1 : i32, i32
  }
  func.func @transform_2(%arg0: i32, %arg1: i32) -> (i32, i32) {
    %c0_i32 = arith.constant 0 : i32
    %c0_i32_0 = arith.constant 0 : i32
    return %c0_i32, %arg1 : i32, i32
  }
  func.func @transform_3(%arg0: i32, %arg1: i32) -> (i32, i32) {
    %c0_i32 = arith.constant 0 : i32
    return %arg0, %arg1 : i32, i32
  }
  func.func @transform_4(%arg0: i32, %arg1: i32) -> (i32, i32) {
    %c0_i32 = arith.constant 0 : i32
    return %arg0, %arg1 : i32, i32
  }
}

module attributes {stable_mosaic.version = 11 : i64} {
  func.func @_mm_single_kernel(%arg0: i32, %arg1: i32, %arg2: memref<16x256xbf16, #tpu.memory_space<vmem>>, %arg3: memref<256x128xbf16, #tpu.memory_space<vmem>>, %arg4: memref<1x128xf32, #tpu.memory_space<vmem>>, %arg5: memref<16x128xbf16, #tpu.memory_space<vmem>>) attributes {dimension_semantics = [#tpu.dimension_semantics<parallel>, #tpu.dimension_semantics<parallel>], iteration_bounds = array<i64: 1, 1>, scalar_prefetch = 0 : i64, scratch_operands = 0 : i64, tpu.core_type = #tpu.core_type<tc>, window_params = [{transform_indices = @transform_0, window_bounds = array<i64: 16, 256>}, {transform_indices = @transform_1, window_bounds = array<i64: 256, 128>}, {transform_indices = @transform_2, window_bounds = array<i64: 1, 128>}, {transform_indices = @transform_3, window_bounds = array<i64: 16, 128>}]} {
    %c0 = arith.constant 0 : index
    %c0_0 = arith.constant 0 : index
    %0 = vector.load %arg2[%c0, %c0_0] : memref<16x256xbf16, #tpu.memory_space<vmem>>, vector<16x256xbf16>
    %c0_1 = arith.constant 0 : index
    %c0_2 = arith.constant 0 : index
    %1 = vector.load %arg3[%c0_1, %c0_2] : memref<256x128xbf16, #tpu.memory_space<vmem>>, vector<256x128xbf16>
    %cst = arith.constant dense<0.000000e+00> : vector<16x128xf32>
    %2 = tpu.matmul %0, %1, %cst {dimension_numbers = #tpu.dot_dimension_numbers<[1], [0], [0], [1], [0, 0, 1, 1], [], []>} : vector<16x256xbf16>, vector<256x128xbf16>, vector<16x128xf32> -> vector<16x128xf32>
    %c0_3 = arith.constant 0 : index
    %c0_4 = arith.constant 0 : index
    %3 = vector.load %arg4[%c0_3, %c0_4] : memref<1x128xf32, #tpu.memory_space<vmem>>, vector<1x128xf32>
    %4 = vector.broadcast %3 : vector<1x128xf32> to vector<16x128xf32>
    %5 = arith.addf %2, %4 : vector<16x128xf32>
    %cst_5 = arith.constant 0.000000e+00 : f32
    %6 = vector.broadcast %cst_5 : f32 to vector<16x128xf32>
    %7 = arith.maximumf %5, %6 : vector<16x128xf32>
    %8 = arith.truncf %7 : vector<16x128xf32> to vector<16x128xbf16>
    %c0_6 = arith.constant 0 : index
    %c0_7 = arith.constant 0 : index
    %9 = vector.load %arg5[%c0_6, %c0_7] : memref<16x128xbf16, #tpu.memory_space<vmem>>, vector<16x128xbf16>
    tpu.vector_store %arg5[%c0_6, %c0_7], %8 {strides = array<i32>} : memref<16x128xbf16, #tpu.memory_space<vmem>>, vector<16x128xbf16>,
    return
  }
  func.func @transform_0(%arg0: i32, %arg1: i32) -> (i32, i32) {
    %c0_i32 = arith.constant 0 : i32
    %c0_i32_0 = arith.constant 0 : i32
    return %arg0, %c0_i32 : i32, i32
  }
  func.func @transform_1(%arg0: i32, %arg1: i32) -> (i32, i32) {
    %c0_i32 = arith.constant 0 : i32
    %c0_i32_0 = arith.constant 0 : i32
    return %c0_i32, %arg1 : i32, i32
  }
  func.func @transform_2(%arg0: i32, %arg1: i32) -> (i32, i32) {
    %c0_i32 = arith.constant 0 : i32
    %c0_i32_0 = arith.constant 0 : i32
    return %c0_i32, %arg1 : i32, i32
  }
  func.func @transform_3(%arg0: i32, %arg1: i32) -> (i32, i32) {
    %c0_i32 = arith.constant 0 : i32
    return %arg0, %arg1 : i32, i32
  }
}

</mosaic_0001>

<bundles_post_ra>
// kernel: _lambda_.53
= control target key start
LH: loop header
LB: loop body
LE: loop exit
PB: predicated region body
PF: predicated region fallthrough
CT: control target
= control target key end

     0   :  { %vm544_vm0 = vcmask 1040384   ;;  %vm545_vm1 = vcmask 1041408   ;;  %v1685_v2 = vmov 65535   ;;  %vm447_vm2 = vcmask 154624   ;;  %s2374_s1 = inlined_call_operand.vmem [shape: bf16[147,128], index: 1, kind: input, shape index: {}]   ;;  %s2375_s0 = inlined_call_operand.vmem [shape: bf16[512,147], index: 0, kind: input, shape index: {}]   ;;  %s2376_s2 = inlined_call_operand.vmem [shape: f32[1,128], index: 2, kind: input, shape index: {}]   ;;  %s2377_s3 = inlined_call_operand.vmem [shape: bf16[512,128], index: 3, kind: output, shape index: {}]  }
   0x1   :  { %v1480_v0 = vld [vmem:[%s2374_s1 + $0x38] sm:$0xff]  ;;  %v97_v1 = vld [vmem:[%s2374_s1 + $0x48] sm:$0x3]  ;;  %v546_v3 = vsel %vm544_vm0, 4294967295, %v1685_v2  ;;  %v1479_v5 = vld [vmem:[%s2374_s1 + $0x30] sm:$0xff] }
   0x2   :  { %v427_v4 = vunpack.c.l.b16 %v97_v1  ;;  %551 = vmatpush.bf16.msra.mxu0 %v1480_v0  ;;  %1673 = vmatpush.bf16.msra.mxu2 %v1480_v0  ;;  %v547_v6 = vsel %vm545_vm1, %v546_v3, 0  ;;  %v1478_v9 = vld [vmem:[%s2374_s1 + $0x28] sm:$0xff]  ;;  %v1481_v10 = vld [vmem:[%s2374_s1 + $0x40] sm:$0xff]  ;;  %v1443_v13 = vld [vmem:[%s2375_s0 + $0x114] sm:$0xf] }
   0x3   :  { %v1409_v11 = vld [vmem:[%s2375_s0 + $0x4] sm:$0xf]  ;;  %v1089_v12 = vld [vmem:[%s2375_s0 + $0x8] sm:$0xf0]  ;;  %v1225_v14 = vld [vmem:[%s2375_s0 + $0x118] sm:$0xf0] }
   0x4   :  { %v437_v7 = vpack.c.b16 %v427_v4, %v427_v4  ;;  %v1092_v15 = vor.u32 %v1409_v11, %v1089_v12  ;;  %v1477_v16 = vld [vmem:[%s2374_s1 + $0x20] sm:$0xff]  ;;  %v1228_v17 = vor.u32 %v1443_v13, %v1225_v14  ;;  %v1476_v18 = vld [vmem:[%s2374_s1 + $0x18] sm:$0xff]  ;;  %v1475_v19 = vld [vmem:[%s2374_s1 + $0x10] sm:$0xff] }
   0x5   :  { %v1474_v20 = vld [vmem:[%s2374_s1 + $0x8] sm:$0xff]  ;;  %v1411_v21 = vld [vmem:[%s2375_s0 + $0x14] sm:$0xf]  ;;  %v1097_v22 = vld [vmem:[%s2375_s0 + $0x18] sm:$0xf0] }
   0x6   :  { %v549_v8 = vand.u32 %v547_v6, %v437_v7  ;;  %552 = vmatpush.bf16.msra.mxu0 %v1479_v5  ;;  %1674 = vmatpush.bf16.msra.mxu2 %v1479_v5  ;;  %v1445_v23 = vld [vmem:[%s2375_s0 + $0x124] sm:$0xf]  ;;  %v1233_v24 = vld [vmem:[%s2375_s0 + $0x128] sm:$0xf0]  ;;  %v1100_v25 = vor.u32 %v1411_v21, %v1097_v22  ;;  %v1087_v27 = vld [vmem:[%s2375_s0] sm:$0xf] }
   0x7   :  { %v1473_v26 = vld [vmem:[%s2374_s1] sm:$0xff]  ;;  %v1410_v28 = vld [vmem:[%s2375_s0 + $0x4] sm:$0xf0]  ;;  %v1236_v31 = vor.u32 %v1445_v23, %v1233_v24  ;;  %v1105_v35 = vld [vmem:[%s2375_s0 + $0x28] sm:$0xf0] }
   0x8   :  { %726 = vmatpush.bf16.msra.mxu1 %v549_v8  ;;  %1681 = vmatpush.bf16.msra.mxu3 %v549_v8  ;;  %v1215_v29 = vld [vmem:[%s2375_s0 + $0x100] sm:$0xf]  ;;  %v1442_v30 = vld [vmem:[%s2375_s0 + $0x104] sm:$0xf0]  ;;  %v1088_v32 = vor.u32 %v1410_v28, %v1087_v27  ;;  %v1413_v34 = vld [vmem:[%s2375_s0 + $0x24] sm:$0xf] }
   0x9   :  { %v1216_v33 = vor.u32 %v1442_v30, %v1215_v29  ;;  %v1447_v36 = vld [vmem:[%s2375_s0 + $0x134] sm:$0xf]  ;;  %v1241_v37 = vld [vmem:[%s2375_s0 + $0x138] sm:$0xf0]  ;;  %v1108_v38 = vor.u32 %v1413_v34, %v1105_v35  ;;  %v1095_v39 = vld [vmem:[%s2375_s0 + $0x10] sm:$0xf] }
   0xa   :  { %553 = vmatpush.bf16.msra.mxu0 %v1478_v9  ;;  %1675 = vmatpush.bf16.msra.mxu2 %v1478_v9  ;;  %v1412_v40 = vld [vmem:[%s2375_s0 + $0x14] sm:$0xf0]  ;;  %v1223_v41 = vld [vmem:[%s2375_s0 + $0x110] sm:$0xf]  ;;  %v1244_v43 = vor.u32 %v1447_v36, %v1241_v37  ;;  %v1415_v46 = vld [vmem:[%s2375_s0 + $0x34] sm:$0xf] }
   0xb   :  { %v1444_v42 = vld [vmem:[%s2375_s0 + $0x114] sm:$0xf0]  ;;  %v1096_v44 = vor.u32 %v1412_v40, %v1095_v39  ;;  %v1113_v47 = vld [vmem:[%s2375_s0 + $0x38] sm:$0xf0]  ;;  %v1449_v48 = vld [vmem:[%s2375_s0 + $0x144] sm:$0xf] }
   0xc   :  { %727 = vmatpush.bf16.msra.mxu1 %v1481_v10  ;;  %1682 = vmatpush.bf16.msra.mxu3 %v1481_v10  ;;  %v1224_v45 = vor.u32 %v1444_v42, %v1223_v41  ;;  %v1249_v49 = vld [vmem:[%s2375_s0 + $0x148] sm:$0xf0]  ;;  %v1116_v50 = vor.u32 %v1415_v46, %v1113_v47  ;;  %v1103_v51 = vld [vmem:[%s2375_s0 + $0x20] sm:$0xf]  ;;  %v1414_v52 = vld [vmem:[%s2375_s0 + $0x24] sm:$0xf0] }
   0xd   :  { %v1231_v53 = vld [vmem:[%s2375_s0 + $0x120] sm:$0xf]  ;;  %v1446_v54 = vld [vmem:[%s2375_s0 + $0x124] sm:$0xf0]  ;;  %v1252_v55 = vor.u32 %v1449_v48, %v1249_v49  ;;  %v1104_v56 = vor.u32 %v1414_v52, %v1103_v51  ;;  %v1417_v58 = vld [vmem:[%s2375_s0 + $0x44] sm:$0xf] }
   0xe   :  { %554 = vmatpush.bf16.msra.mxu0 %v1477_v16  ;;  %1676 = vmatpush.bf16.msra.mxu2 %v1477_v16  ;;  %v1232_v57 = vor.u32 %v1446_v54, %v1231_v53  ;;  %v1121_v59 = vld [vmem:[%s2375_s0 + $0x48] sm:$0xf0]  ;;  %v1451_v60 = vld [vmem:[%s2375_s0 + $0x154] sm:$0xf]  ;;  %v1257_v61 = vld [vmem:[%s2375_s0 + $0x158] sm:$0xf0] }
   0xf   :  { %1377 = vmatmul.msk.bf16.vlgmr.msra.gmra.mxu1 %vm447_vm2, %v1092_v15  ;;  %1394 = vmatmul.msk.bf16.vlgmr.msra.gmra.mxu3 %vm447_vm2, %v1228_v17  ;;  %v1124_v62 = vor.u32 %v1417_v58, %v1121_v59  ;;  %v1111_v63 = vld [vmem:[%s2375_s0 + $0x30] sm:$0xf]  ;;  %v1416_v0 = vld [vmem:[%s2375_s0 + $0x34] sm:$0xf0]  ;;  %v1260_v3 = vor.u32 %v1451_v60, %v1257_v61  ;;  %v1419_v6 = vld [vmem:[%s2375_s0 + $0x54] sm:$0xf] }
  0x10   :  { %v1239_v1 = vld [vmem:[%s2375_s0 + $0x130] sm:$0xf]  ;;  %v1448_v2 = vld [vmem:[%s2375_s0 + $0x134] sm:$0xf0]  ;;  %v1112_v4 = vor.u32 %v1416_v0, %v1111_v63  ;;  %v1129_v7 = vld [vmem:[%s2375_s0 + $0x58] sm:$0xf0] }
  0x11   :  { %v1240_v5 = vor.u32 %v1448_v2, %v1239_v1  ;;  %v1453_v8 = vld [vmem:[%s2375_s0 + $0x164] sm:$0xf]  ;;  %v1265_v9 = vld [vmem:[%s2375_s0 + $0x168] sm:$0xf0]  ;;  %v1132_v10 = vor.u32 %v1419_v6, %v1129_v7  ;;  %v1119_v11 = vld [vmem:[%s2375_s0 + $0x40] sm:$0xf] }
  0x12   :  { %555 = vmatpush.bf16.msra.mxu0 %v1476_v18  ;;  %1677 = vmatpush.bf16.msra.mxu2 %v1476_v18  ;;  %v1418_v12 = vld [vmem:[%s2375_s0 + $0x44] sm:$0xf0]  ;;  %v1247_v13 = vld [vmem:[%s2375_s0 + $0x140] sm:$0xf]  ;;  %v1268_v15 = vor.u32 %v1453_v8, %v1265_v9  ;;  %v1421_v18 = vld [vmem:[%s2375_s0 + $0x64] sm:$0xf] }
  0x13   :  { %v1450_v14 = vld [vmem:[%s2375_s0 + $0x144] sm:$0xf0]  ;;  %v1120_v16 = vor.u32 %v1418_v12, %v1119_v11  ;;  %v1273_v21 = vld [vmem:[%s2375_s0 + $0x178] sm:$0xf0]  ;;  %v1127_v23 = vld [vmem:[%s2375_s0 + $0x50] sm:$0xf] }
  0x14   :  { %v1248_v17 = vor.u32 %v1450_v14, %v1247_v13  ;;  %v1420_v24 = vld [vmem:[%s2375_s0 + $0x54] sm:$0xf0]  ;;  %v1423_v30 = vld [vmem:[%s2375_s0 + $0x74] sm:$0xf]  ;;  %v1135_v35 = vld [vmem:[%s2375_s0 + $0x60] sm:$0xf] }
  0x15   :  { %v1128_v28 = vor.u32 %v1420_v24, %v1127_v23  ;;  %v1422_v36 = vld [vmem:[%s2375_s0 + $0x64] sm:$0xf0]  ;;  %v1263_v37 = vld [vmem:[%s2375_s0 + $0x160] sm:$0xf]  ;;  %v1425_v42 = vld [vmem:[%s2375_s0 + $0x84] sm:$0xf] }
  0x16   :  { %556 = vmatpush.bf16.msra.mxu0 %v1475_v19  ;;  %1678 = vmatpush.bf16.msra.mxu2 %v1475_v19  ;;  %v1137_v19 = vld [vmem:[%s2375_s0 + $0x68] sm:$0xf0]  ;;  %v1136_v40 = vor.u32 %v1422_v36, %v1135_v35  ;;  %v1143_v47 = vld [vmem:[%s2375_s0 + $0x70] sm:$0xf]  ;;  %v1424_v48 = vld [vmem:[%s2375_s0 + $0x74] sm:$0xf0] }
  0x17   :  { %v1140_v22 = vor.u32 %v1421_v18, %v1137_v19  ;;  %v1456_v51 = vld [vmem:[%s2375_s0 + $0x174] sm:$0xf0]  ;;  %v1144_v53 = vor.u32 %v1424_v48, %v1143_v47  ;;  %v1161_v58 = vld [vmem:[%s2375_s0 + $0x98] sm:$0xf0]  ;;  %v1461_v59 = vld [vmem:[%s2375_s0 + $0x1a4] sm:$0xf] }
  0x18   :  { %v1297_v60 = vld [vmem:[%s2375_s0 + $0x1a8] sm:$0xf0]  ;;  %v1426_v63 = vld [vmem:[%s2375_s0 + $0x84] sm:$0xf0]  ;;  %v1279_v2 = vld [vmem:[%s2375_s0 + $0x180] sm:$0xf] }
  0x19   :  { %v1990_v8 = vld [vmem:[%s2376_s2] ss:$0 sm:$0xff]  ;;  %v1463_v19 = vld [vmem:[%s2375_s0 + $0x1b4] sm:$0xf]  ;;  %v1428_v23 = vld [vmem:[%s2375_s0 + $0x94] sm:$0xf0] }
  0x1a   :  { %557 = vmatpush.bf16.msra.mxu0 %v1474_v20  ;;  %1679 = vmatpush.bf16.msra.mxu2 %v1474_v20  ;;  %v1455_v20 = vld [vmem:[%s2375_s0 + $0x174] sm:$0xf]  ;;  %v1313_v47 = vld [vmem:[%s2375_s0 + $0x1c8] sm:$0xf0] }
  0x1b   :  { %v1276_v27 = vor.u32 %v1455_v20, %v1273_v21  ;;  %v1305_v20 = vld [vmem:[%s2375_s0 + $0x1b8] sm:$0xf0] }
  0x1e   :  { %558 = vmatpush.bf16.msra.mxu0 %v1473_v26  ;;  %1680 = vmatpush.bf16.msra.mxu2 %v1473_v26  ;;  %v1452_v26 = vld [vmem:[%s2375_s0 + $0x154] sm:$0xf0] }
  0x1f   :  { %1378 = vmatmul.msk.bf16.gmra.mxu1 %vm447_vm2, %v1100_v25  ;;  %1395 = vmatmul.msk.bf16.gmra.mxu3 %vm447_vm2, %v1236_v31  ;;  %v1255_v25 = vld [vmem:[%s2375_s0 + $0x150] sm:$0xf]  ;;  %v1145_v31 = vld [vmem:[%s2375_s0 + $0x78] sm:$0xf0] }
  0x20   :  { %v1256_v29 = vor.u32 %v1452_v26, %v1255_v25  ;;  %v1148_v34 = vor.u32 %v1423_v30, %v1145_v31  ;;  %v1308_v30 = vor.u32 %v1463_v19, %v1305_v20  ;;  %v1467_v19 = vld [vmem:[%s2375_s0 + $0x1d4] sm:$0xf]  ;;  %v1321_v20 = vld [vmem:[%s2375_s0 + $0x1d8] sm:$0xf0] }
  0x21   :  { %559 = vmatmul.bf16.vlgmr.msra.gmra.mxu0 %v1088_v32  ;;  %639 = vmatmul.bf16.vlgmr.msra.gmra.mxu2 %v1216_v33  ;;  %v1457_v32 = vld [vmem:[%s2375_s0 + $0x184] sm:$0xf]  ;;  %v1281_v33 = vld [vmem:[%s2375_s0 + $0x188] sm:$0xf0] }
  0x22   :  { %v1284_v39 = vor.u32 %v1457_v32, %v1281_v33 }
  0x2f   :  { %1379 = vmatmul.msk.bf16.gmra.mxu1 %vm447_vm2, %v1108_v38  ;;  %1396 = vmatmul.msk.bf16.gmra.mxu3 %vm447_vm2, %v1244_v43  ;;  %v1454_v38 = vld [vmem:[%s2375_s0 + $0x164] sm:$0xf0]  ;;  %v1153_v43 = vld [vmem:[%s2375_s0 + $0x88] sm:$0xf0] }
  0x30   :  { %v1264_v41 = vor.u32 %v1454_v38, %v1263_v37  ;;  %v1156_v46 = vor.u32 %v1425_v42, %v1153_v43  ;;  %v1431_v43 = vld [vmem:[%s2375_s0 + $0xb4] sm:$0xf] }
  0x31   :  { %564 = vmatmul.bf16.gmra.mxu0 %v1096_v44  ;;  %644 = vmatmul.bf16.gmra.mxu2 %v1224_v45  ;;  %v1459_v44 = vld [vmem:[%s2375_s0 + $0x194] sm:$0xf]  ;;  %v1289_v45 = vld [vmem:[%s2375_s0 + $0x198] sm:$0xf0] }
  0x32   :  { %v1292_v52 = vor.u32 %v1459_v44, %v1289_v45  ;;  %v1177_v44 = vld [vmem:[%s2375_s0 + $0xb8] sm:$0xf0] }
  0x3f   :  { %1380 = vmatmul.msk.bf16.gmra.mxu1 %vm447_vm2, %v1116_v50  ;;  %1397 = vmatmul.msk.bf16.gmra.mxu3 %vm447_vm2, %v1252_v55  ;;  %v1271_v50 = vld [vmem:[%s2375_s0 + $0x170] sm:$0xf] }
  0x40   :  { %v1272_v54 = vor.u32 %v1456_v51, %v1271_v50  ;;  %v1167_v50 = vld [vmem:[%s2375_s0 + $0xa0] sm:$0xf]  ;;  %v1430_v51 = vld [vmem:[%s2375_s0 + $0xa4] sm:$0xf0] }
  0x41   :  { %569 = vmatmul.bf16.gmra.mxu0 %v1104_v56  ;;  %649 = vmatmul.bf16.gmra.mxu2 %v1232_v57  ;;  %v1427_v57 = vld [vmem:[%s2375_s0 + $0x94] sm:$0xf] }
  0x42   :  { %v1164_v61 = vor.u32 %v1427_v57, %v1161_v58  ;;  %v1295_v57 = vld [vmem:[%s2375_s0 + $0x1a0] sm:$0xf]  ;;  %v1462_v58 = vld [vmem:[%s2375_s0 + $0x1a4] sm:$0xf0] }
  0x4f   :  { %1381 = vmatmul.msk.bf16.gmra.mxu1 %vm447_vm2, %v1124_v62  ;;  %1398 = vmatmul.msk.bf16.gmra.mxu3 %vm447_vm2, %v1260_v3  ;;  %v1151_v62 = vld [vmem:[%s2375_s0 + $0x80] sm:$0xf]  ;;  %v1458_v3 = vld [vmem:[%s2375_s0 + $0x184] sm:$0xf0] }
  0x50   :  { %v1280_v7 = vor.u32 %v1458_v3, %v1279_v2  ;;  %v1296_v3 = vor.u32 %v1462_v58, %v1295_v57  ;;  %v1469_v57 = vld [vmem:[%s2375_s0 + $0x1e4] sm:$0xf]  ;;  %v1329_v58 = vld [vmem:[%s2375_s0 + $0x1e8] sm:$0xf0] }
  0x51   :  { %574 = vmatmul.bf16.gmra.mxu0 %v1112_v4  ;;  %654 = vmatmul.bf16.gmra.mxu2 %v1240_v5  ;;  %v1300_v4 = vor.u32 %v1461_v59, %v1297_v60  ;;  %v1152_v5 = vor.u32 %v1426_v63, %v1151_v62  ;;  %v1168_v62 = vor.u32 %v1430_v51, %v1167_v50  ;;  %v1435_v51 = vld [vmem:[%s2375_s0 + $0xd4] sm:$0xf] }
  0x5f   :  { %1382 = vmatmul.msk.bf16.gmra.mxu1 %vm447_vm2, %v1132_v10  ;;  %1399 = vmatmul.msk.bf16.gmra.mxu3 %vm447_vm2, %v1268_v15 }
  0x61   :  { %579 = vmatmul.bf16.gmra.mxu0 %v1120_v16  ;;  %659 = vmatmul.bf16.gmra.mxu2 %v1248_v17  ;;  %v1429_v16 = vld [vmem:[%s2375_s0 + $0xa4] sm:$0xf]  ;;  %v1169_v17 = vld [vmem:[%s2375_s0 + $0xa8] sm:$0xf0] }
  0x62   :  { %v1172_v21 = vor.u32 %v1429_v16, %v1169_v17  ;;  %v1185_v17 = vld [vmem:[%s2375_s0 + $0xc8] sm:$0xf0] }
  0x6f   :  { %1383 = vmatmul.msk.bf16.gmra.mxu1 %vm447_vm2, %v1140_v22  ;;  %1400 = vmatmul.msk.bf16.gmra.mxu3 %vm447_vm2, %v1276_v27  ;;  %v1159_v22 = vld [vmem:[%s2375_s0 + $0x90] sm:$0xf] }
  0x70   :  { %v1160_v33 = vor.u32 %v1428_v23, %v1159_v22  ;;  %v1175_v23 = vld [vmem:[%s2375_s0 + $0xb0] sm:$0xf] }
  0x71   :  { %584 = vmatmul.bf16.gmra.mxu0 %v1128_v28  ;;  %664 = vmatmul.bf16.gmra.mxu2 %v1256_v29  ;;  %v1287_v28 = vld [vmem:[%s2375_s0 + $0x190] sm:$0xf]  ;;  %v1460_v29 = vld [vmem:[%s2375_s0 + $0x194] sm:$0xf0] }
  0x72   :  { %v1288_v35 = vor.u32 %v1460_v29, %v1287_v28 }
  0x7f   :  { %1384 = vmatmul.msk.bf16.gmra.mxu1 %vm447_vm2, %v1148_v34  ;;  %1401 = vmatmul.msk.bf16.gmra.mxu3 %vm447_vm2, %v1284_v39 }
  0x81   :  { %589 = vmatmul.bf16.gmra.mxu0 %v1136_v40  ;;  %669 = vmatmul.bf16.gmra.mxu2 %v1264_v41 }
  0x8c   :  { %v729_v49 = vpop.f32.mrf.mxu1 }
  0x8f   :  { %1385 = vmatmul.msk.bf16.gmra.mxu1 %vm447_vm2, %v1156_v46  ;;  %1402 = vmatmul.msk.bf16.gmra.mxu3 %vm447_vm2, %v1292_v52  ;;  %v1465_v46 = vld [vmem:[%s2375_s0 + $0x1c4] sm:$0xf] }
  0x90   :  { %v1316_v59 = vor.u32 %v1465_v46, %v1313_v47 }
  0x91   :  { %594 = vmatmul.bf16.gmra.mxu0 %v1144_v53  ;;  %674 = vmatmul.bf16.gmra.mxu2 %v1272_v54 }
  0x92   :  { %v1958_v55 = vpop.f32.mrf.mxu3 }
  0x94   :  { %v731_v56 = vpop.f32.mrf.mxu1 }
  0x9a   :  { %v1978_v0 = vpop.f32.mrf.mxu3 }
  0x9c   :  { %v734_v1 = vpop.f32.mrf.mxu1 }
  0x9e   :  { %v560_v6 = vpop.f32.mrf.mxu0 }
  0x9f   :  { %1386 = vmatmul.msk.bf16.gmra.mxu1 %vm447_vm2, %v1164_v61  ;;  %1403 = vmatmul.msk.bf16.gmra.mxu3 %vm447_vm2, %v1300_v4  ;;  %v561_v10 = vadd.f32 %v1990_v8, %v560_v6 }
  0xa1   :  { %599 = vmatmul.bf16.gmra.mxu0 %v1152_v5  ;;  %679 = vmatmul.bf16.gmra.mxu2 %v1280_v7  ;;  %v730_v14 = vadd.f32 %v729_v49, %v561_v10  ;;  %v1180_v49 = vor.u32 %v1431_v43, %v1177_v44 }
  0xa2   :  { %v1993_v9 = vpop.f32.mrf.mxu3 }
  0xa3   :  { %v889_v25 = vmax.f32 %v730_v14, 0.0 }
  0xa4   :  { %v736_v11 = vpop.f32.mrf.mxu1  ;;  %v1996_v12 = vpop.f32.mrf.mxu2 }
  0xa6   :  { %v562_v13 = vpop.f32.mrf.mxu0 }
  0xa7   :  { %v563_v15 = vadd.f32 %v1990_v8, %v562_v13 }
  0xa9   :  { %v732_v18 = vadd.f32 %v731_v56, %v563_v15 }
  0xaa   :  { %v2017_v24 = vpop.f32.mrf.mxu3 }
  0xab   :  { %v890_v26 = vmax.f32 %v732_v18, 0.0 }
  0xac   :  { %v739_v27 = vpop.f32.mrf.mxu1  ;;  %v2025_v32 = vpop.f32.mrf.mxu2 }
  0xad   :  { %v1485_v31 = vpack.c.bf16 %v890_v26, %v889_v25  ;;  %v1432_v25 = vld [vmem:[%s2375_s0 + $0xb4] sm:$0xf0] }
  0xae   :  { %v565_v34 = vpop.f32.mrf.mxu0 }
  0xaf   :  { %1387 = vmatmul.msk.bf16.gmra.mxu1 %vm447_vm2, %v1172_v21  ;;  %1486 = vst [vmem:[%s2377_s3] sm:$0xff] %v1485_v31   ;;  %1404 = vmatmul.msk.bf16.gmra.mxu3 %vm447_vm2, %v1308_v30  ;;  %v566_v37 = vadd.f32 %v1990_v8, %v565_v34  ;;  %v1303_v30 = vld [vmem:[%s2375_s0 + $0x1b0] sm:$0xf]  ;;  %v1464_v31 = vld [vmem:[%s2375_s0 + $0x1b4] sm:$0xf0] }
  0xb1   :  { %604 = vmatmul.bf16.gmra.mxu0 %v1160_v33  ;;  %684 = vmatmul.bf16.gmra.mxu2 %v1288_v35  ;;  %v735_v41 = vadd.f32 %v734_v1, %v566_v37  ;;  %v1324_v33 = vor.u32 %v1467_v19, %v1321_v20  ;;  %v1176_v37 = vor.u32 %v1432_v25, %v1175_v23  ;;  %v1437_v25 = vld [vmem:[%s2375_s0 + $0xe4] sm:$0xf] }
  0xb2   :  { %v2032_v36 = vpop.f32.mrf.mxu3 }
  0xb3   :  { %v891_v53 = vmax.f32 %v735_v41, 0.0  ;;  %v1304_v41 = vor.u32 %v1464_v31, %v1303_v30  ;;  %v1471_v30 = vld [vmem:[%s2375_s0 + $0x1f4] sm:$0xf]  ;;  %v1337_v31 = vld [vmem:[%s2375_s0 + $0x1f8] sm:$0xf0] }
  0xb4   :  { %v741_v38 = vpop.f32.mrf.mxu1  ;;  %v645_v39 = vpop.f32.mrf.mxu2 }
  0xb5   :  { %v646_v48 = vadd.f32 %v1990_v8, %v645_v39 }
  0xb6   :  { %v567_v40 = vpop.f32.mrf.mxu0 }
  0xb7   :  { %v568_v42 = vadd.f32 %v1990_v8, %v567_v40  ;;  %v815_v63 = vadd.f32 %v1958_v55, %v646_v48 }
  0xb9   :  { %v737_v45 = vadd.f32 %v736_v11, %v568_v42  ;;  %v923_v5 = vmax.f32 %v815_v63, 0.0 }
  0xba   :  { %v2055_v52 = vpop.f32.mrf.mxu3 }
  0xbb   :  { %v892_v54 = vmax.f32 %v737_v45, 0.0 }
  0xbc   :  { %v2057_v56 = vpop.f32.mrf.mxu1  ;;  %v647_v61 = vpop.f32.mrf.mxu2 }
  0xbd   :  { %v1490_v60 = vpack.c.bf16 %v892_v54, %v891_v53  ;;  %v648_v1 = vadd.f32 %v1990_v8, %v647_v61  ;;  %v1193_v53 = vld [vmem:[%s2375_s0 + $0xd8] sm:$0xf0]  ;;  %v1434_v61 = vld [vmem:[%s2375_s0 + $0xc4] sm:$0xf0] }
  0xbe   :  { %v570_v2 = vpop.f32.mrf.mxu0 }
  0xbf   :  { %1388 = vmatmul.msk.bf16.gmra.mxu1 %vm447_vm2, %v1180_v49  ;;  %1642 = vst [vmem:[%s2377_s3 + $0x8] sm:$0xff] %v1490_v60   ;;  %1405 = vmatmul.msk.bf16.gmra.mxu3 %vm447_vm2, %v1316_v59  ;;  %v817_v4 = vadd.f32 %v1978_v0, %v648_v1  ;;  %v571_v55 = vadd.f32 %v1990_v8, %v570_v2  ;;  %v1433_v0 = vld [vmem:[%s2375_s0 + $0xc4] sm:$0xf]  ;;  %v1183_v60 = vld [vmem:[%s2375_s0 + $0xc0] sm:$0xf] }
  0xc0   :  { %v1188_v22 = vor.u32 %v1433_v0, %v1185_v17  ;;  %v1196_v59 = vor.u32 %v1435_v51, %v1193_v53 }
  0xc1   :  { %609 = vmatmul.bf16.gmra.mxu0 %v1168_v62  ;;  %v924_v6 = vmax.f32 %v817_v4, 0.0  ;;  %689 = vmatmul.bf16.gmra.mxu2 %v1296_v3  ;;  %v740_v15 = vadd.f32 %v739_v27, %v571_v55  ;;  %v1311_v3 = vld [vmem:[%s2375_s0 + $0x1c0] sm:$0xf]  ;;  %v1466_v4 = vld [vmem:[%s2375_s0 + $0x1c4] sm:$0xf0] }
  0xc2   :  { %v2073_v7 = vpop.f32.mrf.mxu3 }
  0xc3   :  { %v1570_v11 = vpack.c.bf16 %v924_v6, %v923_v5  ;;  %v893_v27 = vmax.f32 %v740_v15, 0.0  ;;  %v1332_v5 = vor.u32 %v1469_v57, %v1329_v58  ;;  %v1312_v15 = vor.u32 %v1466_v4, %v1311_v3 }
  0xc4   :  { %v746_v10 = vpop.f32.mrf.mxu1  ;;  %v650_v13 = vpop.f32.mrf.mxu2 }
  0xc5   :  { %1658 = vst [vmem:[%s2377_s3 + $0x88] sm:$0xff] %v1570_v11   ;;  %v651_v21 = vadd.f32 %v1990_v8, %v650_v13 }
  0xc6   :  { %v572_v14 = vpop.f32.mrf.mxu0 }
  0xc7   :  { %v573_v16 = vadd.f32 %v1990_v8, %v572_v14 }
  0xc9   :  { %v742_v18 = vadd.f32 %v741_v38, %v573_v16  ;;  %v820_v38 = vadd.f32 %v1993_v9, %v651_v21 }
  0xca   :  { %v2099_v26 = vpop.f32.mrf.mxu3 }
  0xcb   :  { %v894_v28 = vmax.f32 %v742_v18, 0.0  ;;  %v925_v43 = vmax.f32 %v820_v38, 0.0 }
  0xcc   :  { %v2101_v29 = vpop.f32.mrf.mxu1  ;;  %v652_v35 = vpop.f32.mrf.mxu2 }
  0xcd   :  { %v1495_v34 = vpack.c.bf16 %v894_v28, %v893_v27  ;;  %v653_v39 = vadd.f32 %v1990_v8, %v652_v35  ;;  %v1201_v27 = vld [vmem:[%s2375_s0 + $0xe8] sm:$0xf0]  ;;  %v1436_v35 = vld [vmem:[%s2375_s0 + $0xd4] sm:$0xf0] }
  0xce   :  { %v575_v40 = vpop.f32.mrf.mxu0 }
  0xcf   :  { %1389 = vmatmul.msk.bf16.gmra.mxu1 %vm447_vm2, %v1188_v22  ;;  %1643 = vst [vmem:[%s2377_s3 + $0x10] sm:$0xff] %v1495_v34   ;;  %1406 = vmatmul.msk.bf16.gmra.mxu3 %vm447_vm2, %v1324_v33  ;;  %v822_v42 = vadd.f32 %v2017_v24, %v653_v39  ;;  %v576_v9 = vadd.f32 %v1990_v8, %v575_v40  ;;  %v1191_v34 = vld [vmem:[%s2375_s0 + $0xd0] sm:$0xf] }
  0xd0   :  { %v1204_v33 = vor.u32 %v1437_v25, %v1201_v27  ;;  %v1319_v40 = vld [vmem:[%s2375_s0 + $0x1d0] sm:$0xf] }
  0xd1   :  { %614 = vmatmul.bf16.gmra.mxu0 %v1176_v37  ;;  %v926_v44 = vmax.f32 %v822_v42, 0.0  ;;  %694 = vmatmul.bf16.gmra.mxu2 %v1304_v41  ;;  %v745_v50 = vadd.f32 %v2057_v56, %v576_v9  ;;  %v1468_v41 = vld [vmem:[%s2375_s0 + $0x1d4] sm:$0xf0] }
  0xd2   :  { %v2117_v45 = vpop.f32.mrf.mxu3 }
  0xd3   :  { %v1575_v47 = vpack.c.bf16 %v926_v44, %v925_v43  ;;  %v895_v63 = vmax.f32 %v745_v50, 0.0  ;;  %v1340_v43 = vor.u32 %v1471_v30, %v1337_v31  ;;  %v1320_v50 = vor.u32 %v1468_v41, %v1319_v40 }
  0xd4   :  { %v751_v46 = vpop.f32.mrf.mxu1  ;;  %v655_v48 = vpop.f32.mrf.mxu2 }
  0xd5   :  { %1659 = vst [vmem:[%s2377_s3 + $0x90] sm:$0xff] %v1575_v47   ;;  %v656_v56 = vadd.f32 %v1990_v8, %v655_v48 }
  0xd6   :  { %v577_v49 = vpop.f32.mrf.mxu0 }
  0xd7   :  { %v578_v24 = vadd.f32 %v1990_v8, %v577_v49  ;;  %v825_v11 = vadd.f32 %v2032_v36, %v656_v56 }
  0xd9   :  { %v747_v54 = vadd.f32 %v746_v10, %v578_v24  ;;  %v1184_v10 = vor.u32 %v1434_v61, %v1183_v60  ;;  %v927_v0 = vmax.f32 %v825_v11, 0.0  ;;  %v1439_v61 = vld [vmem:[%s2375_s0 + $0xf4] sm:$0xf]  ;;  %v1327_v11 = vld [vmem:[%s2375_s0 + $0x1e0] sm:$0xf] }
  0xda   :  { %v2144_v62 = vpop.f32.mrf.mxu3 }
  0xdb   :  { %v896_v1 = vmax.f32 %v747_v54, 0.0 }
  0xdc   :  { %v2146_v2 = vpop.f32.mrf.mxu1  ;;  %v657_v55 = vpop.f32.mrf.mxu2 }
  0xdd   :  { %v1500_v6 = vpack.c.bf16 %v896_v1, %v895_v63  ;;  %v658_v13 = vadd.f32 %v1990_v8, %v657_v55  ;;  %v1209_v63 = vld [vmem:[%s2375_s0 + $0xf8] sm:$0xf0] }
  0xde   :  { %v580_v14 = vpop.f32.mrf.mxu0  ;;  %v1212_v4 = vor.u32 %v1439_v61, %v1209_v63 }
  0xdf   :  { %1390 = vmatmul.msk.bf16.gmra.mxu1 %vm447_vm2, %v1196_v59  ;;  %1644 = vst [vmem:[%s2377_s3 + $0x18] sm:$0xff] %v1500_v6   ;;  %1407 = vmatmul.msk.bf16.gmra.mxu3 %vm447_vm2, %v1332_v5  ;;  %v827_v16 = vadd.f32 %v2055_v52, %v658_v13  ;;  %v581_v36 = vadd.f32 %v1990_v8, %v580_v14  ;;  %v1199_v5 = vld [vmem:[%s2375_s0 + $0xe0] sm:$0xf]  ;;  %v1470_v13 = vld [vmem:[%s2375_s0 + $0x1e4] sm:$0xf0] }
  0xe1   :  { %619 = vmatmul.bf16.gmra.mxu0 %v1184_v10  ;;  %v928_v17 = vmax.f32 %v827_v16, 0.0  ;;  %699 = vmatmul.bf16.gmra.mxu2 %v1312_v15  ;;  %v750_v23 = vadd.f32 %v2101_v29, %v581_v36 }
  0xe2   :  { %v2162_v18 = vpop.f32.mrf.mxu3 }
  0xe3   :  { %v1580_v20 = vpack.c.bf16 %v928_v17, %v927_v0  ;;  %v897_v37 = vmax.f32 %v750_v23, 0.0 }
  0xe4   :  { %v756_v19 = vpop.f32.mrf.mxu1  ;;  %v660_v21 = vpop.f32.mrf.mxu2 }
  0xe5   :  { %1660 = vst [vmem:[%s2377_s3 + $0x98] sm:$0xff] %v1580_v20   ;;  %v661_v29 = vadd.f32 %v1990_v8, %v660_v21 }
  0xe6   :  { %v582_v22 = vpop.f32.mrf.mxu0 }
  0xe7   :  { %v583_v52 = vadd.f32 %v1990_v8, %v582_v22  ;;  %v830_v47 = vadd.f32 %v2073_v7, %v661_v29  ;;  %v1217_v29 = vld [vmem:[%s2375_s0 + $0x108] sm:$0xf0] }
  0xe9   :  { %v752_v28 = vadd.f32 %v751_v46, %v583_v52  ;;  %v1192_v46 = vor.u32 %v1436_v35, %v1191_v34  ;;  %v929_v51 = vmax.f32 %v830_v47, 0.0 }
  0xea   :  { %v2195_v42 = vpop.f32.mrf.mxu3 }
  0xeb   :  { %v898_v38 = vmax.f32 %v752_v28, 0.0 }
  0xec   :  { %v759_v39 = vpop.f32.mrf.mxu1  ;;  %v662_v9 = vpop.f32.mrf.mxu2 }
  0xed   :  { %v1505_v44 = vpack.c.bf16 %v898_v38, %v897_v37  ;;  %v663_v48 = vadd.f32 %v1990_v8, %v662_v9  ;;  %v1207_v38 = vld [vmem:[%s2375_s0 + $0xf0] sm:$0xf]  ;;  %v1472_v9 = vld [vmem:[%s2375_s0 + $0x1f4] sm:$0xf0] }
  0xee   :  { %v585_v49 = vpop.f32.mrf.mxu0 }
  0xef   :  { %1391 = vmatmul.msk.bf16.gmra.mxu1 %vm447_vm2, %v1204_v33  ;;  %1645 = vst [vmem:[%s2377_s3 + $0x20] sm:$0xff] %v1505_v44   ;;  %1408 = vmatmul.msk.bf16.gmra.mxu3 %vm447_vm2, %v1340_v43  ;;  %v832_v24 = vadd.f32 %v2099_v26, %v663_v48  ;;  %v586_v7 = vadd.f32 %v1990_v8, %v585_v49  ;;  %v1335_v44 = vld [vmem:[%s2375_s0 + $0x1f0] sm:$0xf] }
  0xf1   :  { %624 = vmatmul.bf16.gmra.mxu0 %v1192_v46  ;;  %v930_v53 = vmax.f32 %v832_v24, 0.0  ;;  %704 = vmatmul.bf16.gmra.mxu2 %v1320_v50  ;;  %v755_v60 = vadd.f32 %v2146_v2, %v586_v7  ;;  %v1438_v2 = vld [vmem:[%s2375_s0 + $0xe4] sm:$0xf0] }
  0xf2   :  { %v2206_v56 = vpop.f32.mrf.mxu3  ;;  %v1200_v16 = vor.u32 %v1438_v2, %v1199_v5 }
  0xf3   :  { %v1585_v57 = vpack.c.bf16 %v930_v53, %v929_v51  ;;  %v899_v6 = vmax.f32 %v755_v60, 0.0  ;;  %v1336_v51 = vor.u32 %v1472_v9, %v1335_v44 }
  0xf4   :  { %v761_v54 = vpop.f32.mrf.mxu1  ;;  %v665_v58 = vpop.f32.mrf.mxu2 }
  0xf5   :  { %1661 = vst [vmem:[%s2377_s3 + $0xa0] sm:$0xff] %v1585_v57   ;;  %v666_v3 = vadd.f32 %v1990_v8, %v665_v58 }
  0xf6   :  { %v587_v59 = vpop.f32.mrf.mxu0 }
  0xf7   :  { %v588_v26 = vadd.f32 %v1990_v8, %v587_v59  ;;  %v835_v0 = vadd.f32 %v2117_v45, %v666_v3 }
  0xf9   :  { %v757_v1 = vadd.f32 %v756_v19, %v588_v26  ;;  %v1328_v19 = vor.u32 %v1470_v13, %v1327_v11  ;;  %v931_v22 = vmax.f32 %v835_v0, 0.0 }
  0xfa   :  { %v846_v20 = vpop.f32.mrf.mxu3 }
  0xfb   :  { %v900_v55 = vmax.f32 %v757_v1, 0.0 }
  0xfc   :  { %v764_v10 = vpop.f32.mrf.mxu1  ;;  %v667_v15 = vpop.f32.mrf.mxu2 }
  0xfd   :  { %v1510_v14 = vpack.c.bf16 %v900_v55, %v899_v6  ;;  %v668_v17 = vadd.f32 %v1990_v8, %v667_v15 }
  0xfe   :  { %v590_v36 = vpop.f32.mrf.mxu0 }
  0xff   :  { %1392 = vmatmul.msk.bf16.gmra.mxu1 %vm447_vm2, %v1212_v4  ;;  %1646 = vst [vmem:[%s2377_s3 + $0x28] sm:$0xff] %v1510_v14   ;;  %v837_v21 = vadd.f32 %v2144_v62, %v668_v17  ;;  %v591_v52 = vadd.f32 %v1990_v8, %v590_v36  ;;  %v1441_v62 = vld [vmem:[%s2375_s0 + $0x104] sm:$0xf] }
 0x100   :  { %v1220_v37 = vor.u32 %v1441_v62, %v1217_v29 }
 0x101   :  { %629 = vmatmul.bf16.gmra.mxu0 %v1200_v16  ;;  %v932_v23 = vmax.f32 %v837_v21, 0.0  ;;  %709 = vmatmul.bf16.gmra.mxu2 %v1328_v19  ;;  %v760_v30 = vadd.f32 %v759_v39, %v591_v52  ;;  %v1440_v39 = vld [vmem:[%s2375_s0 + $0xf4] sm:$0xf0] }
 0x102   :  { %v2250_v34 = vpop.f32.mrf.mxu3  ;;  %v1208_v48 = vor.u32 %v1440_v39, %v1207_v38 }
 0x103   :  { %v1590_v25 = vpack.c.bf16 %v932_v23, %v931_v22  ;;  %v901_v40 = vmax.f32 %v760_v30, 0.0 }
 0x104   :  { %v766_v45 = vpop.f32.mrf.mxu1  ;;  %v670_v27 = vpop.f32.mrf.mxu2 }
 0x105   :  { %1662 = vst [vmem:[%s2377_s3 + $0xa8] sm:$0xff] %v1590_v25   ;;  %v671_v35 = vadd.f32 %v1990_v8, %v670_v27 }
 0x106   :  { %v592_v28 = vpop.f32.mrf.mxu0 }
 0x107   :  { %v593_v31 = vadd.f32 %v1990_v8, %v592_v28  ;;  %v840_v49 = vadd.f32 %v2162_v18, %v671_v35 }
 0x109   :  { %v762_v33 = vadd.f32 %v761_v54, %v593_v31  ;;  %v933_v7 = vmax.f32 %v840_v49, 0.0 }
 0x10a   :  { %v851_v18 = vpop.f32.mrf.mxu3 }
 0x10b   :  { %v902_v41 = vmax.f32 %v762_v33, 0.0 }
 0x10c   :  { %v769_v43 = vpop.f32.mrf.mxu1  ;;  %v672_v47 = vpop.f32.mrf.mxu2 }
 0x10d   :  { %v1515_v46 = vpack.c.bf16 %v902_v41, %v901_v40  ;;  %v673_v50 = vadd.f32 %v1990_v8, %v672_v47 }
 0x10e   :  { %v595_v24 = vpop.f32.mrf.mxu0 }
 0x10f   :  { %1393 = vmatmul.msk.bf16.gmra.mxu1 %vm447_vm2, %v1220_v37  ;;  %1647 = vst [vmem:[%s2377_s3 + $0x30] sm:$0xff] %v1515_v46   ;;  %v842_v53 = vadd.f32 %v2195_v42, %v673_v50  ;;  %v596_v57 = vadd.f32 %v1990_v8, %v595_v24 }
 0x111   :  { %634 = vmatmul.bf16.gmra.mxu0 %v1208_v48  ;;  %v934_v54 = vmax.f32 %v842_v53, 0.0  ;;  %714 = vmatmul.bf16.gmra.mxu2 %v1336_v51  ;;  %v765_v61 = vadd.f32 %v764_v10, %v596_v57 }
 0x112   :  { %v854_v55 = vpop.f32.mrf.mxu3 }
 0x113   :  { %v1595_v59 = vpack.c.bf16 %v934_v54, %v933_v7  ;;  %v903_v3 = vmax.f32 %v765_v61, 0.0 }
 0x114   :  { %v771_v58 = vpop.f32.mrf.mxu1  ;;  %v675_v60 = vpop.f32.mrf.mxu2 }
 0x115   :  { %1663 = vst [vmem:[%s2377_s3 + $0xb0] sm:$0xff] %v1595_v59   ;;  %v676_v42 = vadd.f32 %v1990_v8, %v675_v60 }
 0x116   :  { %v597_v26 = vpop.f32.mrf.mxu0 }
 0x117   :  { %v598_v63 = vadd.f32 %v1990_v8, %v597_v26  ;;  %v845_v11 = vadd.f32 %v2206_v56, %v676_v42 }
 0x119   :  { %v767_v1 = vadd.f32 %v766_v45, %v598_v63  ;;  %v935_v15 = vmax.f32 %v845_v11, 0.0 }
 0x11a   :  { %v856_v23 = vpop.f32.mrf.mxu3 }
 0x11b   :  { %v904_v4 = vmax.f32 %v767_v1, 0.0 }
 0x11c   :  { %v774_v5 = vpop.f32.mrf.mxu1  ;;  %v677_v6 = vpop.f32.mrf.mxu2 }
 0x11d   :  { %v1520_v2 = vpack.c.bf16 %v904_v4, %v903_v3  ;;  %v678_v13 = vadd.f32 %v1990_v8, %v677_v6 }
 0x11e   :  { %v600_v14 = vpop.f32.mrf.mxu0 }
 0x11f   :  { %1648 = vst [vmem:[%s2377_s3 + $0x38] sm:$0xff] %v1520_v2   ;;  %v847_v10 = vadd.f32 %v846_v20, %v678_v13  ;;  %v601_v0 = vadd.f32 %v1990_v8, %v600_v14 }
 0x121   :  { %v936_v16 = vmax.f32 %v847_v10, 0.0  ;;  %v770_v21 = vadd.f32 %v769_v43, %v601_v0 }
 0x122   :  { %v859_v35 = vpop.f32.mrf.mxu3 }
 0x123   :  { %v1600_v36 = vpack.c.bf16 %v936_v16, %v935_v15  ;;  %v905_v20 = vmax.f32 %v770_v21, 0.0 }
 0x124   :  { %v776_v17 = vpop.f32.mrf.mxu1  ;;  %v680_v19 = vpop.f32.mrf.mxu2 }
 0x125   :  { %1664 = vst [vmem:[%s2377_s3 + $0xb8] sm:$0xff] %v1600_v36   ;;  %v681_v45 = vadd.f32 %v1990_v8, %v680_v19 }
 0x126   :  { %v602_v56 = vpop.f32.mrf.mxu0 }
 0x127   :  { %v603_v22 = vadd.f32 %v1990_v8, %v602_v56  ;;  %v850_v31 = vadd.f32 %v2250_v34, %v681_v45 }
 0x129   :  { %v772_v52 = vadd.f32 %v771_v58, %v603_v22  ;;  %v937_v37 = vmax.f32 %v850_v31, 0.0 }
 0x12a   :  { %v861_v24 = vpop.f32.mrf.mxu3 }
 0x12b   :  { %v906_v25 = vmax.f32 %v772_v52, 0.0 }
 0x12c   :  { %v779_v27 = vpop.f32.mrf.mxu1  ;;  %v682_v30 = vpop.f32.mrf.mxu2 }
 0x12d   :  { %v1525_v28 = vpack.c.bf16 %v906_v25, %v905_v20  ;;  %v683_v62 = vadd.f32 %v1990_v8, %v682_v30 }
 0x12e   :  { %v605_v29 = vpop.f32.mrf.mxu0 }
 0x12f   :  { %1649 = vst [vmem:[%s2377_s3 + $0x40] sm:$0xff] %v1525_v28   ;;  %v852_v33 = vadd.f32 %v851_v18, %v683_v62  ;;  %v606_v39 = vadd.f32 %v1990_v8, %v605_v29 }
 0x131   :  { %v938_v38 = vmax.f32 %v852_v33, 0.0  ;;  %v775_v44 = vadd.f32 %v774_v5, %v606_v39 }
 0x132   :  { %v864_v1 = vpop.f32.mrf.mxu3 }
 0x133   :  { %v1605_v41 = vpack.c.bf16 %v938_v38, %v937_v37  ;;  %v907_v48 = vmax.f32 %v775_v44, 0.0 }
 0x134   :  { %v781_v40 = vpop.f32.mrf.mxu1  ;;  %v685_v43 = vpop.f32.mrf.mxu2 }
 0x135   :  { %1665 = vst [vmem:[%s2377_s3 + $0xc0] sm:$0xff] %v1605_v41   ;;  %v686_v47 = vadd.f32 %v1990_v8, %v685_v43 }
 0x136   :  { %v607_v34 = vpop.f32.mrf.mxu0 }
 0x137   :  { %v608_v9 = vadd.f32 %v1990_v8, %v607_v34  ;;  %v855_v7 = vadd.f32 %v854_v55, %v686_v47 }
 0x139   :  { %v777_v46 = vadd.f32 %v776_v17, %v608_v9  ;;  %v939_v18 = vmax.f32 %v855_v7, 0.0 }
 0x13a   :  { %v866_v0 = vpop.f32.mrf.mxu3 }
 0x13b   :  { %v908_v49 = vmax.f32 %v777_v46, 0.0 }
 0x13c   :  { %v784_v50 = vpop.f32.mrf.mxu1  ;;  %v687_v53 = vpop.f32.mrf.mxu2 }
 0x13d   :  { %v1530_v51 = vpack.c.bf16 %v908_v49, %v907_v48  ;;  %v688_v54 = vadd.f32 %v1990_v8, %v687_v53 }
 0x13e   :  { %v610_v57 = vpop.f32.mrf.mxu0 }
 0x13f   :  { %1650 = vst [vmem:[%s2377_s3 + $0x48] sm:$0xff] %v1530_v51   ;;  %v857_v58 = vadd.f32 %v856_v23, %v688_v54  ;;  %v611_v60 = vadd.f32 %v1990_v8, %v610_v57 }
 0x141   :  { %v940_v59 = vmax.f32 %v857_v58, 0.0  ;;  %v780_v3 = vadd.f32 %v779_v27, %v611_v60 }
 0x142   :  { %v869_v27 = vpop.f32.mrf.mxu3 }
 0x143   :  { %v1610_v61 = vpack.c.bf16 %v940_v59, %v939_v18  ;;  %v909_v6 = vmax.f32 %v780_v3, 0.0 }
 0x144   :  { %v786_v26 = vpop.f32.mrf.mxu1  ;;  %v690_v63 = vpop.f32.mrf.mxu2 }
 0x145   :  { %1666 = vst [vmem:[%s2377_s3 + $0xc8] sm:$0xff] %v1610_v61   ;;  %v691_v2 = vadd.f32 %v1990_v8, %v690_v63 }
 0x146   :  { %v612_v42 = vpop.f32.mrf.mxu0 }
 0x147   :  { %v613_v4 = vadd.f32 %v1990_v8, %v612_v42  ;;  %v860_v10 = vadd.f32 %v859_v35, %v691_v2 }
 0x149   :  { %v782_v5 = vadd.f32 %v781_v40, %v613_v4  ;;  %v941_v36 = vmax.f32 %v860_v10, 0.0 }
 0x14a   :  { %v871_v44 = vpop.f32.mrf.mxu3 }
 0x14b   :  { %v910_v55 = vmax.f32 %v782_v5, 0.0 }
 0x14c   :  { %v789_v11 = vpop.f32.mrf.mxu1  ;;  %v692_v14 = vpop.f32.mrf.mxu2 }
 0x14d   :  { %v1535_v13 = vpack.c.bf16 %v910_v55, %v909_v6  ;;  %v693_v15 = vadd.f32 %v1990_v8, %v692_v14 }
 0x14e   :  { %v615_v16 = vpop.f32.mrf.mxu0 }
 0x14f   :  { %1651 = vst [vmem:[%s2377_s3 + $0x50] sm:$0xff] %v1535_v13   ;;  %v862_v17 = vadd.f32 %v861_v24, %v693_v15  ;;  %v616_v56 = vadd.f32 %v1990_v8, %v615_v16 }
 0x151   :  { %v942_v19 = vmax.f32 %v862_v17, 0.0  ;;  %v785_v45 = vadd.f32 %v784_v50, %v616_v56 }
 0x152   :  { %v874_v58 = vpop.f32.mrf.mxu3 }
 0x153   :  { %v1615_v22 = vpack.c.bf16 %v942_v19, %v941_v36  ;;  %v911_v30 = vmax.f32 %v785_v45, 0.0 }
 0x154   :  { %v791_v21 = vpop.f32.mrf.mxu1  ;;  %v695_v23 = vpop.f32.mrf.mxu2 }
 0x155   :  { %1667 = vst [vmem:[%s2377_s3 + $0xd0] sm:$0xff] %v1615_v22   ;;  %v696_v28 = vadd.f32 %v1990_v8, %v695_v23 }
 0x156   :  { %v617_v52 = vpop.f32.mrf.mxu0 }
 0x157   :  { %v618_v20 = vadd.f32 %v1990_v8, %v617_v52  ;;  %v865_v35 = vadd.f32 %v864_v1, %v696_v28 }
 0x159   :  { %v787_v25 = vadd.f32 %v786_v26, %v618_v20  ;;  %v943_v40 = vmax.f32 %v865_v35, 0.0 }
 0x15a   :  { %v876_v55 = vpop.f32.mrf.mxu3 }
 0x15b   :  { %v912_v31 = vmax.f32 %v787_v25, 0.0 }
 0x15c   :  { %v794_v62 = vpop.f32.mrf.mxu1  ;;  %v697_v33 = vpop.f32.mrf.mxu2 }
 0x15d   :  { %v1540_v29 = vpack.c.bf16 %v912_v31, %v911_v30  ;;  %v698_v37 = vadd.f32 %v1990_v8, %v697_v33 }
 0x15e   :  { %v620_v38 = vpop.f32.mrf.mxu0 }
 0x15f   :  { %1652 = vst [vmem:[%s2377_s3 + $0x58] sm:$0xff] %v1540_v29   ;;  %v867_v39 = vadd.f32 %v866_v0, %v698_v37  ;;  %v621_v43 = vadd.f32 %v1990_v8, %v620_v38 }
 0x161   :  { %v944_v41 = vmax.f32 %v867_v39, 0.0  ;;  %v790_v48 = vadd.f32 %v789_v11, %v621_v43 }
 0x163   :  { %v1620_v9 = vpack.c.bf16 %v944_v41, %v943_v40  ;;  %v913_v51 = vmax.f32 %v790_v48, 0.0 }
 0x164   :  { %v796_v34 = vpop.f32.mrf.mxu1  ;;  %v700_v46 = vpop.f32.mrf.mxu2 }
 0x165   :  { %1668 = vst [vmem:[%s2377_s3 + $0xd8] sm:$0xff] %v1620_v9   ;;  %v701_v24 = vadd.f32 %v1990_v8, %v700_v46  ;;  %v643_v9 = vadd.f32 %v1990_v8, %v2025_v32 }
 0x166   :  { %v622_v47 = vpop.f32.mrf.mxu0 }
 0x167   :  { %v623_v49 = vadd.f32 %v1990_v8, %v622_v47  ;;  %v870_v18 = vadd.f32 %v869_v27, %v701_v24 }
 0x169   :  { %v792_v50 = vadd.f32 %v791_v21, %v623_v49  ;;  %v945_v61 = vmax.f32 %v870_v18, 0.0  ;;  %v879_v21 = vpop.f32.mrf.mxu3 }
 0x16b   :  { %v914_v53 = vmax.f32 %v792_v50, 0.0 }
 0x16c   :  { %v799_v7 = vpop.f32.mrf.mxu1  ;;  %v702_v57 = vpop.f32.mrf.mxu2 }
 0x16d   :  { %v1545_v54 = vpack.c.bf16 %v914_v53, %v913_v51  ;;  %v703_v59 = vadd.f32 %v1990_v8, %v702_v57 }
 0x16e   :  { %v625_v60 = vpop.f32.mrf.mxu0 }
 0x16f   :  { %1653 = vst [vmem:[%s2377_s3 + $0x60] sm:$0xff] %v1545_v54   ;;  %v872_v26 = vadd.f32 %v871_v44, %v703_v59  ;;  %v626_v1 = vadd.f32 %v1990_v8, %v625_v60 }
 0x171   :  { %v946_v63 = vmax.f32 %v872_v26, 0.0  ;;  %v795_v2 = vadd.f32 %v794_v62, %v626_v1  ;;  %v881_v35 = vpop.f32.mrf.mxu3 }
 0x173   :  { %v1625_v3 = vpack.c.bf16 %v946_v63, %v945_v61  ;;  %v915_v14 = vmax.f32 %v795_v2, 0.0 }
 0x174   :  { %v801_v42 = vpop.f32.mrf.mxu1  ;;  %v705_v4 = vpop.f32.mrf.mxu2 }
 0x175   :  { %1669 = vst [vmem:[%s2377_s3 + $0xe0] sm:$0xff] %v1625_v3   ;;  %v706_v13 = vadd.f32 %v1990_v8, %v705_v4 }
 0x176   :  { %v627_v5 = vpop.f32.mrf.mxu0 }
 0x177   :  { %v628_v6 = vadd.f32 %v1990_v8, %v627_v5  ;;  %v875_v17 = vadd.f32 %v874_v58, %v706_v13 }
 0x179   :  { %v797_v11 = vadd.f32 %v796_v34, %v628_v6  ;;  %v947_v22 = vmax.f32 %v875_v17, 0.0  ;;  %v641_v34 = vadd.f32 %v1990_v8, %v1996_v12  ;;  %v884_v53 = vpop.f32.mrf.mxu3 }
 0x17b   :  { %v916_v10 = vmax.f32 %v797_v11, 0.0 }
 0x17c   :  { %v804_v15 = vpop.f32.mrf.mxu1  ;;  %v707_v0 = vpop.f32.mrf.mxu2 }
 0x17d   :  { %v1550_v16 = vpack.c.bf16 %v916_v10, %v915_v14  ;;  %v708_v36 = vadd.f32 %v1990_v8, %v707_v0 }
 0x17e   :  { %v630_v19 = vpop.f32.mrf.mxu0 }
 0x17f   :  { %1654 = vst [vmem:[%s2377_s3 + $0x68] sm:$0xff] %v1550_v16   ;;  %v877_v56 = vadd.f32 %v876_v55, %v708_v36  ;;  %v631_v52 = vadd.f32 %v1990_v8, %v630_v19 }
 0x181   :  { %v948_v23 = vmax.f32 %v877_v56, 0.0  ;;  %v800_v28 = vadd.f32 %v799_v7, %v631_v52  ;;  %v886_v4 = vpop.f32.mrf.mxu3 }
 0x183   :  { %v1630_v20 = vpack.c.bf16 %v948_v23, %v947_v22  ;;  %v917_v29 = vmax.f32 %v800_v28, 0.0 }
 0x184   :  { %v806_v45 = vpop.f32.mrf.mxu1  ;;  %v710_v25 = vpop.f32.mrf.mxu2 }
 0x185   :  { %1670 = vst [vmem:[%s2377_s3 + $0xe8] sm:$0xff] %v1630_v20   ;;  %v711_v62 = vadd.f32 %v1990_v8, %v710_v25 }
 0x186   :  { %v632_v27 = vpop.f32.mrf.mxu0 }
 0x187   :  { %v633_v30 = vadd.f32 %v1990_v8, %v632_v27  ;;  %v880_v40 = vadd.f32 %v879_v21, %v711_v62 }
 0x189   :  { %v802_v31 = vadd.f32 %v801_v42, %v633_v30  ;;  %v949_v46 = vmax.f32 %v880_v40, 0.0 }
 0x18b   :  { %v918_v33 = vmax.f32 %v802_v31, 0.0 }
 0x18c   :  { %v809_v37 = vpop.f32.mrf.mxu1  ;;  %v712_v39 = vpop.f32.mrf.mxu2 }
 0x18d   :  { %v1555_v38 = vpack.c.bf16 %v918_v33, %v917_v29  ;;  %v713_v41 = vadd.f32 %v1990_v8, %v712_v39  ;;  %v810_v47 = vadd.f32 %v809_v37, %v641_v34 }
 0x18e   :  { %v635_v43 = vpop.f32.mrf.mxu0 }
 0x18f   :  { %1655 = vst [vmem:[%s2377_s3 + $0x70] sm:$0xff] %v1555_v38   ;;  %v882_v44 = vadd.f32 %v881_v35, %v713_v41  ;;  %v636_v49 = vadd.f32 %v1990_v8, %v635_v43  ;;  %v921_v54 = vmax.f32 %v810_v47, 0.0 }
 0x191   :  { %v950_v48 = vmax.f32 %v882_v44, 0.0  ;;  %v805_v58 = vadd.f32 %v804_v15, %v636_v49 }
 0x193   :  { %v1635_v24 = vpack.c.bf16 %v950_v48, %v949_v46  ;;  %v919_v26 = vmax.f32 %v805_v58, 0.0 }
 0x194   :  { %v811_v50 = vpop.f32.mrf.mxu1  ;;  %v715_v7 = vpop.f32.mrf.mxu2 }
 0x195   :  { %v812_v51 = vadd.f32 %v811_v50, %v643_v9  ;;  %1671 = vst [vmem:[%s2377_s3 + $0xf0] sm:$0xff] %v1635_v24   ;;  %v716_v60 = vadd.f32 %v1990_v8, %v715_v7 }
 0x196   :  { %v637_v57 = vpop.f32.mrf.mxu0 }
 0x197   :  { %v922_v12 = vmax.f32 %v812_v51, 0.0  ;;  %v638_v32 = vadd.f32 %v1990_v8, %v637_v57  ;;  %v885_v42 = vadd.f32 %v884_v53, %v716_v60 }
 0x199   :  { %v1565_v18 = vpack.c.bf16 %v922_v12, %v921_v54  ;;  %v807_v59 = vadd.f32 %v806_v45, %v638_v32  ;;  %v951_v2 = vmax.f32 %v885_v42, 0.0 }
 0x19b   :  { %1657 = vst [vmem:[%s2377_s3 + $0x80] sm:$0xff] %v1565_v18   ;;  %v920_v61 = vmax.f32 %v807_v59, 0.0 }
 0x19c   :  { %v717_v1 = vpop.f32.mrf.mxu2 }
 0x19d   :  { %v1560_v63 = vpack.c.bf16 %v920_v61, %v919_v26  ;;  %v718_v3 = vadd.f32 %v1990_v8, %v717_v1 }
 0x19f   :  { %1656 = vst [vmem:[%s2377_s3 + $0x78] sm:$0xff] %v1560_v63   ;;  %v887_v5 = vadd.f32 %v886_v4, %v718_v3 }
 0x1a1   :  { %v952_v6 = vmax.f32 %v887_v5, 0.0 }
 0x1a3   :  { %v1640_v55 = vpack.c.bf16 %v952_v6, %v951_v2 }
 0x1a5   :  { %1672 = vst [vmem:[%s2377_s3 + $0xf8] sm:$0xff] %v1640_v55  }

// kernel: _lambda_.54
= control target key start
LH: loop header
LB: loop body
LE: loop exit
PB: predicated region body
PF: predicated region fallthrough
CT: control target
= control target key end

     0   :  { %s494_s1 = inlined_call_operand.vmem [shape: bf16[128,128], index: 1, kind: input, shape index: {}]   ;;  %s495_s2 = inlined_call_operand.vmem [shape: f32[1,128], index: 2, kind: input, shape index: {}]   ;;  %s496_s0 = inlined_call_operand.vmem [shape: bf16[128,128], index: 0, kind: input, shape index: {}]   ;;  %s497_s3 = inlined_call_operand.vmem [shape: bf16[128,128], index: 3, kind: output, shape index: {}]  }
   0x1   :  { %v326_v0 = vld [vmem:[%s494_s1 + $0x38] sm:$0xff]  ;;  %v325_v1 = vld [vmem:[%s494_s1 + $0x30] sm:$0xff]  ;;  %v324_v2 = vld [vmem:[%s494_s1 + $0x28] sm:$0xff] }
   0x2   :  { %146 = vmatpush.bf16.msra.mxu0 %v326_v0  ;;  %374 = vmatpush.bf16.msra.mxu1 %v326_v0  ;;  %v323_v3 = vld [vmem:[%s494_s1 + $0x20] sm:$0xff]  ;;  %v322_v4 = vld [vmem:[%s494_s1 + $0x18] sm:$0xff]  ;;  %v321_v5 = vld [vmem:[%s494_s1 + $0x10] sm:$0xff] }
   0x3   :  { %375 = vmatpush.bf16.msra.mxu2 %v326_v0  ;;  %376 = vmatpush.bf16.msra.mxu3 %v326_v0  ;;  %v320_v6 = vld [vmem:[%s494_s1 + $0x8] sm:$0xff]  ;;  %v319_v7 = vld [vmem:[%s494_s1] sm:$0xff]  ;;  %v313_v9 = vld [vmem:[%s496_s0 + $0x10] sm:$0xff] }
   0x4   :  { %v311_v8 = vld [vmem:[%s496_s0] sm:$0xff]  ;;  %v317_v11 = vld [vmem:[%s496_s0 + $0x30] sm:$0xff]  ;;  %v312_v12 = vld [vmem:[%s496_s0 + $0x8] sm:$0xff] }
   0x5   :  { %v315_v10 = vld [vmem:[%s496_s0 + $0x20] sm:$0xff]  ;;  %v314_v13 = vld [vmem:[%s496_s0 + $0x18] sm:$0xff]  ;;  %v316_v14 = vld [vmem:[%s496_s0 + $0x28] sm:$0xff] }
   0x6   :  { %147 = vmatpush.bf16.msra.mxu0 %v325_v1  ;;  %377 = vmatpush.bf16.msra.mxu1 %v325_v1  ;;  %v318_v15 = vld [vmem:[%s496_s0 + $0x38] sm:$0xff]  ;;  %v398_v18 = vld [vmem:[%s495_s2] ss:$0 sm:$0xff] }
   0x7   :  { %378 = vmatpush.bf16.msra.mxu2 %v325_v1  ;;  %379 = vmatpush.bf16.msra.mxu3 %v325_v1 }
   0xa   :  { %148 = vmatpush.bf16.msra.mxu0 %v324_v2  ;;  %380 = vmatpush.bf16.msra.mxu1 %v324_v2 }
   0xb   :  { %381 = vmatpush.bf16.msra.mxu2 %v324_v2  ;;  %382 = vmatpush.bf16.msra.mxu3 %v324_v2 }
   0xe   :  { %149 = vmatpush.bf16.msra.mxu0 %v323_v3  ;;  %383 = vmatpush.bf16.msra.mxu1 %v323_v3 }
   0xf   :  { %384 = vmatpush.bf16.msra.mxu2 %v323_v3  ;;  %385 = vmatpush.bf16.msra.mxu3 %v323_v3 }
  0x12   :  { %150 = vmatpush.bf16.msra.mxu0 %v322_v4  ;;  %386 = vmatpush.bf16.msra.mxu1 %v322_v4 }
  0x13   :  { %387 = vmatpush.bf16.msra.mxu2 %v322_v4  ;;  %388 = vmatpush.bf16.msra.mxu3 %v322_v4 }
  0x16   :  { %151 = vmatpush.bf16.msra.mxu0 %v321_v5  ;;  %389 = vmatpush.bf16.msra.mxu1 %v321_v5 }
  0x17   :  { %390 = vmatpush.bf16.msra.mxu2 %v321_v5  ;;  %391 = vmatpush.bf16.msra.mxu3 %v321_v5 }
  0x1a   :  { %152 = vmatpush.bf16.msra.mxu0 %v320_v6  ;;  %392 = vmatpush.bf16.msra.mxu1 %v320_v6 }
  0x1b   :  { %393 = vmatpush.bf16.msra.mxu2 %v320_v6  ;;  %394 = vmatpush.bf16.msra.mxu3 %v320_v6 }
  0x1e   :  { %153 = vmatpush.bf16.msra.mxu0 %v319_v7  ;;  %395 = vmatpush.bf16.msra.mxu1 %v319_v7 }
  0x1f   :  { %396 = vmatpush.bf16.msra.mxu2 %v319_v7  ;;  %397 = vmatpush.bf16.msra.mxu3 %v319_v7 }
  0x21   :  { %154 = vmatmul.bf16.vlgmr.msra.gmra.mxu0 %v311_v8  ;;  %164 = vmatmul.bf16.vlgmr.msra.gmra.mxu1 %v313_v9 }
  0x22   :  { %174 = vmatmul.bf16.vlgmr.msra.gmra.mxu2 %v315_v10  ;;  %184 = vmatmul.bf16.vlgmr.msra.gmra.mxu3 %v317_v11 }
  0x31   :  { %159 = vmatmul.bf16.gmra.mxu0 %v312_v12  ;;  %169 = vmatmul.bf16.gmra.mxu1 %v314_v13 }
  0x32   :  { %179 = vmatmul.bf16.gmra.mxu2 %v316_v14  ;;  %189 = vmatmul.bf16.gmra.mxu3 %v318_v15 }
  0x9e   :  { %v155_v16 = vpop.f32.mrf.mxu0  ;;  %v165_v17 = vpop.f32.mrf.mxu1 }
  0x9f   :  { %v156_v19 = vadd.f32 %v398_v18, %v155_v16  ;;  %v166_v20 = vadd.f32 %v398_v18, %v165_v17 }
  0xa1   :  { %v195_v27 = vmax.f32 %v156_v19, 0.0  ;;  %v199_v28 = vmax.f32 %v166_v20, 0.0 }
  0xa5   :  { %v175_v21 = vpop.f32.mrf.mxu2  ;;  %v185_v22 = vpop.f32.mrf.mxu3 }
  0xa6   :  { %v157_v23 = vpop.f32.mrf.mxu0  ;;  %v167_v24 = vpop.f32.mrf.mxu1  ;;  %v176_v33 = vadd.f32 %v398_v18, %v175_v21  ;;  %v186_v34 = vadd.f32 %v398_v18, %v185_v22 }
  0xa7   :  { %v158_v25 = vadd.f32 %v398_v18, %v157_v23  ;;  %v168_v26 = vadd.f32 %v398_v18, %v167_v24 }
  0xa8   :  { %v203_v41 = vmax.f32 %v176_v33, 0.0  ;;  %v207_v42 = vmax.f32 %v186_v34, 0.0 }
  0xa9   :  { %v196_v29 = vmax.f32 %v158_v25, 0.0  ;;  %v200_v30 = vmax.f32 %v168_v26, 0.0 }
  0xab   :  { %v330_v31 = vpack.c.bf16 %v196_v29, %v195_v27  ;;  %v340_v32 = vpack.c.bf16 %v200_v30, %v199_v28 }
  0xad   :  { %331 = vst [vmem:[%s497_s3] sm:$0xff] %v330_v31   ;;  %v177_v35 = vpop.f32.mrf.mxu2  ;;  %v187_v36 = vpop.f32.mrf.mxu3 }
  0xae   :  { %368 = vst [vmem:[%s497_s3 + $0x10] sm:$0xff] %v340_v32   ;;  %v178_v37 = vadd.f32 %v398_v18, %v177_v35  ;;  %v188_v38 = vadd.f32 %v398_v18, %v187_v36  ;;  %v160_v39 = vpop.f32.mrf.mxu0  ;;  %v170_v40 = vpop.f32.mrf.mxu1 }
  0xaf   :  { %v161_v47 = vadd.f32 %v398_v18, %v160_v39  ;;  %v171_v48 = vadd.f32 %v398_v18, %v170_v40 }
  0xb0   :  { %v204_v43 = vmax.f32 %v178_v37, 0.0  ;;  %v208_v44 = vmax.f32 %v188_v38, 0.0 }
  0xb1   :  { %v197_v55 = vmax.f32 %v161_v47, 0.0  ;;  %v201_v56 = vmax.f32 %v171_v48, 0.0 }
  0xb2   :  { %v350_v45 = vpack.c.bf16 %v204_v43, %v203_v41  ;;  %v360_v46 = vpack.c.bf16 %v208_v44, %v207_v42 }
  0xb4   :  { %370 = vst [vmem:[%s497_s3 + $0x20] sm:$0xff] %v350_v45  }
  0xb5   :  { %372 = vst [vmem:[%s497_s3 + $0x30] sm:$0xff] %v360_v46   ;;  %v180_v49 = vpop.f32.mrf.mxu2  ;;  %v190_v50 = vpop.f32.mrf.mxu3 }
  0xb6   :  { %v162_v51 = vpop.f32.mrf.mxu0  ;;  %v172_v52 = vpop.f32.mrf.mxu1  ;;  %v181_v61 = vadd.f32 %v398_v18, %v180_v49  ;;  %v191_v62 = vadd.f32 %v398_v18, %v190_v50 }
  0xb7   :  { %v163_v53 = vadd.f32 %v398_v18, %v162_v51  ;;  %v173_v54 = vadd.f32 %v398_v18, %v172_v52 }
  0xb8   :  { %v205_v3 = vmax.f32 %v181_v61, 0.0  ;;  %v209_v4 = vmax.f32 %v191_v62, 0.0 }
  0xb9   :  { %v198_v57 = vmax.f32 %v163_v53, 0.0  ;;  %v202_v58 = vmax.f32 %v173_v54, 0.0 }
  0xbb   :  { %v335_v59 = vpack.c.bf16 %v198_v57, %v197_v55  ;;  %v345_v60 = vpack.c.bf16 %v202_v58, %v201_v56 }
  0xbd   :  { %367 = vst [vmem:[%s497_s3 + $0x8] sm:$0xff] %v335_v59   ;;  %v182_v63 = vpop.f32.mrf.mxu2  ;;  %v192_v0 = vpop.f32.mrf.mxu3 }
  0xbe   :  { %369 = vst [vmem:[%s497_s3 + $0x18] sm:$0xff] %v345_v60   ;;  %v183_v1 = vadd.f32 %v398_v18, %v182_v63  ;;  %v193_v2 = vadd.f32 %v398_v18, %v192_v0 }
  0xc0   :  { %v206_v5 = vmax.f32 %v183_v1, 0.0  ;;  %v210_v6 = vmax.f32 %v193_v2, 0.0 }
  0xc2   :  { %v355_v7 = vpack.c.bf16 %v206_v5, %v205_v3  ;;  %v365_v8 = vpack.c.bf16 %v210_v6, %v209_v4 }
  0xc4   :  { %371 = vst [vmem:[%s497_s3 + $0x28] sm:$0xff] %v355_v7  }
  0xc5   :  { %373 = vst [vmem:[%s497_s3 + $0x38] sm:$0xff] %v365_v8  }

// kernel: _lambda_.57
= control target key start
LH: loop header
LB: loop body
LE: loop exit
PB: predicated region body
PF: predicated region fallthrough
CT: control target
= control target key end

     0   :  { %s631_s1 = inlined_call_operand.vmem [shape: bf16[128,128], index: 1, kind: input, shape index: {}]   ;;  %s632_s2 = inlined_call_operand.vmem [shape: f32[1,128], index: 2, kind: input, shape index: {}]   ;;  %s633_s0 = inlined_call_operand.vmem [shape: bf16[128,128], index: 0, kind: input, shape index: {}]   ;;  %s634_s3 = inlined_call_operand.vmem [shape: bf16[128,128], index: 3, kind: input, shape index: {}]   ;;  %s635_s4 = inlined_call_operand.vmem [shape: bf16[128,128], index: 4, kind: output, shape index: {}]  }
   0x1   :  { %v377_v0 = vld [vmem:[%s631_s1 + $0x38] sm:$0xff]  ;;  %v376_v1 = vld [vmem:[%s631_s1 + $0x30] sm:$0xff]  ;;  %v375_v2 = vld [vmem:[%s631_s1 + $0x28] sm:$0xff] }
   0x2   :  { %149 = vmatpush.bf16.msra.mxu0 %v377_v0  ;;  %464 = vmatpush.bf16.msra.mxu1 %v377_v0  ;;  %v374_v3 = vld [vmem:[%s631_s1 + $0x20] sm:$0xff]  ;;  %v373_v4 = vld [vmem:[%s631_s1 + $0x18] sm:$0xff]  ;;  %v372_v5 = vld [vmem:[%s631_s1 + $0x10] sm:$0xff] }
   0x3   :  { %465 = vmatpush.bf16.msra.mxu2 %v377_v0  ;;  %466 = vmatpush.bf16.msra.mxu3 %v377_v0  ;;  %v371_v6 = vld [vmem:[%s631_s1 + $0x8] sm:$0xff]  ;;  %v370_v7 = vld [vmem:[%s631_s1] sm:$0xff]  ;;  %v364_v9 = vld [vmem:[%s633_s0 + $0x10] sm:$0xff] }
   0x4   :  { %v362_v8 = vld [vmem:[%s633_s0] sm:$0xff]  ;;  %v368_v11 = vld [vmem:[%s633_s0 + $0x30] sm:$0xff]  ;;  %v363_v12 = vld [vmem:[%s633_s0 + $0x8] sm:$0xff] }
   0x5   :  { %v366_v10 = vld [vmem:[%s633_s0 + $0x20] sm:$0xff]  ;;  %v365_v13 = vld [vmem:[%s633_s0 + $0x18] sm:$0xff]  ;;  %v367_v14 = vld [vmem:[%s633_s0 + $0x28] sm:$0xff] }
   0x6   :  { %150 = vmatpush.bf16.msra.mxu0 %v376_v1  ;;  %467 = vmatpush.bf16.msra.mxu1 %v376_v1  ;;  %v369_v15 = vld [vmem:[%s633_s0 + $0x38] sm:$0xff]  ;;  %v565_v18 = vld [vmem:[%s632_s2] ss:$0 sm:$0xff]  ;;  %v451_v20 = vld [vmem:[%s634_s3 + $0x10] sm:$0xff]  }
   0x7   :  { %468 = vmatpush.bf16.msra.mxu2 %v376_v1  ;;  %469 = vmatpush.bf16.msra.mxu3 %v376_v1  ;;  %v379_v19 = vld [vmem:[%s634_s3] sm:$0xff]   ;;  %v388_v24 = vunpack.c.l.bf16 %v451_v20  ;;  %v389_v28 = vunpack.c.h.bf16 %v451_v20  ;;  %v455_v34 = vld [vmem:[%s634_s3 + $0x30] sm:$0xff]   ;;  %v450_v61 = vld [vmem:[%s634_s3 + $0x8] sm:$0xff]  }
   0x8   :  { %v380_v22 = vunpack.c.l.bf16 %v379_v19  ;;  %v381_v27 = vunpack.c.h.bf16 %v379_v19  ;;  %v453_v33 = vld [vmem:[%s634_s3 + $0x20] sm:$0xff]   ;;  %v404_v42 = vunpack.c.l.bf16 %v455_v34  ;;  %v405_v48 = vunpack.c.h.bf16 %v455_v34  ;;  %v452_v62 = vld [vmem:[%s634_s3 + $0x18] sm:$0xff]  }
   0x9   :  { %v396_v40 = vunpack.c.l.bf16 %v453_v33  ;;  %v397_v47 = vunpack.c.h.bf16 %v453_v33  ;;  %v456_v19 = vld [vmem:[%s634_s3 + $0x38] sm:$0xff]  }
   0xa   :  { %151 = vmatpush.bf16.msra.mxu0 %v375_v2  ;;  %470 = vmatpush.bf16.msra.mxu1 %v375_v2  ;;  %v409_v33 = vunpack.c.h.bf16 %v456_v19 }
   0xb   :  { %471 = vmatpush.bf16.msra.mxu2 %v375_v2  ;;  %472 = vmatpush.bf16.msra.mxu3 %v375_v2 }
   0xe   :  { %152 = vmatpush.bf16.msra.mxu0 %v374_v3  ;;  %473 = vmatpush.bf16.msra.mxu1 %v374_v3 }
   0xf   :  { %474 = vmatpush.bf16.msra.mxu2 %v374_v3  ;;  %475 = vmatpush.bf16.msra.mxu3 %v374_v3 }
  0x12   :  { %153 = vmatpush.bf16.msra.mxu0 %v373_v4  ;;  %476 = vmatpush.bf16.msra.mxu1 %v373_v4 }
  0x13   :  { %477 = vmatpush.bf16.msra.mxu2 %v373_v4  ;;  %478 = vmatpush.bf16.msra.mxu3 %v373_v4  ;;  %v384_v4 = vunpack.c.l.bf16 %v450_v61 }
  0x16   :  { %154 = vmatpush.bf16.msra.mxu0 %v372_v5  ;;  %479 = vmatpush.bf16.msra.mxu1 %v372_v5 }
  0x17   :  { %480 = vmatpush.bf16.msra.mxu2 %v372_v5  ;;  %481 = vmatpush.bf16.msra.mxu3 %v372_v5 }
  0x1a   :  { %155 = vmatpush.bf16.msra.mxu0 %v371_v6  ;;  %482 = vmatpush.bf16.msra.mxu1 %v371_v6 }
  0x1b   :  { %483 = vmatpush.bf16.msra.mxu2 %v371_v6  ;;  %484 = vmatpush.bf16.msra.mxu3 %v371_v6  ;;  %v392_v6 = vunpack.c.l.bf16 %v452_v62 }
  0x1e   :  { %156 = vmatpush.bf16.msra.mxu0 %v370_v7  ;;  %485 = vmatpush.bf16.msra.mxu1 %v370_v7 }
  0x1f   :  { %486 = vmatpush.bf16.msra.mxu2 %v370_v7  ;;  %487 = vmatpush.bf16.msra.mxu3 %v370_v7 }
  0x21   :  { %157 = vmatmul.bf16.vlgmr.msra.gmra.mxu0 %v362_v8  ;;  %167 = vmatmul.bf16.vlgmr.msra.gmra.mxu1 %v364_v9 }
  0x22   :  { %177 = vmatmul.bf16.vlgmr.msra.gmra.mxu2 %v366_v10  ;;  %187 = vmatmul.bf16.vlgmr.msra.gmra.mxu3 %v368_v11  ;;  %v385_v11 = vunpack.c.h.bf16 %v450_v61 }
  0x31   :  { %162 = vmatmul.bf16.gmra.mxu0 %v363_v12  ;;  %172 = vmatmul.bf16.gmra.mxu1 %v365_v13  ;;  %v393_v12 = vunpack.c.h.bf16 %v452_v62 }
  0x32   :  { %182 = vmatmul.bf16.gmra.mxu2 %v367_v14  ;;  %192 = vmatmul.bf16.gmra.mxu3 %v369_v15 }
  0x9e   :  { %v158_v16 = vpop.f32.mrf.mxu0  ;;  %v168_v17 = vpop.f32.mrf.mxu1 }
  0x9f   :  { %v159_v21 = vadd.f32 %v565_v18, %v158_v16  ;;  %v169_v23 = vadd.f32 %v565_v18, %v168_v17  ;;  %v454_v17 = vld [vmem:[%s634_s3 + $0x28] sm:$0xff]  }
  0xa1   :  { %v230_v31 = vadd.f32 %v380_v22, %v159_v21  ;;  %v234_v32 = vadd.f32 %v388_v24, %v169_v23 }
  0xa3   :  { %v246_v43 = vmax.f32 %v230_v31, 0.0  ;;  %v250_v44 = vmax.f32 %v234_v32, 0.0  ;;  %v401_v32 = vunpack.c.h.bf16 %v454_v17 }
  0xa5   :  { %v178_v25 = vpop.f32.mrf.mxu2  ;;  %v188_v26 = vpop.f32.mrf.mxu3 }
  0xa6   :  { %v160_v29 = vpop.f32.mrf.mxu0  ;;  %v170_v30 = vpop.f32.mrf.mxu1  ;;  %v179_v39 = vadd.f32 %v565_v18, %v178_v25  ;;  %v189_v41 = vadd.f32 %v565_v18, %v188_v26  ;;  %v400_v25 = vunpack.c.l.bf16 %v454_v17 }
  0xa7   :  { %v161_v35 = vadd.f32 %v565_v18, %v160_v29  ;;  %v171_v36 = vadd.f32 %v565_v18, %v170_v30 }
  0xa8   :  { %v238_v53 = vadd.f32 %v396_v40, %v179_v39  ;;  %v242_v54 = vadd.f32 %v404_v42, %v189_v41 }
  0xa9   :  { %v231_v37 = vadd.f32 %v381_v27, %v161_v35  ;;  %v235_v38 = vadd.f32 %v389_v28, %v171_v36  ;;  %v408_v27 = vunpack.c.l.bf16 %v456_v19 }
  0xaa   :  { %v254_v63 = vmax.f32 %v238_v53, 0.0  ;;  %v258_v0 = vmax.f32 %v242_v54, 0.0 }
  0xab   :  { %v247_v45 = vmax.f32 %v231_v37, 0.0  ;;  %v251_v46 = vmax.f32 %v235_v38, 0.0 }
  0xad   :  { %v413_v49 = vpack.c.bf16 %v247_v45, %v246_v43  ;;  %v423_v50 = vpack.c.bf16 %v251_v46, %v250_v44  ;;  %v180_v51 = vpop.f32.mrf.mxu2  ;;  %v190_v52 = vpop.f32.mrf.mxu3 }
  0xae   :  { %v181_v55 = vadd.f32 %v565_v18, %v180_v51  ;;  %v191_v56 = vadd.f32 %v565_v18, %v190_v52  ;;  %v163_v57 = vpop.f32.mrf.mxu0  ;;  %v173_v58 = vpop.f32.mrf.mxu1 }
  0xaf   :  { %414 = vst [vmem:[%s635_s4] sm:$0xff] %v413_v49   ;;  %v164_v3 = vadd.f32 %v565_v18, %v163_v57  ;;  %v174_v5 = vadd.f32 %v565_v18, %v173_v58 }
  0xb0   :  { %458 = vst [vmem:[%s635_s4 + $0x10] sm:$0xff] %v423_v50   ;;  %v239_v59 = vadd.f32 %v397_v47, %v181_v55  ;;  %v243_v60 = vadd.f32 %v405_v48, %v191_v56 }
  0xb1   :  { %v232_v15 = vadd.f32 %v384_v4, %v164_v3  ;;  %v236_v16 = vadd.f32 %v392_v6, %v174_v5 }
  0xb2   :  { %v255_v1 = vmax.f32 %v239_v59, 0.0  ;;  %v259_v2 = vmax.f32 %v243_v60, 0.0 }
  0xb3   :  { %v248_v28 = vmax.f32 %v232_v15, 0.0  ;;  %v252_v29 = vmax.f32 %v236_v16, 0.0 }
  0xb4   :  { %v433_v7 = vpack.c.bf16 %v255_v1, %v254_v63  ;;  %v443_v8 = vpack.c.bf16 %v259_v2, %v258_v0 }
  0xb5   :  { %v183_v9 = vpop.f32.mrf.mxu2  ;;  %v193_v10 = vpop.f32.mrf.mxu3 }
  0xb6   :  { %460 = vst [vmem:[%s635_s4 + $0x20] sm:$0xff] %v433_v7   ;;  %v165_v13 = vpop.f32.mrf.mxu0  ;;  %v175_v14 = vpop.f32.mrf.mxu1  ;;  %v184_v24 = vadd.f32 %v565_v18, %v183_v9  ;;  %v194_v26 = vadd.f32 %v565_v18, %v193_v10 }
  0xb7   :  { %462 = vst [vmem:[%s635_s4 + $0x30] sm:$0xff] %v443_v8   ;;  %v166_v20 = vadd.f32 %v565_v18, %v165_v13  ;;  %v176_v21 = vadd.f32 %v565_v18, %v175_v14 }
  0xb8   :  { %v240_v38 = vadd.f32 %v400_v25, %v184_v24  ;;  %v244_v39 = vadd.f32 %v408_v27, %v194_v26 }
  0xb9   :  { %v233_v22 = vadd.f32 %v385_v11, %v166_v20  ;;  %v237_v23 = vadd.f32 %v393_v12, %v176_v21 }
  0xba   :  { %v256_v44 = vmax.f32 %v240_v38, 0.0  ;;  %v260_v45 = vmax.f32 %v244_v39, 0.0 }
  0xbb   :  { %v249_v30 = vmax.f32 %v233_v22, 0.0  ;;  %v253_v31 = vmax.f32 %v237_v23, 0.0 }
  0xbd   :  { %v418_v34 = vpack.c.bf16 %v249_v30, %v248_v28  ;;  %v428_v35 = vpack.c.bf16 %v253_v31, %v252_v29  ;;  %v185_v36 = vpop.f32.mrf.mxu2  ;;  %v195_v37 = vpop.f32.mrf.mxu3 }
  0xbe   :  { %v186_v40 = vadd.f32 %v565_v18, %v185_v36  ;;  %v196_v41 = vadd.f32 %v565_v18, %v195_v37 }
  0xbf   :  { %457 = vst [vmem:[%s635_s4 + $0x8] sm:$0xff] %v418_v34  }
  0xc0   :  { %459 = vst [vmem:[%s635_s4 + $0x18] sm:$0xff] %v428_v35   ;;  %v241_v42 = vadd.f32 %v401_v32, %v186_v40  ;;  %v245_v43 = vadd.f32 %v409_v33, %v196_v41 }
  0xc2   :  { %v257_v46 = vmax.f32 %v241_v42, 0.0  ;;  %v261_v47 = vmax.f32 %v245_v43, 0.0 }
  0xc4   :  { %v438_v48 = vpack.c.bf16 %v257_v46, %v256_v44  ;;  %v448_v49 = vpack.c.bf16 %v261_v47, %v260_v45 }
  0xc6   :  { %461 = vst [vmem:[%s635_s4 + $0x28] sm:$0xff] %v438_v48  }
  0xc7   :  { %463 = vst [vmem:[%s635_s4 + $0x38] sm:$0xff] %v448_v49  }

// kernel: _lambda_.56
= control target key start
LH: loop header
LB: loop body
LE: loop exit
PB: predicated region body
PF: predicated region fallthrough
CT: control target
= control target key end

     0   :  { %s478_s1 = inlined_call_operand.vmem [shape: bf16[128,128], index: 1, kind: input, shape index: {}]   ;;  %s479_s2 = inlined_call_operand.vmem [shape: f32[1,128], index: 2, kind: input, shape index: {}]   ;;  %s480_s0 = inlined_call_operand.vmem [shape: bf16[128,128], index: 0, kind: input, shape index: {}]   ;;  %s481_s3 = inlined_call_operand.vmem [shape: bf16[128,128], index: 3, kind: output, shape index: {}]  }
   0x1   :  { %v310_v0 = vld [vmem:[%s478_s1 + $0x38] sm:$0xff]  ;;  %v309_v1 = vld [vmem:[%s478_s1 + $0x30] sm:$0xff]  ;;  %v308_v2 = vld [vmem:[%s478_s1 + $0x28] sm:$0xff] }
   0x2   :  { %146 = vmatpush.bf16.msra.mxu0 %v310_v0  ;;  %358 = vmatpush.bf16.msra.mxu1 %v310_v0  ;;  %v307_v3 = vld [vmem:[%s478_s1 + $0x20] sm:$0xff]  ;;  %v306_v4 = vld [vmem:[%s478_s1 + $0x18] sm:$0xff]  ;;  %v305_v5 = vld [vmem:[%s478_s1 + $0x10] sm:$0xff] }
   0x3   :  { %359 = vmatpush.bf16.msra.mxu2 %v310_v0  ;;  %360 = vmatpush.bf16.msra.mxu3 %v310_v0  ;;  %v304_v6 = vld [vmem:[%s478_s1 + $0x8] sm:$0xff]  ;;  %v303_v7 = vld [vmem:[%s478_s1] sm:$0xff]  ;;  %v297_v9 = vld [vmem:[%s480_s0 + $0x10] sm:$0xff] }
   0x4   :  { %v295_v8 = vld [vmem:[%s480_s0] sm:$0xff]  ;;  %v301_v11 = vld [vmem:[%s480_s0 + $0x30] sm:$0xff]  ;;  %v296_v12 = vld [vmem:[%s480_s0 + $0x8] sm:$0xff] }
   0x5   :  { %v299_v10 = vld [vmem:[%s480_s0 + $0x20] sm:$0xff]  ;;  %v298_v13 = vld [vmem:[%s480_s0 + $0x18] sm:$0xff]  ;;  %v300_v14 = vld [vmem:[%s480_s0 + $0x28] sm:$0xff] }
   0x6   :  { %147 = vmatpush.bf16.msra.mxu0 %v309_v1  ;;  %361 = vmatpush.bf16.msra.mxu1 %v309_v1  ;;  %v302_v15 = vld [vmem:[%s480_s0 + $0x38] sm:$0xff]  ;;  %v382_v18 = vld [vmem:[%s479_s2] ss:$0 sm:$0xff] }
   0x7   :  { %362 = vmatpush.bf16.msra.mxu2 %v309_v1  ;;  %363 = vmatpush.bf16.msra.mxu3 %v309_v1 }
   0xa   :  { %148 = vmatpush.bf16.msra.mxu0 %v308_v2  ;;  %364 = vmatpush.bf16.msra.mxu1 %v308_v2 }
   0xb   :  { %365 = vmatpush.bf16.msra.mxu2 %v308_v2  ;;  %366 = vmatpush.bf16.msra.mxu3 %v308_v2 }
   0xe   :  { %149 = vmatpush.bf16.msra.mxu0 %v307_v3  ;;  %367 = vmatpush.bf16.msra.mxu1 %v307_v3 }
   0xf   :  { %368 = vmatpush.bf16.msra.mxu2 %v307_v3  ;;  %369 = vmatpush.bf16.msra.mxu3 %v307_v3 }
  0x12   :  { %150 = vmatpush.bf16.msra.mxu0 %v306_v4  ;;  %370 = vmatpush.bf16.msra.mxu1 %v306_v4 }
  0x13   :  { %371 = vmatpush.bf16.msra.mxu2 %v306_v4  ;;  %372 = vmatpush.bf16.msra.mxu3 %v306_v4 }
  0x16   :  { %151 = vmatpush.bf16.msra.mxu0 %v305_v5  ;;  %373 = vmatpush.bf16.msra.mxu1 %v305_v5 }
  0x17   :  { %374 = vmatpush.bf16.msra.mxu2 %v305_v5  ;;  %375 = vmatpush.bf16.msra.mxu3 %v305_v5 }
  0x1a   :  { %152 = vmatpush.bf16.msra.mxu0 %v304_v6  ;;  %376 = vmatpush.bf16.msra.mxu1 %v304_v6 }
  0x1b   :  { %377 = vmatpush.bf16.msra.mxu2 %v304_v6  ;;  %378 = vmatpush.bf16.msra.mxu3 %v304_v6 }
  0x1e   :  { %153 = vmatpush.bf16.msra.mxu0 %v303_v7  ;;  %379 = vmatpush.bf16.msra.mxu1 %v303_v7 }
  0x1f   :  { %380 = vmatpush.bf16.msra.mxu2 %v303_v7  ;;  %381 = vmatpush.bf16.msra.mxu3 %v303_v7 }
  0x21   :  { %154 = vmatmul.bf16.vlgmr.msra.gmra.mxu0 %v295_v8  ;;  %164 = vmatmul.bf16.vlgmr.msra.gmra.mxu1 %v297_v9 }
  0x22   :  { %174 = vmatmul.bf16.vlgmr.msra.gmra.mxu2 %v299_v10  ;;  %184 = vmatmul.bf16.vlgmr.msra.gmra.mxu3 %v301_v11 }
  0x31   :  { %159 = vmatmul.bf16.gmra.mxu0 %v296_v12  ;;  %169 = vmatmul.bf16.gmra.mxu1 %v298_v13 }
  0x32   :  { %179 = vmatmul.bf16.gmra.mxu2 %v300_v14  ;;  %189 = vmatmul.bf16.gmra.mxu3 %v302_v15 }
  0x9e   :  { %v155_v16 = vpop.f32.mrf.mxu0  ;;  %v165_v17 = vpop.f32.mrf.mxu1 }
  0x9f   :  { %v156_v23 = vadd.f32 %v382_v18, %v155_v16  ;;  %v166_v24 = vadd.f32 %v382_v18, %v165_v17 }
  0xa5   :  { %v175_v19 = vpop.f32.mrf.mxu2  ;;  %v185_v20 = vpop.f32.mrf.mxu3 }
  0xa6   :  { %v157_v21 = vpop.f32.mrf.mxu0  ;;  %v167_v22 = vpop.f32.mrf.mxu1  ;;  %v176_v31 = vadd.f32 %v382_v18, %v175_v19  ;;  %v186_v32 = vadd.f32 %v382_v18, %v185_v20 }
  0xa7   :  { %v158_v25 = vadd.f32 %v382_v18, %v157_v21  ;;  %v168_v26 = vadd.f32 %v382_v18, %v167_v22 }
  0xa9   :  { %v314_v27 = vpack.c.bf16 %v158_v25, %v156_v23  ;;  %v324_v28 = vpack.c.bf16 %v168_v26, %v166_v24 }
  0xab   :  { %315 = vst [vmem:[%s481_s3] sm:$0xff] %v314_v27  }
  0xac   :  { %352 = vst [vmem:[%s481_s3 + $0x10] sm:$0xff] %v324_v28  }
  0xad   :  { %v177_v29 = vpop.f32.mrf.mxu2  ;;  %v187_v30 = vpop.f32.mrf.mxu3 }
  0xae   :  { %v178_v33 = vadd.f32 %v382_v18, %v177_v29  ;;  %v188_v34 = vadd.f32 %v382_v18, %v187_v30  ;;  %v160_v35 = vpop.f32.mrf.mxu0  ;;  %v170_v36 = vpop.f32.mrf.mxu1 }
  0xaf   :  { %v161_v43 = vadd.f32 %v382_v18, %v160_v35  ;;  %v171_v44 = vadd.f32 %v382_v18, %v170_v36 }
  0xb0   :  { %v334_v37 = vpack.c.bf16 %v178_v33, %v176_v31  ;;  %v344_v38 = vpack.c.bf16 %v188_v34, %v186_v32 }
  0xb2   :  { %354 = vst [vmem:[%s481_s3 + $0x20] sm:$0xff] %v334_v37  }
  0xb3   :  { %356 = vst [vmem:[%s481_s3 + $0x30] sm:$0xff] %v344_v38  }
  0xb5   :  { %v180_v39 = vpop.f32.mrf.mxu2  ;;  %v190_v40 = vpop.f32.mrf.mxu3 }
  0xb6   :  { %v162_v41 = vpop.f32.mrf.mxu0  ;;  %v172_v42 = vpop.f32.mrf.mxu1  ;;  %v181_v51 = vadd.f32 %v382_v18, %v180_v39  ;;  %v191_v52 = vadd.f32 %v382_v18, %v190_v40 }
  0xb7   :  { %v163_v45 = vadd.f32 %v382_v18, %v162_v41  ;;  %v173_v46 = vadd.f32 %v382_v18, %v172_v42 }
  0xb9   :  { %v319_v47 = vpack.c.bf16 %v163_v45, %v161_v43  ;;  %v329_v48 = vpack.c.bf16 %v173_v46, %v171_v44 }
  0xbb   :  { %351 = vst [vmem:[%s481_s3 + $0x8] sm:$0xff] %v319_v47  }
  0xbc   :  { %353 = vst [vmem:[%s481_s3 + $0x18] sm:$0xff] %v329_v48  }
  0xbd   :  { %v182_v49 = vpop.f32.mrf.mxu2  ;;  %v192_v50 = vpop.f32.mrf.mxu3 }
  0xbe   :  { %v183_v53 = vadd.f32 %v382_v18, %v182_v49  ;;  %v193_v54 = vadd.f32 %v382_v18, %v192_v50 }
  0xc0   :  { %v339_v55 = vpack.c.bf16 %v183_v53, %v181_v51  ;;  %v349_v56 = vpack.c.bf16 %v193_v54, %v191_v52 }
  0xc2   :  { %355 = vst [vmem:[%s481_s3 + $0x28] sm:$0xff] %v339_v55  }
  0xc3   :  { %357 = vst [vmem:[%s481_s3 + $0x38] sm:$0xff] %v349_v56  }

// kernel: _lambda_.55
= control target key start
LH: loop header
LB: loop body
LE: loop exit
PB: predicated region body
PF: predicated region fallthrough
CT: control target
= control target key end

     0   :  { %s1580_s12 = smov 0   ;;  %s1582_s13 = smov 0   ;;  %s1919_s0 = inlined_call_operand.vmem [shape: bf16[128,1152], index: 0, kind: input, shape index: {}]   ;;  %s1920_s1 = inlined_call_operand.vmem [shape: bf16[1152,128], index: 1, kind: input, shape index: {}]   ;;  %s1921_s2 = inlined_call_operand.vmem [shape: f32[1,128], index: 2, kind: input, shape index: {}]   ;;  %s1922_s3 = inlined_call_operand.vmem [shape: bf16[128,128], index: 3, kind: output, shape index: {}]  }
   0x1   :  { %s1584_s14 = smov 0   ;;  %s1586_s15 = smov 0  }
   0x2   :  { %s1588_s16 = smov 0  }
   0x3 LB: > { %s25_s17 = sadd.s32 1, %s1554_s15  ;;  %p48_p1 = scmp.ne.s32.totalorder %s1546_s13, %s1542_s12  ;;  %s1558_s16 = sphi %s1588_s16, %s13_s16   ;;  %s1554_s15 = sphi %s1586_s15, %s1926_s15   ;;  %s1550_s14 = sphi %s1584_s14, %s1925_s14   ;;  %s1546_s13 = sphi %s1582_s13, %s1924_s13   ;;  %s1542_s12 = sphi %s1580_s12, %s1923_s12  }
   0x4   : > { %p26_p0 = scmp.ge.s32.totalorder %s25_s17, 3  ;;  %p49_p2 = scmp.eq.s32.totalorder %s1558_s16, 0 }
   0x5   : > { %s41_s19 = sadd.s32 1, %s1546_s13  ;;  %p1122_p5 = scmp.ge.s32.totalorder %s1558_s16, 3 }
   0x6   : > { %s1928_s17 = smov (%p26_p0, %s25_s17), 0  ;;  %p50_p3 = por %p49_p2, %p48_p1 }
   0x7   : > { %s37_s18 = ssub.s32 %s1554_s15, %s1928_s17  ;;  %162 = sbr.rel (%p1122_p5) target bundleno = 49 (0x31), region = 20 }
   0x8   : > { %p39_p4 = scmp.eq.s32.totalorder %s37_s18, 0 }
   0xa   : > { %s1615_s20 = scalar_select %p39_p4, %s1546_s13, %s41_s19  }
   0xc   : > { %165 = sbr.rel (!%p50_p3) target bundleno = 49 (0x31), region = 24  ;;  %s167_s21 = sand.u32 (%p50_p3), 1, %s1546_s13  }
   0xd   : > { %s1357_s22 = smul.u32 (%p50_p3), 12, %s1554_s15 }
   0xe   : > { %s1477_s23 = smul.u32 (%p50_p3), 192, %s167_s21 }
   0xf   : > { %s1623_s26 = scalar_lea.vmem (%p50_p3), %s1919_s0, %s1357_s22 }
  0x10   : > { %v190_v0 = vld [vmem:[%s1623_s26] sm:$0xff] (%p50_p3)  ;;  %v194_v2 = vld [vmem:[%s1623_s26 + $0x48] sm:$0xff] (%p50_p3)  ;;  %s1628_s27 = scalar_lea.vmem (%p50_p3), [#allocation3], %s1477_s23  ;;  %v198_v4 = vld [vmem:[%s1623_s26 + $0x90] sm:$0xff] (%p50_p3) }
  0x11   : > { %v192_v1 = vld [vmem:[%s1623_s26 + $0x24] sm:$0xff]  ;;  %191 = vst [vmem:[%s1628_s27] sm:$0xff] %v190_v0  ;;  %v196_v3 = vld [vmem:[%s1623_s26 + $0x6c] sm:$0xff]  ;;  %v200_v5 = vld [vmem:[%s1623_s26 + $0xb4] sm:$0xff] }
  0x12   : > { %193 = vst [vmem:[%s1628_s27 + $0xc] sm:$0xff] %v192_v1  ;;  %v202_v6 = vld [vmem:[%s1623_s26 + $0xd8] sm:$0xff]  ;;  %v206_v8 = vld [vmem:[%s1623_s26 + $0x120] sm:$0xff]  ;;  %v210_v10 = vld [vmem:[%s1623_s26 + $0x168] sm:$0xff] }
  0x13   : > { %195 = vst [vmem:[%s1628_s27 + $0x18] sm:$0xff] %v194_v2  ;;  %v204_v7 = vld [vmem:[%s1623_s26 + $0xfc] sm:$0xff]  ;;  %v208_v9 = vld [vmem:[%s1623_s26 + $0x144] sm:$0xff]  ;;  %v212_v11 = vld [vmem:[%s1623_s26 + $0x18c] sm:$0xff] }
  0x14   : > { %197 = vst [vmem:[%s1628_s27 + $0x24] sm:$0xff] %v196_v3  ;;  %v214_v12 = vld [vmem:[%s1623_s26 + $0x1b0] sm:$0xff]  ;;  %v218_v14 = vld [vmem:[%s1623_s26 + $0x1f8] sm:$0xff]  ;;  %v1124_v16 = vld [vmem:[%s1623_s26 + $0x8] sm:$0xf] }
  0x15   : > { %199 = vst [vmem:[%s1628_s27 + $0x30] sm:$0xff] %v198_v4  ;;  %v216_v13 = vld [vmem:[%s1623_s26 + $0x1d4] sm:$0xff]  ;;  %v220_v15 = vld [vmem:[%s1623_s26 + $0x21c] sm:$0xff]  ;;  %v1126_v17 = vld [vmem:[%s1623_s26 + $0x2c] sm:$0xf] }
  0x16   : > { %201 = vst [vmem:[%s1628_s27 + $0x3c] sm:$0xff] %v200_v5  ;;  %v1128_v18 = vld [vmem:[%s1623_s26 + $0x50] sm:$0xf]  ;;  %v1130_v19 = vld [vmem:[%s1623_s26 + $0x74] sm:$0xf] }
  0x17   : > { %203 = vst [vmem:[%s1628_s27 + $0x48] sm:$0xff] %v202_v6  ;;  %v1132_v20 = vld [vmem:[%s1623_s26 + $0x98] sm:$0xf]  ;;  %v1134_v21 = vld [vmem:[%s1623_s26 + $0xbc] sm:$0xf] }
  0x18   : > { %205 = vst [vmem:[%s1628_s27 + $0x54] sm:$0xff] %v204_v7  ;;  %v1136_v22 = vld [vmem:[%s1623_s26 + $0xe0] sm:$0xf]  ;;  %v1138_v23 = vld [vmem:[%s1623_s26 + $0x104] sm:$0xf] }
  0x19   : > { %207 = vst [vmem:[%s1628_s27 + $0x60] sm:$0xff] %v206_v8  ;;  %v1140_v24 = vld [vmem:[%s1623_s26 + $0x128] sm:$0xf]  ;;  %v1142_v25 = vld [vmem:[%s1623_s26 + $0x14c] sm:$0xf] }
  0x1a   : > { %209 = vst [vmem:[%s1628_s27 + $0x6c] sm:$0xff] %v208_v9  ;;  %v1144_v26 = vld [vmem:[%s1623_s26 + $0x170] sm:$0xf]  ;;  %v1146_v27 = vld [vmem:[%s1623_s26 + $0x194] sm:$0xf] }
  0x1b   : > { %211 = vst [vmem:[%s1628_s27 + $0x78] sm:$0xff] %v210_v10  ;;  %v1148_v28 = vld [vmem:[%s1623_s26 + $0x1b8] sm:$0xf]  ;;  %v1150_v29 = vld [vmem:[%s1623_s26 + $0x1dc] sm:$0xf] }
  0x1c   : > { %213 = vst [vmem:[%s1628_s27 + $0x84] sm:$0xff] %v212_v11  ;;  %v1152_v30 = vld [vmem:[%s1623_s26 + $0x200] sm:$0xf]  ;;  %v1154_v31 = vld [vmem:[%s1623_s26 + $0x224] sm:$0xf] }
  0x1d   : > { %215 = vst [vmem:[%s1628_s27 + $0x90] sm:$0xff] %v214_v12 }
  0x1e   : > { %217 = vst [vmem:[%s1628_s27 + $0x9c] sm:$0xff] %v216_v13 }
  0x1f   : > { %219 = vst [vmem:[%s1628_s27 + $0xa8] sm:$0xff] %v218_v14 }
  0x20   : > { %221 = vst [vmem:[%s1628_s27 + $0xb4] sm:$0xff] %v220_v15 }
  0x21   : > { %1125 = vst [vmem:[%s1628_s27 + $0x8] sm:$0xf] %v1124_v16 }
  0x22   : > { %1127 = vst [vmem:[%s1628_s27 + $0x14] sm:$0xf] %v1126_v17 }
  0x23   : > { %1129 = vst [vmem:[%s1628_s27 + $0x20] sm:$0xf] %v1128_v18 }
  0x24   : > { %1131 = vst [vmem:[%s1628_s27 + $0x2c] sm:$0xf] %v1130_v19 }
  0x25   : > { %1133 = vst [vmem:[%s1628_s27 + $0x38] sm:$0xf] %v1132_v20 }
  0x26   : > { %1135 = vst [vmem:[%s1628_s27 + $0x44] sm:$0xf] %v1134_v21 }
  0x27   : > { %1137 = vst [vmem:[%s1628_s27 + $0x50] sm:$0xf] %v1136_v22 }
  0x28   : > { %1139 = vst [vmem:[%s1628_s27 + $0x5c] sm:$0xf] %v1138_v23 }
  0x29   : > { %1141 = vst [vmem:[%s1628_s27 + $0x68] sm:$0xf] %v1140_v24 }
  0x2a   : > { %1143 = vst [vmem:[%s1628_s27 + $0x74] sm:$0xf] %v1142_v25 }
  0x2b   : > { %1145 = vst [vmem:[%s1628_s27 + $0x80] sm:$0xf] %v1144_v26 }
  0x2c   : > { %1147 = vst [vmem:[%s1628_s27 + $0x8c] sm:$0xf] %v1146_v27 }
  0x2d   : > { %1149 = vst [vmem:[%s1628_s27 + $0x98] sm:$0xf] %v1148_v28 }
  0x2e   : > { %1151 = vst [vmem:[%s1628_s27 + $0xa4] sm:$0xf] %v1150_v29 }
  0x2f   : > { %1153 = vst [vmem:[%s1628_s27 + $0xb0] sm:$0xf] %v1152_v30 }
  0x30   : > { %1155 = vst [vmem:[%s1628_s27 + $0xbc] sm:$0xf] %v1154_v31 }
  0x31 PF: > { %p1156_p6 = scmp.ge.s32.totalorder %s1558_s16, 1  ;;  %p278_p7 = scmp.lt.s32.totalorder %s1558_s16, 4 }
  0x33   : > { %p279_p8 = pnand %p1156_p6, %p278_p7 }
  0x34   : > { %s324_s28 = smul.u32 (!%p279_p8), 48, %s1550_s14  ;;  %s285_s6 = sand.u32 (!%p279_p8), 1, %s1542_s12  }
  0x35   : > { %282 = sbr.rel (%p279_p8) target bundleno = 381 (0x17d), region = 54  ;;  %p1350_p10 = scmp.ne.s32.totalorder (!%p279_p8), %s1550_s14, 0 }
  0x36   : > { %p325_p9 = scmp.lt.s32.totalorder (!%p279_p8), %s324_s28, 143  ;;  %s1478_s7 = smul.u32 (!%p279_p8), 192, %s285_s6 }
  0x38   : > { %s1750_s8 = scalar_lea.vmem (!%p279_p8), [#allocation3], %s1478_s7 }
  0x3a   : > { %s1930_s28 = smov (!%p325_p9, %s324_s28), 143  ;;  %v1160_v53 = vld [vmem:[%s1750_s8] sm:$0xf]  ;;  %v1359_v54 = vld [vmem:[%s1750_s8 + $0x8] sm:$0xf0] }
  0x3b   : > { %s1157_s29 = sshll.u32 %s1930_s28, 2  ;;  %v1232_v57 = vld [vmem:[%s1750_s8 + $0x90] sm:$0xf]  ;;  %v1377_v59 = vld [vmem:[%s1750_s8 + $0x98] sm:$0xf0]  ;;  %v1161_v0 = vor.u32 %v1359_v54, %v1160_v53 }
  0x3c   : > { %s1697_s5 = scalar_lea.vmem %s1920_s1, %s1157_s29  ;;  %v1358_v60 = vld [vmem:[%s1750_s8 + $0x4] sm:$0xf]  ;;  %v1162_v61 = vld [vmem:[%s1750_s8 + $0xc] sm:$0xf0]  ;;  %v1168_v62 = vld [vmem:[%s1750_s8 + $0x8] sm:$0xf]  ;;  %v1233_v1 = vor.u32 %v1377_v59, %v1232_v57 }
  0x3d   : > { %v1389_v32 = vld [vmem:[%s1697_s5 + $0x38] sm:$0xff]  ;;  %v1388_v35 = vld [vmem:[%s1697_s5 + $0x30] sm:$0xff]  ;;  %v1387_v38 = vld [vmem:[%s1697_s5 + $0x28] sm:$0xff]  ;;  %v1165_v2 = vor.u32 %v1358_v60, %v1162_v61 }
  0x3e   : > { %v1701_v33 = vld [vmem:[%s1697_s5 + $0x78] sm:$0xff]  ;;  %697 = vmatpush.bf16.msra.mxu0 %v1389_v32  ;;  %1453 = vmatpush.bf16.msra.mxu3 %v1389_v32  ;;  %v1710_v36 = vld [vmem:[%s1697_s5 + $0x70] sm:$0xff]  ;;  %v1395_v39 = vld [vmem:[%s1697_s5 + $0x68] sm:$0xff] }
  0x3f   : > { %v1704_v34 = vld [vmem:[%s1697_s5 + $0xb8] sm:$0xff]  ;;  %746 = vmatpush.bf16.msra.mxu1 %v1701_v33  ;;  %v1713_v37 = vld [vmem:[%s1697_s5 + $0xb0] sm:$0xff]  ;;  %v1720_v40 = vld [vmem:[%s1697_s5 + $0xa8] sm:$0xff] }
  0x40   : > { %795 = vmatpush.bf16.msra.mxu2 %v1704_v34  ;;  %v1386_v41 = vld [vmem:[%s1697_s5 + $0x20] sm:$0xff]  ;;  %v1385_v44 = vld [vmem:[%s1697_s5 + $0x18] sm:$0xff]  ;;  %v1384_v47 = vld [vmem:[%s1697_s5 + $0x10] sm:$0xff] }
  0x41   : > { %v1725_v42 = vld [vmem:[%s1697_s5 + $0x60] sm:$0xff]  ;;  %v1393_v45 = vld [vmem:[%s1697_s5 + $0x58] sm:$0xff]  ;;  %v1392_v48 = vld [vmem:[%s1697_s5 + $0x50] sm:$0xff] }
  0x42   : > { %698 = vmatpush.bf16.msra.mxu0 %v1388_v35  ;;  %1454 = vmatpush.bf16.msra.mxu3 %v1388_v35  ;;  %v1728_v43 = vld [vmem:[%s1697_s5 + $0xa0] sm:$0xff]  ;;  %v1736_v46 = vld [vmem:[%s1697_s5 + $0x98] sm:$0xff]  ;;  %v1742_v49 = vld [vmem:[%s1697_s5 + $0x90] sm:$0xff] }
  0x43   : > { %747 = vmatpush.bf16.msra.mxu1 %v1710_v36  ;;  %v1383_v50 = vld [vmem:[%s1697_s5 + $0x8] sm:$0xff]  ;;  %v1382_v55 = vld [vmem:[%s1697_s5] sm:$0xff]  ;;  %v1360_v63 = vld [vmem:[%s1750_s8 + $0x10] sm:$0xf0] }
  0x44   : > { %796 = vmatpush.bf16.msra.mxu2 %v1713_v37  ;;  %v1391_v51 = vld [vmem:[%s1697_s5 + $0x48] sm:$0xff]  ;;  %v1390_v56 = vld [vmem:[%s1697_s5 + $0x40] sm:$0xff]  ;;  %v1169_v3 = vor.u32 %v1360_v63, %v1168_v62  ;;  %v1172_v4 = vld [vmem:[%s1750_s8 + $0x18] sm:$0xf] }
  0x45   : > { %v1748_v52 = vld [vmem:[%s1697_s5 + $0x88] sm:$0xff]  ;;  %v1758_v58 = vld [vmem:[%s1697_s5 + $0x80] sm:$0xff]  ;;  %v1380_v7 = vld [vmem:[%s1750_s8 + $0xb0] sm:$0xf0] }
  0x46   : > { %699 = vmatpush.bf16.msra.mxu0 %v1387_v38  ;;  %1455 = vmatpush.bf16.msra.mxu3 %v1387_v38  ;;  %v1362_v5 = vld [vmem:[%s1750_s8 + $0x20] sm:$0xf0]  ;;  %v1244_v6 = vld [vmem:[%s1750_s8 + $0xa8] sm:$0xf]  ;;  %v1361_v8 = vld [vmem:[%s1750_s8 + $0x1c] sm:$0xf] }
  0x47   : > { %748 = vmatpush.bf16.msra.mxu1 %v1395_v39  ;;  %v1174_v9 = vld [vmem:[%s1750_s8 + $0x24] sm:$0xf0]  ;;  %v1180_v10 = vld [vmem:[%s1750_s8 + $0x20] sm:$0xf]  ;;  %v1363_v11 = vld [vmem:[%s1750_s8 + $0x28] sm:$0xf0]  ;;  %v1173_v12 = vor.u32 %v1362_v5, %v1172_v4  ;;  %v1245_v13 = vor.u32 %v1380_v7, %v1244_v6 }
  0x48   : > { %797 = vmatpush.bf16.msra.mxu2 %v1720_v40  ;;  %v1177_v14 = vor.u32 %v1361_v8, %v1174_v9  ;;  %v1181_v15 = vor.u32 %v1363_v11, %v1180_v10  ;;  %v1184_v16 = vld [vmem:[%s1750_s8 + $0x30] sm:$0xf]  ;;  %v1365_v17 = vld [vmem:[%s1750_s8 + $0x38] sm:$0xf0]  ;;  %v1364_v18 = vld [vmem:[%s1750_s8 + $0x34] sm:$0xf] }
  0x49   : > { %v1376_v19 = vld [vmem:[%s1750_s8 + $0x94] sm:$0xf]  ;;  %v1234_v20 = vld [vmem:[%s1750_s8 + $0x9c] sm:$0xf0]  ;;  %v1192_v22 = vld [vmem:[%s1750_s8 + $0x38] sm:$0xf]  ;;  %v1185_v24 = vor.u32 %v1365_v17, %v1184_v16 }
  0x4a   : > { %700 = vmatpush.bf16.msra.mxu0 %v1386_v41  ;;  %1456 = vmatpush.bf16.msra.mxu3 %v1386_v41  ;;  %v1186_v21 = vld [vmem:[%s1750_s8 + $0x3c] sm:$0xf0]  ;;  %v1366_v23 = vld [vmem:[%s1750_s8 + $0x40] sm:$0xf0]  ;;  %v1237_v25 = vor.u32 %v1376_v19, %v1234_v20  ;;  %v1196_v28 = vld [vmem:[%s1750_s8 + $0x48] sm:$0xf] }
  0x4b   : > { %749 = vmatpush.bf16.msra.mxu1 %v1725_v42  ;;  %v1189_v26 = vor.u32 %v1364_v18, %v1186_v21  ;;  %v1193_v27 = vor.u32 %v1366_v23, %v1192_v22  ;;  %v1368_v29 = vld [vmem:[%s1750_s8 + $0x50] sm:$0xf0]  ;;  %v1367_v30 = vld [vmem:[%s1750_s8 + $0x4c] sm:$0xf]  ;;  %v1246_v32 = vld [vmem:[%s1750_s8 + $0xb4] sm:$0xf0] }
  0x4c   : > { %798 = vmatpush.bf16.msra.mxu2 %v1728_v43  ;;  %v1379_v31 = vld [vmem:[%s1750_s8 + $0xac] sm:$0xf]  ;;  %v1369_v35 = vld [vmem:[%s1750_s8 + $0x58] sm:$0xf0]  ;;  %v1374_v53 = vld [vmem:[%s1750_s8 + $0x80] sm:$0xf0] }
  0x4d   : > { %v1249_v38 = vor.u32 %v1379_v31, %v1246_v32  ;;  %v1371_v41 = vld [vmem:[%s1750_s8 + $0x68] sm:$0xf0]  ;;  %v1373_v54 = vld [vmem:[%s1750_s8 + $0x7c] sm:$0xf]  ;;  %v1222_v57 = vld [vmem:[%s1750_s8 + $0x84] sm:$0xf0] }
  0x4e   : > { %701 = vmatpush.bf16.msra.mxu0 %v1385_v44  ;;  %1457 = vmatpush.bf16.msra.mxu3 %v1385_v44  ;;  %v1378_v44 = vld [vmem:[%s1750_s8 + $0xa0] sm:$0xf0]  ;;  %v1375_v59 = vld [vmem:[%s1750_s8 + $0x88] sm:$0xf0]  ;;  %v1225_v62 = vor.u32 %v1373_v54, %v1222_v57 }
  0x4f   : > { %750 = vmatpush.bf16.msra.mxu1 %v1393_v45 }
  0x50   : > { %799 = vmatpush.bf16.msra.mxu2 %v1736_v46 }
  0x52   : > { %702 = vmatpush.bf16.msra.mxu0 %v1384_v47  ;;  %1458 = vmatpush.bf16.msra.mxu3 %v1384_v47  ;;  %v1372_v47 = vld [vmem:[%s1750_s8 + $0x70] sm:$0xf0] }
  0x53   : > { %751 = vmatpush.bf16.msra.mxu1 %v1392_v48 }
  0x54   : > { %800 = vmatpush.bf16.msra.mxu2 %v1742_v49 }
  0x56   : > { %703 = vmatpush.bf16.msra.mxu0 %v1383_v50  ;;  %1459 = vmatpush.bf16.msra.mxu3 %v1383_v50 }
  0x57   : > { %752 = vmatpush.bf16.msra.mxu1 %v1391_v51 }
  0x58   : > { %801 = vmatpush.bf16.msra.mxu2 %v1748_v52 }
  0x5a   : > { %704 = vmatpush.bf16.msra.mxu0 %v1382_v55  ;;  %1460 = vmatpush.bf16.msra.mxu3 %v1382_v55  ;;  %v1252_v55 = vld [vmem:[%s1750_s8 + $0xb0] sm:$0xf] }
  0x5b   : > { %753 = vmatpush.bf16.msra.mxu1 %v1390_v56 }
  0x5c   : > { %802 = vmatpush.bf16.msra.mxu2 %v1758_v58 }
  0x5d   : > { %705 = vmatmul.bf16.vlgmr.msra.gmra.mxu0 %v1161_v0  ;;  %735 = vmatmul.bf16.vlgmr.msra.gmra.mxu3 %v1233_v1 }
  0x5e   : > { %1461 = vmatpush.bf16.msrb.mxu3 %v1701_v33  ;;  %754 = vmatmul.bf16.vlgmr.msra.gmra.mxu1 %v1165_v2  ;;  %v1198_v33 = vld [vmem:[%s1750_s8 + $0x54] sm:$0xf0] }
  0x5f   : > { %803 = vmatmul.bf16.vlgmr.msra.gmra.mxu2 %v1169_v3 }
  0x62   : > { %1462 = vmatpush.bf16.msrb.mxu3 %v1710_v36  ;;  %v1197_v36 = vor.u32 %v1368_v29, %v1196_v28 }
  0x66   : > { %1463 = vmatpush.bf16.msrb.mxu3 %v1395_v39 }
  0x6a   : > { %1464 = vmatpush.bf16.msrb.mxu3 %v1725_v42  ;;  %v1370_v42 = vld [vmem:[%s1750_s8 + $0x64] sm:$0xf] }
  0x6d   : > { %710 = vmatmul.bf16.gmra.mxu0 %v1173_v12  ;;  %740 = vmatmul.bf16.gmra.mxu3 %v1245_v13 }
  0x6e   : > { %1465 = vmatpush.bf16.msrb.mxu3 %v1393_v45  ;;  %759 = vmatmul.bf16.gmra.mxu1 %v1177_v14  ;;  %v1210_v45 = vld [vmem:[%s1750_s8 + $0x6c] sm:$0xf0] }
  0x6f   : > { %808 = vmatmul.bf16.gmra.mxu2 %v1181_v15  ;;  %v1213_v50 = vor.u32 %v1370_v42, %v1210_v45 }
  0x72   : > { %1466 = vmatpush.bf16.msrb.mxu3 %v1392_v48 }
  0x76   : > { %1467 = vmatpush.bf16.msrb.mxu3 %v1391_v51 }
  0x7a   : > { %1468 = vmatpush.bf16.msrb.mxu3 %v1390_v56  ;;  %v1381_v56 = vld [vmem:[%s1750_s8 + $0xb8] sm:$0xf0] }
  0x7b   : > { %v1253_v61 = vor.u32 %v1381_v56, %v1252_v55 }
  0x7d   : > { %715 = vmatmul.bf16.gmra.mxu0 %v1185_v24  ;;  %784 = vmatmul.bf16.vlgmr.msrb.gmra.mxu3 %v1237_v25 }
  0x7e   : > { %1469 = vmatpush.bf16.msra.mxu3 %v1704_v34  ;;  %764 = vmatmul.bf16.gmra.mxu1 %v1189_v26  ;;  %v1204_v34 = vld [vmem:[%s1750_s8 + $0x50] sm:$0xf] }
  0x7f   : > { %813 = vmatmul.bf16.gmra.mxu2 %v1193_v27  ;;  %v1205_v39 = vor.u32 %v1369_v35, %v1204_v34 }
  0x82   : > { %1470 = vmatpush.bf16.msra.mxu3 %v1713_v37  ;;  %v1201_v37 = vor.u32 %v1367_v30, %v1198_v33 }
  0x86   : > { %1471 = vmatpush.bf16.msra.mxu3 %v1720_v40  ;;  %v1208_v40 = vld [vmem:[%s1750_s8 + $0x60] sm:$0xf] }
  0x87   : > { %v1209_v48 = vor.u32 %v1371_v41, %v1208_v40 }
  0x8a   : > { %1472 = vmatpush.bf16.msra.mxu3 %v1728_v43  ;;  %v1240_v43 = vld [vmem:[%s1750_s8 + $0x98] sm:$0xf] }
  0x8d   : > { %720 = vmatmul.bf16.gmra.mxu0 %v1197_v36  ;;  %789 = vmatmul.bf16.gmra.mxu3 %v1249_v38 }
  0x8e   : > { %1473 = vmatpush.bf16.msra.mxu3 %v1736_v46  ;;  %769 = vmatmul.bf16.gmra.mxu1 %v1201_v37  ;;  %v1216_v46 = vld [vmem:[%s1750_s8 + $0x68] sm:$0xf] }
  0x8f   : > { %818 = vmatmul.bf16.gmra.mxu2 %v1205_v39  ;;  %v1217_v51 = vor.u32 %v1372_v47, %v1216_v46 }
  0x92   : > { %1474 = vmatpush.bf16.msra.mxu3 %v1742_v49  ;;  %v1241_v49 = vor.u32 %v1378_v44, %v1240_v43 }
  0x96   : > { %1475 = vmatpush.bf16.msra.mxu3 %v1748_v52  ;;  %v1220_v52 = vld [vmem:[%s1750_s8 + $0x78] sm:$0xf] }
  0x97   : > { %v1221_v60 = vor.u32 %v1374_v53, %v1220_v52 }
  0x9a   : > { %1476 = vmatpush.bf16.msra.mxu3 %v1758_v58  ;;  %v1228_v58 = vld [vmem:[%s1750_s8 + $0x80] sm:$0xf] }
  0x9b   : > { %v1229_v63 = vor.u32 %v1375_v59, %v1228_v58 }
  0x9d   : > { %725 = vmatmul.bf16.gmra.mxu0 %v1209_v48  ;;  %833 = vmatmul.bf16.vlgmr.msra.gmra.mxu3 %v1241_v49 }
  0x9e   : > { %774 = vmatmul.bf16.gmra.mxu1 %v1213_v50 }
  0x9f   : > { %823 = vmatmul.bf16.gmra.mxu2 %v1217_v51 }
  0xad   : > { %730 = vmatmul.bf16.gmra.mxu0 %v1221_v60  ;;  %838 = vmatmul.bf16.gmra.mxu3 %v1253_v61 }
  0xae   : > { %779 = vmatmul.bf16.gmra.mxu1 %v1225_v62 }
  0xaf   : > { %828 = vmatmul.bf16.gmra.mxu2 %v1229_v63 }
  0xda   : > { %v706_v0 = vpop.f32.mrf.mxu0 }
  0xdb   : > { %v755_v1 = vpop.f32.mrf.mxu1 }
  0xdc   : > { %v756_v2 = vadd.f32 %v755_v1, %v706_v0 }
  0xe0   : > { %v736_v3 = vpop.f32.mrf.mxu3 }
  0xe2   : > { %v804_v4 = vpop.f32.mrf.mxu2  ;;  %v708_v6 = vpop.f32.mrf.mxu0 }
  0xe3   : > { %v1818_v5 = vadd.f32 %v804_v4, %v756_v2  ;;  %v757_v7 = vpop.f32.mrf.mxu1 }
  0xe4   : > { %v758_v8 = vadd.f32 %v757_v7, %v708_v6 }
  0xe8   : > { %v738_v9 = vpop.f32.mrf.mxu3 }
  0xea   : > { %v806_v10 = vpop.f32.mrf.mxu2  ;;  %v711_v12 = vpop.f32.mrf.mxu0 }
  0xeb   : > { %v1820_v11 = vadd.f32 %v806_v10, %v758_v8  ;;  %v760_v13 = vpop.f32.mrf.mxu1 }
  0xec   : > { %v761_v14 = vadd.f32 %v760_v13, %v711_v12 }
  0xf0   : > { %v741_v15 = vpop.f32.mrf.mxu3 }
  0xf2   : > { %v809_v16 = vpop.f32.mrf.mxu2  ;;  %v713_v18 = vpop.f32.mrf.mxu0 }
  0xf3   : > { %v1822_v17 = vadd.f32 %v809_v16, %v761_v14  ;;  %v762_v19 = vpop.f32.mrf.mxu1 }
  0xf4   : > { %v763_v20 = vadd.f32 %v762_v19, %v713_v18 }
  0xf8   : > { %v743_v21 = vpop.f32.mrf.mxu3 }
  0xfa   : > { %v811_v22 = vpop.f32.mrf.mxu2  ;;  %v716_v24 = vpop.f32.mrf.mxu0 }
  0xfb   : > { %v1824_v23 = vadd.f32 %v811_v22, %v763_v20  ;;  %v765_v25 = vpop.f32.mrf.mxu1 }
  0xfc   : > { %v766_v26 = vadd.f32 %v765_v25, %v716_v24 }
 0x100   : > { %v785_v27 = vpop.f32.mrf.mxu3 }
 0x101   : > { %v786_v51 = vadd.f32 %v785_v27, %v736_v3 }
 0x102   : > { %v814_v28 = vpop.f32.mrf.mxu2  ;;  %v718_v30 = vpop.f32.mrf.mxu0 }
 0x103   : > { %v1826_v29 = vadd.f32 %v814_v28, %v766_v26  ;;  %v767_v31 = vpop.f32.mrf.mxu1 }
 0x104   : > { %v768_v32 = vadd.f32 %v767_v31, %v718_v30 }
 0x108   : > { %v787_v33 = vpop.f32.mrf.mxu3 }
 0x109   : > { %v788_v58 = vadd.f32 %v787_v33, %v738_v9 }
 0x10a   : > { %v816_v34 = vpop.f32.mrf.mxu2  ;;  %v721_v36 = vpop.f32.mrf.mxu0 }
 0x10b   : > { %v1828_v35 = vadd.f32 %v816_v34, %v768_v32  ;;  %v770_v38 = vpop.f32.mrf.mxu1 }
 0x10c   : > { %v771_v37 = vadd.f32 %v770_v38, %v721_v36 }
 0x110   : > { %v790_v39 = vpop.f32.mrf.mxu3 }
 0x111   : > { %v791_v3 = vadd.f32 %v790_v39, %v741_v15 }
 0x112   : > { %v819_v40 = vpop.f32.mrf.mxu2  ;;  %v723_v42 = vpop.f32.mrf.mxu0 }
 0x113   : > { %v1830_v41 = vadd.f32 %v819_v40, %v771_v37  ;;  %v772_v43 = vpop.f32.mrf.mxu1 }
 0x114   : > { %v773_v44 = vadd.f32 %v772_v43, %v723_v42 }
 0x118   : > { %v792_v45 = vpop.f32.mrf.mxu3 }
 0x119   : > { %v793_v13 = vadd.f32 %v792_v45, %v743_v21 }
 0x11a   : > { %v821_v46 = vpop.f32.mrf.mxu2  ;;  %v726_v48 = vpop.f32.mrf.mxu0 }
 0x11b   : > { %v1832_v47 = vadd.f32 %v821_v46, %v773_v44  ;;  %v775_v49 = vpop.f32.mrf.mxu1 }
 0x11c   : > { %v776_v50 = vadd.f32 %v775_v49, %v726_v48 }
 0x120   : > { %v834_v52 = vpop.f32.mrf.mxu3 }
 0x121   : > { %v1834_v54 = vadd.f32 %v834_v52, %v786_v51 }
 0x122   : > { %v824_v53 = vpop.f32.mrf.mxu2  ;;  %v728_v56 = vpop.f32.mrf.mxu0 }
 0x123   : > { %v1836_v55 = vadd.f32 %v824_v53, %v776_v50  ;;  %v777_v57 = vpop.f32.mrf.mxu1 }
 0x124   : > { %v778_v59 = vadd.f32 %v777_v57, %v728_v56 }
 0x128   : > { %v836_v60 = vpop.f32.mrf.mxu3 }
 0x129   : > { %v1838_v62 = vadd.f32 %v836_v60, %v788_v58 }
 0x12a   : > { %v826_v61 = vpop.f32.mrf.mxu2  ;;  %v731_v0 = vpop.f32.mrf.mxu0 }
 0x12b   : > { %v1840_v63 = vadd.f32 %v826_v61, %v778_v59  ;;  %v780_v1 = vpop.f32.mrf.mxu1 }
 0x12c   : > { %v781_v2 = vadd.f32 %v780_v1, %v731_v0 }
 0x130   : > { %v839_v4 = vpop.f32.mrf.mxu3 }
 0x131   : > { %v1842_v7 = vadd.f32 %v839_v4, %v791_v3 }
 0x132   : > { %v829_v6 = vpop.f32.mrf.mxu2  ;;  %v733_v10 = vpop.f32.mrf.mxu0 }
 0x133   : > { %v830_v8 = vadd.f32 %v829_v6, %v781_v2  ;;  %v782_v12 = vpop.f32.mrf.mxu1 }
 0x134   : > { %v783_v9 = vadd.f32 %v782_v12, %v733_v10 }
 0x137   : > { %847 = sbr.rel (%p1350_p10) target bundleno = 332 (0x14c), region = 62 }
 0x138   : > { %v841_v14 = vpop.f32.mrf.mxu3 }
 0x139   : > { %v1844_v18 = vadd.f32 %v841_v14, %v793_v13 }
 0x13a   : > { %v831_v16 = vpop.f32.mrf.mxu2 }
 0x13b   : > { %v832_v19 = vadd.f32 %v831_v16, %v783_v9 }
 0x13c   : > { %848 = vst [vmem:[#allocation2 + $0x30] sm:$0xff] %v1818_v5 }
 0x13d   : > { %849 = vst [vmem:[#allocation2] sm:$0xff] %v1820_v11 }
 0x13e   : > { %850 = vst [vmem:[#allocation2 + $0x58] sm:$0xff] %v1822_v17 }
 0x13f   : > { %851 = vst [vmem:[#allocation2 + $0x18] sm:$0xff] %v1824_v23 }
 0x140   : > { %852 = vst [vmem:[#allocation2 + $0x50] sm:$0xff] %v1826_v29 }
 0x141   : > { %853 = vst [vmem:[#allocation2 + $0x68] sm:$0xff] %v1828_v35 }
 0x142   : > { %854 = vst [vmem:[#allocation2 + $0x8] sm:$0xff] %v1830_v41 }
 0x143   : > { %855 = vst [vmem:[#allocation2 + $0x48] sm:$0xff] %v1832_v47 }
 0x144   : > { %856 = vst [vmem:[#allocation2 + $0x40] sm:$0xff] %v1836_v55 }
 0x145   : > { %857 = vst [vmem:[#allocation2 + $0x20] sm:$0xff] %v1840_v63 }
 0x146   : > { %858 = vst [vmem:[#allocation2 + $0x10] sm:$0xff] %v830_v8 }
 0x147   : > { %859 = vst [vmem:[#allocation2 + $0x38] sm:$0xff] %v832_v19 }
 0x148   : > { %860 = vst [vmem:[#allocation2 + $0x60] sm:$0xff] %v1834_v54 }
 0x149   : > { %861 = vst [vmem:[#allocation2 + $0x70] sm:$0xff] %v1838_v62 }
 0x14a   : > { %862 = vst [vmem:[#allocation2 + $0x78] sm:$0xff] %v1842_v7 }
 0x14b   : > { %863 = vst [vmem:[#allocation2 + $0x28] sm:$0xff] %v1844_v18 }
 0x14c PF: > { %p1351_p11 = scmp.le.s32.totalorder %s1550_s14, 0 }
 0x14e   : > { %867 = sbr.rel (%p1351_p11) target bundleno = 358 (0x166), region = 66 }
 0x153   : > { %v868_v15 = vld [vmem:[#allocation2 + $0x30] sm:$0xff]  ;;  %v869_v20 = vld [vmem:[#allocation2] sm:$0xff]  ;;  %v870_v21 = vld [vmem:[#allocation2 + $0x58] sm:$0xff] }
 0x154   : > { %v884_v22 = vadd.f32 %v868_v15, %v1818_v5  ;;  %v885_v24 = vadd.f32 %v869_v20, %v1820_v11  ;;  %v886_v25 = vadd.f32 %v870_v21, %v1822_v17  ;;  %v871_v26 = vld [vmem:[#allocation2 + $0x18] sm:$0xff]  ;;  %v872_v27 = vld [vmem:[#allocation2 + $0x50] sm:$0xff]  ;;  %v873_v28 = vld [vmem:[#allocation2 + $0x68] sm:$0xff] }
 0x155   : > { %v887_v30 = vadd.f32 %v871_v26, %v1824_v23  ;;  %v874_v31 = vld [vmem:[#allocation2 + $0x8] sm:$0xff]  ;;  %v888_v32 = vadd.f32 %v872_v27, %v1826_v29  ;;  %v889_v34 = vadd.f32 %v873_v28, %v1828_v35  ;;  %v876_v36 = vld [vmem:[#allocation2 + $0x40] sm:$0xff]  ;;  %v878_v38 = vld [vmem:[#allocation2 + $0x10] sm:$0xff] }
 0x156   : > { %900 = vst [vmem:[#allocation2 + $0x30] sm:$0xff] %v884_v22  ;;  %v875_v33 = vld [vmem:[#allocation2 + $0x48] sm:$0xff]  ;;  %v890_v5 = vadd.f32 %v874_v31, %v1830_v41  ;;  %v877_v11 = vld [vmem:[#allocation2 + $0x20] sm:$0xff]  ;;  %v892_v23 = vadd.f32 %v876_v36, %v1836_v55  ;;  %v879_v37 = vld [vmem:[#allocation2 + $0x38] sm:$0xff]  ;;  %v894_v40 = vadd.f32 %v878_v38, %v830_v8 }
 0x157   : > { %901 = vst [vmem:[#allocation2] sm:$0xff] %v885_v24  ;;  %v891_v17 = vadd.f32 %v875_v33, %v1832_v47  ;;  %v893_v29 = vadd.f32 %v877_v11, %v1840_v63  ;;  %v880_v39 = vld [vmem:[#allocation2 + $0x60] sm:$0xff]  ;;  %v881_v35 = vld [vmem:[#allocation2 + $0x70] sm:$0xff]  ;;  %v895_v42 = vadd.f32 %v879_v37, %v832_v19  ;;  %v882_v43 = vld [vmem:[#allocation2 + $0x78] sm:$0xff] }
 0x158   : > { %902 = vst [vmem:[#allocation2 + $0x58] sm:$0xff] %v886_v25  ;;  %v896_v41 = vadd.f32 %v880_v39, %v1834_v54  ;;  %v883_v44 = vld [vmem:[#allocation2 + $0x28] sm:$0xff]  ;;  %v897_v45 = vadd.f32 %v881_v35, %v1838_v62  ;;  %v898_v46 = vadd.f32 %v882_v43, %v1842_v7 }
 0x159   : > { %903 = vst [vmem:[#allocation2 + $0x18] sm:$0xff] %v887_v30  ;;  %v899_v47 = vadd.f32 %v883_v44, %v1844_v18 }
 0x15a   : > { %904 = vst [vmem:[#allocation2 + $0x50] sm:$0xff] %v888_v32 }
 0x15b   : > { %905 = vst [vmem:[#allocation2 + $0x68] sm:$0xff] %v889_v34 }
 0x15c   : > { %906 = vst [vmem:[#allocation2 + $0x8] sm:$0xff] %v890_v5 }
 0x15d   : > { %907 = vst [vmem:[#allocation2 + $0x48] sm:$0xff] %v891_v17 }
 0x15e   : > { %908 = vst [vmem:[#allocation2 + $0x40] sm:$0xff] %v892_v23 }
 0x15f   : > { %909 = vst [vmem:[#allocation2 + $0x20] sm:$0xff] %v893_v29 }
 0x160   : > { %910 = vst [vmem:[#allocation2 + $0x10] sm:$0xff] %v894_v40 }
 0x161   : > { %911 = vst [vmem:[#allocation2 + $0x38] sm:$0xff] %v895_v42 }
 0x162   : > { %912 = vst [vmem:[#allocation2 + $0x60] sm:$0xff] %v896_v41 }
 0x163   : > { %913 = vst [vmem:[#allocation2 + $0x70] sm:$0xff] %v897_v45 }
 0x164   : > { %914 = vst [vmem:[#allocation2 + $0x78] sm:$0xff] %v898_v46 }
 0x165   : > { %915 = vst [vmem:[#allocation2 + $0x28] sm:$0xff] %v899_v47 }
 0x166 PF: > { %p1352_p12 = scmp.ne.s32.totalorder %s1550_s14, 2 }
 0x168   : > { %919 = sbr.rel (%p1352_p12) target bundleno = 381 (0x17d), region = 70 }
 0x16d   : > { %v920_v48 = vld [vmem:[#allocation2 + $0x30] sm:$0xff]  ;;  %v921_v49 = vld [vmem:[#allocation2] sm:$0xff]  ;;  %v922_v51 = vld [vmem:[#allocation2 + $0x58] sm:$0xff] }
 0x16e   : > { %v1519_v50 = vld [vmem:[%s1921_s2] ss:$0 sm:$0xff]  ;;  %v923_v52 = vld [vmem:[#allocation2 + $0x18] sm:$0xff]  ;;  %v924_v53 = vld [vmem:[#allocation2 + $0x50] sm:$0xff] }
 0x16f   : > { %v925_v54 = vld [vmem:[#allocation2 + $0x68] sm:$0xff]  ;;  %v940_v56 = vadd.f32 %v1519_v50, %v920_v48  ;;  %v941_v57 = vadd.f32 %v1519_v50, %v921_v49  ;;  %v942_v58 = vadd.f32 %v1519_v50, %v922_v51  ;;  %v943_v59 = vadd.f32 %v1519_v50, %v923_v52  ;;  %v928_v1 = vld [vmem:[#allocation2 + $0x40] sm:$0xff]  ;;  %v930_v8 = vld [vmem:[#allocation2 + $0x10] sm:$0xff] }
 0x170   : > { %v926_v55 = vld [vmem:[#allocation2 + $0x8] sm:$0xff]  ;;  %v944_v61 = vadd.f32 %v1519_v50, %v924_v53  ;;  %v945_v62 = vadd.f32 %v1519_v50, %v925_v54  ;;  %v929_v2 = vld [vmem:[#allocation2 + $0x20] sm:$0xff]  ;;  %v931_v10 = vld [vmem:[#allocation2 + $0x38] sm:$0xff]  ;;  %v948_v20 = vadd.f32 %v1519_v50, %v928_v1  ;;  %v950_v27 = vadd.f32 %v1519_v50, %v930_v8 }
 0x171   : > { %v927_v60 = vld [vmem:[#allocation2 + $0x48] sm:$0xff]  ;;  %v946_v63 = vadd.f32 %v1519_v50, %v926_v55  ;;  %v956_v3 = vmax.f32 %v940_v56, 0.0  ;;  %v957_v4 = vmax.f32 %v941_v57, 0.0  ;;  %v958_v6 = vmax.f32 %v942_v58, 0.0  ;;  %v932_v16 = vld [vmem:[#allocation2 + $0x60] sm:$0xff]  ;;  %v933_v18 = vld [vmem:[#allocation2 + $0x70] sm:$0xff] }
 0x172   : > { %v947_v0 = vadd.f32 %v1519_v50, %v927_v60  ;;  %v959_v7 = vmax.f32 %v943_v59, 0.0  ;;  %v960_v12 = vmax.f32 %v944_v61, 0.0  ;;  %v961_v13 = vmax.f32 %v945_v62, 0.0  ;;  %v934_v22 = vld [vmem:[#allocation2 + $0x78] sm:$0xff]  ;;  %v935_v24 = vld [vmem:[#allocation2 + $0x28] sm:$0xff] }
 0x173   : > { %v962_v9 = vmax.f32 %v946_v63, 0.0  ;;  %v1409_v19 = vpack.c.bf16 %v957_v4, %v956_v3  ;;  %v949_v21 = vadd.f32 %v1519_v50, %v929_v2  ;;  %v951_v28 = vadd.f32 %v1519_v50, %v931_v10 }
 0x174   : > { %v963_v14 = vmax.f32 %v947_v0, 0.0  ;;  %v1414_v15 = vpack.c.bf16 %v959_v7, %v958_v6  ;;  %v1419_v25 = vpack.c.bf16 %v961_v13, %v960_v12  ;;  %v964_v30 = vmax.f32 %v948_v20, 0.0 }
 0x175   : > { %1410 = vst [vmem:[%s1922_s3] sm:$0xff] %v1409_v19   ;;  %v965_v31 = vmax.f32 %v949_v21, 0.0  ;;  %v952_v32 = vadd.f32 %v1519_v50, %v932_v16  ;;  %v953_v33 = vadd.f32 %v1519_v50, %v933_v18  ;;  %v966_v34 = vmax.f32 %v950_v27, 0.0 }
 0x176   : > { %v1424_v26 = vpack.c.bf16 %v963_v14, %v962_v9  ;;  %1446 = vst [vmem:[%s1922_s3 + $0x8] sm:$0xff] %v1414_v15   ;;  %v967_v36 = vmax.f32 %v951_v28, 0.0  ;;  %v954_v5 = vadd.f32 %v1519_v50, %v934_v22  ;;  %v955_v11 = vadd.f32 %v1519_v50, %v935_v24 }
 0x177   : > { %1447 = vst [vmem:[%s1922_s3 + $0x10] sm:$0xff] %v1419_v25   ;;  %v1429_v17 = vpack.c.bf16 %v965_v31, %v964_v30  ;;  %v968_v38 = vmax.f32 %v952_v32, 0.0  ;;  %v969_v23 = vmax.f32 %v953_v33, 0.0 }
 0x178   : > { %1448 = vst [vmem:[%s1922_s3 + $0x18] sm:$0xff] %v1424_v26   ;;  %v1434_v37 = vpack.c.bf16 %v967_v36, %v966_v34  ;;  %v970_v29 = vmax.f32 %v954_v5, 0.0  ;;  %v971_v39 = vmax.f32 %v955_v11, 0.0 }
 0x179   : > { %1449 = vst [vmem:[%s1922_s3 + $0x20] sm:$0xff] %v1429_v17   ;;  %v1439_v40 = vpack.c.bf16 %v969_v23, %v968_v38 }
 0x17a   : > { %1450 = vst [vmem:[%s1922_s3 + $0x28] sm:$0xff] %v1434_v37   ;;  %v1444_v35 = vpack.c.bf16 %v971_v39, %v970_v29 }
 0x17b   : > { %1451 = vst [vmem:[%s1922_s3 + $0x30] sm:$0xff] %v1439_v40  }
 0x17c   : > { %1452 = vst [vmem:[%s1922_s3 + $0x38] sm:$0xff] %v1444_v35  }
 0x17d PF: > { %s13_s16 = sadd.s32 1, %s1558_s16   ;;  %s1923_s12 = smov %s1546_s13 }
 0x17e   : > { %p10_p13 = scmp.ge.s32.totalorder %s13_s16, 5   ;;  %s1924_s13 = smov %s1615_s20 }
 0x17f   : > { %s1925_s14 = smov %s1554_s15  ;;  %s1926_s15 = smov %s1928_s17 }
 0x180   :  { %12 = sbr.rel (!%p10_p13) target bundleno = 3 (0x3), region = 117 }

// kernel: _lambda_.67
= control target key start
LH: loop header
LB: loop body
LE: loop exit
PB: predicated region body
PF: predicated region fallthrough
CT: control target
= control target key end

     0   :  { %s297_s1 = inlined_call_operand.vmem [shape: bf16[128,128], index: 1, kind: input, shape index: {}]   ;;  %s298_s2 = inlined_call_operand.vmem [shape: f32[1,128], index: 2, kind: input, shape index: {}]   ;;  %s299_s0 = inlined_call_operand.vmem [shape: bf16[32,128], index: 0, kind: input, shape index: {}]   ;;  %s300_s3 = inlined_call_operand.vmem [shape: bf16[32,128], index: 3, kind: input, shape index: {}]   ;;  %s301_s4 = inlined_call_operand.vmem [shape: bf16[32,128], index: 4, kind: output, shape index: {}]  }
   0x1   :  { %v197_v0 = vld [vmem:[%s297_s1 + $0x38] sm:$0xff]  ;;  %v196_v1 = vld [vmem:[%s297_s1 + $0x30] sm:$0xff]  ;;  %v195_v2 = vld [vmem:[%s297_s1 + $0x28] sm:$0xff] }
   0x2   :  { %101 = vmatpush.bf16.msra.mxu0 %v197_v0  ;;  %218 = vmatpush.bf16.msra.mxu1 %v197_v0  ;;  %v194_v3 = vld [vmem:[%s297_s1 + $0x20] sm:$0xff]  ;;  %v193_v4 = vld [vmem:[%s297_s1 + $0x18] sm:$0xff]  ;;  %v192_v5 = vld [vmem:[%s297_s1 + $0x10] sm:$0xff] }
   0x3   :  { %v191_v6 = vld [vmem:[%s297_s1 + $0x8] sm:$0xff]  ;;  %v190_v7 = vld [vmem:[%s297_s1] sm:$0xff] }
   0x4   :  { %v188_v8 = vld [vmem:[%s299_s0] sm:$0xff]  ;;  %v189_v9 = vld [vmem:[%s299_s0 + $0x8] sm:$0xff] }
   0x5   :  { %v226_v12 = vld [vmem:[%s298_s2] ss:$0 sm:$0xff]  ;;  %v216_v14 = vld [vmem:[%s300_s3 + $0x8] sm:$0xff]  }
   0x6   :  { %102 = vmatpush.bf16.msra.mxu0 %v196_v1  ;;  %219 = vmatpush.bf16.msra.mxu1 %v196_v1  ;;  %v199_v13 = vld [vmem:[%s300_s3] sm:$0xff]   ;;  %v204_v18 = vunpack.c.l.bf16 %v216_v14  ;;  %v205_v20 = vunpack.c.h.bf16 %v216_v14 }
   0x7   :  { %v200_v16 = vunpack.c.l.bf16 %v199_v13  ;;  %v201_v19 = vunpack.c.h.bf16 %v199_v13 }
   0xa   :  { %103 = vmatpush.bf16.msra.mxu0 %v195_v2  ;;  %220 = vmatpush.bf16.msra.mxu1 %v195_v2 }
   0xe   :  { %104 = vmatpush.bf16.msra.mxu0 %v194_v3  ;;  %221 = vmatpush.bf16.msra.mxu1 %v194_v3 }
  0x12   :  { %105 = vmatpush.bf16.msra.mxu0 %v193_v4  ;;  %222 = vmatpush.bf16.msra.mxu1 %v193_v4 }
  0x16   :  { %106 = vmatpush.bf16.msra.mxu0 %v192_v5  ;;  %223 = vmatpush.bf16.msra.mxu1 %v192_v5 }
  0x1a   :  { %107 = vmatpush.bf16.msra.mxu0 %v191_v6  ;;  %224 = vmatpush.bf16.msra.mxu1 %v191_v6 }
  0x1e   :  { %108 = vmatpush.bf16.msra.mxu0 %v190_v7  ;;  %225 = vmatpush.bf16.msra.mxu1 %v190_v7 }
  0x21   :  { %109 = vmatmul.bf16.vlgmr.msra.gmra.mxu0 %v188_v8  ;;  %114 = vmatmul.bf16.vlgmr.msra.gmra.mxu1 %v189_v9 }
  0x9e   :  { %v110_v10 = vpop.f32.mrf.mxu0  ;;  %v115_v11 = vpop.f32.mrf.mxu1 }
  0x9f   :  { %v111_v15 = vadd.f32 %v226_v12, %v110_v10  ;;  %v116_v17 = vadd.f32 %v226_v12, %v115_v11 }
  0xa1   :  { %v128_v23 = vadd.f32 %v200_v16, %v111_v15  ;;  %v130_v24 = vadd.f32 %v204_v18, %v116_v17 }
  0xa3   :  { %v132_v29 = vmax.f32 %v128_v23, 0.0  ;;  %v134_v30 = vmax.f32 %v130_v24, 0.0 }
  0xa6   :  { %v112_v21 = vpop.f32.mrf.mxu0  ;;  %v117_v22 = vpop.f32.mrf.mxu1 }
  0xa7   :  { %v113_v25 = vadd.f32 %v226_v12, %v112_v21  ;;  %v118_v26 = vadd.f32 %v226_v12, %v117_v22 }
  0xa9   :  { %v129_v27 = vadd.f32 %v201_v19, %v113_v25  ;;  %v131_v28 = vadd.f32 %v205_v20, %v118_v26 }
  0xab   :  { %v133_v31 = vmax.f32 %v129_v27, 0.0  ;;  %v135_v32 = vmax.f32 %v131_v28, 0.0 }
  0xad   :  { %v209_v33 = vpack.c.bf16 %v133_v31, %v132_v29  ;;  %v214_v34 = vpack.c.bf16 %v135_v32, %v134_v30 }
  0xaf   :  { %210 = vst [vmem:[%s301_s4] sm:$0xff] %v209_v33  }
  0xb0   :  { %217 = vst [vmem:[%s301_s4 + $0x8] sm:$0xff] %v214_v34  }

// kernel: _lambda_.66
= control target key start
LH: loop header
LB: loop body
LE: loop exit
PB: predicated region body
PF: predicated region fallthrough
CT: control target
= control target key end

     0   :  { %s258_s1 = inlined_call_operand.vmem [shape: bf16[128,128], index: 1, kind: input, shape index: {}]   ;;  %s259_s2 = inlined_call_operand.vmem [shape: f32[1,128], index: 2, kind: input, shape index: {}]   ;;  %s260_s0 = inlined_call_operand.vmem [shape: bf16[32,128], index: 0, kind: input, shape index: {}]   ;;  %s261_s3 = inlined_call_operand.vmem [shape: bf16[32,128], index: 3, kind: output, shape index: {}]  }
   0x1   :  { %v178_v0 = vld [vmem:[%s258_s1 + $0x38] sm:$0xff]  ;;  %v177_v1 = vld [vmem:[%s258_s1 + $0x30] sm:$0xff]  ;;  %v176_v2 = vld [vmem:[%s258_s1 + $0x28] sm:$0xff] }
   0x2   :  { %98 = vmatpush.bf16.msra.mxu0 %v178_v0  ;;  %190 = vmatpush.bf16.msra.mxu1 %v178_v0  ;;  %v175_v3 = vld [vmem:[%s258_s1 + $0x20] sm:$0xff]  ;;  %v174_v4 = vld [vmem:[%s258_s1 + $0x18] sm:$0xff]  ;;  %v173_v5 = vld [vmem:[%s258_s1 + $0x10] sm:$0xff] }
   0x3   :  { %v172_v6 = vld [vmem:[%s258_s1 + $0x8] sm:$0xff]  ;;  %v171_v7 = vld [vmem:[%s258_s1] sm:$0xff] }
   0x4   :  { %v169_v8 = vld [vmem:[%s260_s0] sm:$0xff]  ;;  %v170_v9 = vld [vmem:[%s260_s0 + $0x8] sm:$0xff] }
   0x5   :  { %v198_v12 = vld [vmem:[%s259_s2] ss:$0 sm:$0xff] }
   0x6   :  { %99 = vmatpush.bf16.msra.mxu0 %v177_v1  ;;  %191 = vmatpush.bf16.msra.mxu1 %v177_v1 }
   0xa   :  { %100 = vmatpush.bf16.msra.mxu0 %v176_v2  ;;  %192 = vmatpush.bf16.msra.mxu1 %v176_v2 }
   0xe   :  { %101 = vmatpush.bf16.msra.mxu0 %v175_v3  ;;  %193 = vmatpush.bf16.msra.mxu1 %v175_v3 }
  0x12   :  { %102 = vmatpush.bf16.msra.mxu0 %v174_v4  ;;  %194 = vmatpush.bf16.msra.mxu1 %v174_v4 }
  0x16   :  { %103 = vmatpush.bf16.msra.mxu0 %v173_v5  ;;  %195 = vmatpush.bf16.msra.mxu1 %v173_v5 }
  0x1a   :  { %104 = vmatpush.bf16.msra.mxu0 %v172_v6  ;;  %196 = vmatpush.bf16.msra.mxu1 %v172_v6 }
  0x1e   :  { %105 = vmatpush.bf16.msra.mxu0 %v171_v7  ;;  %197 = vmatpush.bf16.msra.mxu1 %v171_v7 }
  0x21   :  { %106 = vmatmul.bf16.vlgmr.msra.gmra.mxu0 %v169_v8  ;;  %111 = vmatmul.bf16.vlgmr.msra.gmra.mxu1 %v170_v9 }
  0x9e   :  { %v107_v10 = vpop.f32.mrf.mxu0  ;;  %v112_v11 = vpop.f32.mrf.mxu1 }
  0x9f   :  { %v108_v15 = vadd.f32 %v198_v12, %v107_v10  ;;  %v113_v16 = vadd.f32 %v198_v12, %v112_v11 }
  0xa6   :  { %v109_v13 = vpop.f32.mrf.mxu0  ;;  %v114_v14 = vpop.f32.mrf.mxu1 }
  0xa7   :  { %v110_v17 = vadd.f32 %v198_v12, %v109_v13  ;;  %v115_v18 = vadd.f32 %v198_v12, %v114_v14 }
  0xa9   :  { %v182_v19 = vpack.c.bf16 %v110_v17, %v108_v15  ;;  %v187_v20 = vpack.c.bf16 %v115_v18, %v113_v16 }
  0xab   :  { %183 = vst [vmem:[%s261_s3] sm:$0xff] %v182_v19  }
  0xac   :  { %189 = vst [vmem:[%s261_s3 + $0x8] sm:$0xff] %v187_v20  }

// kernel: _lambda_.65
= control target key start
LH: loop header
LB: loop body
LE: loop exit
PB: predicated region body
PF: predicated region fallthrough
CT: control target
= control target key end

     0   :  { %s1048_s12 = smov 0   ;;  %s1050_s13 = smov 0   ;;  %s1165_s0 = inlined_call_operand.vmem [shape: bf16[32,1152], index: 0, kind: input, shape index: {}]   ;;  %s1166_s1 = inlined_call_operand.vmem [shape: bf16[1152,128], index: 1, kind: input, shape index: {}]   ;;  %s1167_s2 = inlined_call_operand.vmem [shape: f32[1,128], index: 2, kind: input, shape index: {}]   ;;  %s1168_s3 = inlined_call_operand.vmem [shape: bf16[32,128], index: 3, kind: output, shape index: {}]  }
   0x1   :  { %s1052_s14 = smov 0   ;;  %s1054_s15 = smov 0  }
   0x2   :  { %s1056_s16 = smov 0  }
   0x3 LB: > { %s25_s17 = sadd.s32 1, %s1022_s15  ;;  %p48_p1 = scmp.ne.s32.totalorder %s1014_s13, %s1010_s12  ;;  %s1026_s16 = sphi %s1056_s16, %s13_s16   ;;  %s1022_s15 = sphi %s1054_s15, %s1172_s15   ;;  %s1018_s14 = sphi %s1052_s14, %s1171_s14   ;;  %s1014_s13 = sphi %s1050_s13, %s1170_s13   ;;  %s1010_s12 = sphi %s1048_s12, %s1169_s12  }
   0x4   : > { %p26_p0 = scmp.ge.s32.totalorder %s25_s17, 3  ;;  %p49_p2 = scmp.eq.s32.totalorder %s1026_s16, 0 }
   0x5   : > { %s41_s19 = sadd.s32 1, %s1014_s13  ;;  %p756_p5 = scmp.ge.s32.totalorder %s1026_s16, 3 }
   0x6   : > { %s1174_s17 = smov (%p26_p0, %s25_s17), 0  ;;  %p50_p3 = por %p49_p2, %p48_p1 }
   0x7   : > { %s37_s18 = ssub.s32 %s1022_s15, %s1174_s17  ;;  %162 = sbr.rel (%p756_p5) target bundleno = 25 (0x19), region = 20 }
   0x8   : > { %p39_p4 = scmp.eq.s32.totalorder %s37_s18, 0 }
   0xa   : > { %s1083_s20 = scalar_select %p39_p4, %s1014_s13, %s41_s19  }
   0xc   : > { %165 = sbr.rel (!%p50_p3) target bundleno = 25 (0x19), region = 24  ;;  %s167_s21 = sand.u32 (%p50_p3), 1, %s1014_s13  }
   0xd   : > { %s895_s22 = smul.u32 (%p50_p3), 12, %s1022_s15 }
   0xe   : > { %s945_s23 = smul.u32 (%p50_p3), 48, %s167_s21 }
   0xf   : > { %s175_s26 = scalar_lea.vmem (%p50_p3), %s1165_s0, %s895_s22 }
  0x10   : > { %v190_v0 = vld [vmem:[%s175_s26] sm:$0xff] (%p50_p3)  ;;  %v194_v2 = vld [vmem:[%s175_s26 + $0x48] sm:$0xff] (%p50_p3)  ;;  %s169_s27 = scalar_lea.vmem (%p50_p3), [#allocation3], %s945_s23  ;;  %v762_v6 = vld [vmem:[%s175_s26 + $0x50] sm:$0xf] (%p50_p3) }
  0x11   : > { %v192_v1 = vld [vmem:[%s175_s26 + $0x24] sm:$0xff]  ;;  %191 = vst [vmem:[%s169_s27] sm:$0xff] %v190_v0  ;;  %v196_v3 = vld [vmem:[%s175_s26 + $0x6c] sm:$0xff]  ;;  %v764_v7 = vld [vmem:[%s175_s26 + $0x74] sm:$0xf] }
  0x12   : > { %193 = vst [vmem:[%s169_s27 + $0xc] sm:$0xff] %v192_v1  ;;  %v758_v4 = vld [vmem:[%s175_s26 + $0x8] sm:$0xf]  ;;  %v760_v5 = vld [vmem:[%s175_s26 + $0x2c] sm:$0xf] }
  0x13   : > { %195 = vst [vmem:[%s169_s27 + $0x18] sm:$0xff] %v194_v2 }
  0x14   : > { %197 = vst [vmem:[%s169_s27 + $0x24] sm:$0xff] %v196_v3 }
  0x15   : > { %759 = vst [vmem:[%s169_s27 + $0x8] sm:$0xf] %v758_v4 }
  0x16   : > { %761 = vst [vmem:[%s169_s27 + $0x14] sm:$0xf] %v760_v5 }
  0x17   : > { %763 = vst [vmem:[%s169_s27 + $0x20] sm:$0xf] %v762_v6 }
  0x18   : > { %765 = vst [vmem:[%s169_s27 + $0x2c] sm:$0xf] %v764_v7 }
  0x19 PF: > { %p766_p6 = scmp.ge.s32.totalorder %s1026_s16, 1  ;;  %p230_p7 = scmp.lt.s32.totalorder %s1026_s16, 4 }
  0x1b   : > { %p231_p8 = pnand %p766_p6, %p230_p7 }
  0x1c   : > { %s276_s28 = smul.u32 (!%p231_p8), 48, %s1018_s14  ;;  %s237_s6 = sand.u32 (!%p231_p8), 1, %s1010_s12  }
  0x1d   : > { %234 = sbr.rel (%p231_p8) target bundleno = 263 (0x107), region = 54  ;;  %p888_p10 = scmp.ne.s32.totalorder (!%p231_p8), %s1018_s14, 0 }
  0x1e   : > { %p277_p9 = scmp.lt.s32.totalorder (!%p231_p8), %s276_s28, 143  ;;  %s946_s7 = smul.u32 (!%p231_p8), 48, %s237_s6 }
  0x20   : > { %s1121_s8 = scalar_lea.vmem (!%p231_p8), [#allocation3], %s946_s7 }
  0x22   : > { %s1176_s28 = smov (!%p277_p9, %s276_s28), 143  ;;  %v770_v29 = vld [vmem:[%s1121_s8] sm:$0xf]  ;;  %v897_v30 = vld [vmem:[%s1121_s8 + $0x8] sm:$0xf0] }
  0x23   : > { %s767_s29 = sshll.u32 %s1176_s28, 2  ;;  %v896_v33 = vld [vmem:[%s1121_s8 + $0x4] sm:$0xf]  ;;  %v772_v35 = vld [vmem:[%s1121_s8 + $0xc] sm:$0xf0]  ;;  %v771_v40 = vor.u32 %v897_v30, %v770_v29 }
  0x24   : > { %s1097_s5 = scalar_lea.vmem %s1166_s1, %s767_s29  ;;  %v778_v36 = vld [vmem:[%s1121_s8 + $0x8] sm:$0xf]  ;;  %v898_v37 = vld [vmem:[%s1121_s8 + $0x10] sm:$0xf0]  ;;  %v782_v38 = vld [vmem:[%s1121_s8 + $0x18] sm:$0xf]  ;;  %v775_v41 = vor.u32 %v896_v33, %v772_v35 }
  0x25   : > { %v909_v8 = vld [vmem:[%s1097_s5 + $0x38] sm:$0xff]  ;;  %v908_v11 = vld [vmem:[%s1097_s5 + $0x30] sm:$0xff]  ;;  %v907_v14 = vld [vmem:[%s1097_s5 + $0x28] sm:$0xff]  ;;  %v779_v42 = vor.u32 %v898_v37, %v778_v36 }
  0x26   : > { %v917_v9 = vld [vmem:[%s1097_s5 + $0x78] sm:$0xff]  ;;  %529 = vmatpush.bf16.msra.mxu0 %v909_v8  ;;  %v916_v12 = vld [vmem:[%s1097_s5 + $0x70] sm:$0xff]  ;;  %937 = vmatpush.bf16.msra.mxu3 %v909_v8  ;;  %v915_v15 = vld [vmem:[%s1097_s5 + $0x68] sm:$0xff] }
  0x27   : > { %v925_v10 = vld [vmem:[%s1097_s5 + $0xb8] sm:$0xff]  ;;  %548 = vmatpush.bf16.msra.mxu1 %v917_v9  ;;  %v924_v13 = vld [vmem:[%s1097_s5 + $0xb0] sm:$0xff]  ;;  %v923_v16 = vld [vmem:[%s1097_s5 + $0xa8] sm:$0xff] }
  0x28   : > { %567 = vmatpush.bf16.msra.mxu2 %v925_v10  ;;  %v906_v17 = vld [vmem:[%s1097_s5 + $0x20] sm:$0xff]  ;;  %v905_v20 = vld [vmem:[%s1097_s5 + $0x18] sm:$0xff]  ;;  %v904_v23 = vld [vmem:[%s1097_s5 + $0x10] sm:$0xff] }
  0x29   : > { %v914_v18 = vld [vmem:[%s1097_s5 + $0x60] sm:$0xff]  ;;  %v913_v21 = vld [vmem:[%s1097_s5 + $0x58] sm:$0xff]  ;;  %v912_v24 = vld [vmem:[%s1097_s5 + $0x50] sm:$0xff] }
  0x2a   : > { %530 = vmatpush.bf16.msra.mxu0 %v908_v11  ;;  %938 = vmatpush.bf16.msra.mxu3 %v908_v11  ;;  %v922_v19 = vld [vmem:[%s1097_s5 + $0xa0] sm:$0xff]  ;;  %v921_v22 = vld [vmem:[%s1097_s5 + $0x98] sm:$0xff]  ;;  %v920_v25 = vld [vmem:[%s1097_s5 + $0x90] sm:$0xff] }
  0x2b   : > { %549 = vmatpush.bf16.msra.mxu1 %v916_v12  ;;  %v903_v26 = vld [vmem:[%s1097_s5 + $0x8] sm:$0xff]  ;;  %v902_v31 = vld [vmem:[%s1097_s5] sm:$0xff] }
  0x2c   : > { %568 = vmatpush.bf16.msra.mxu2 %v924_v13  ;;  %v911_v27 = vld [vmem:[%s1097_s5 + $0x48] sm:$0xff]  ;;  %v910_v32 = vld [vmem:[%s1097_s5 + $0x40] sm:$0xff] }
  0x2d   : > { %v919_v28 = vld [vmem:[%s1097_s5 + $0x88] sm:$0xff]  ;;  %v918_v34 = vld [vmem:[%s1097_s5 + $0x80] sm:$0xff] }
  0x2e   : > { %531 = vmatpush.bf16.msra.mxu0 %v907_v14  ;;  %939 = vmatpush.bf16.msra.mxu3 %v907_v14  ;;  %v900_v39 = vld [vmem:[%s1121_s8 + $0x20] sm:$0xf0]  ;;  %v899_v44 = vld [vmem:[%s1121_s8 + $0x1c] sm:$0xf]  ;;  %v784_v45 = vld [vmem:[%s1121_s8 + $0x24] sm:$0xf0] }
  0x2f   : > { %550 = vmatpush.bf16.msra.mxu1 %v915_v15  ;;  %v783_v43 = vor.u32 %v900_v39, %v782_v38  ;;  %v790_v46 = vld [vmem:[%s1121_s8 + $0x20] sm:$0xf]  ;;  %v901_v47 = vld [vmem:[%s1121_s8 + $0x28] sm:$0xf0]  ;;  %v787_v48 = vor.u32 %v899_v44, %v784_v45 }
  0x30   : > { %569 = vmatpush.bf16.msra.mxu2 %v923_v16  ;;  %v791_v49 = vor.u32 %v901_v47, %v790_v46 }
  0x32   : > { %532 = vmatpush.bf16.msra.mxu0 %v906_v17  ;;  %940 = vmatpush.bf16.msra.mxu3 %v906_v17 }
  0x33   : > { %551 = vmatpush.bf16.msra.mxu1 %v914_v18 }
  0x34   : > { %570 = vmatpush.bf16.msra.mxu2 %v922_v19 }
  0x36   : > { %533 = vmatpush.bf16.msra.mxu0 %v905_v20  ;;  %941 = vmatpush.bf16.msra.mxu3 %v905_v20 }
  0x37   : > { %552 = vmatpush.bf16.msra.mxu1 %v913_v21 }
  0x38   : > { %571 = vmatpush.bf16.msra.mxu2 %v921_v22 }
  0x3a   : > { %534 = vmatpush.bf16.msra.mxu0 %v904_v23  ;;  %942 = vmatpush.bf16.msra.mxu3 %v904_v23 }
  0x3b   : > { %553 = vmatpush.bf16.msra.mxu1 %v912_v24 }
  0x3c   : > { %572 = vmatpush.bf16.msra.mxu2 %v920_v25 }
  0x3e   : > { %535 = vmatpush.bf16.msra.mxu0 %v903_v26  ;;  %943 = vmatpush.bf16.msra.mxu3 %v903_v26 }
  0x3f   : > { %554 = vmatpush.bf16.msra.mxu1 %v911_v27 }
  0x40   : > { %573 = vmatpush.bf16.msra.mxu2 %v919_v28 }
  0x42   : > { %536 = vmatpush.bf16.msra.mxu0 %v902_v31  ;;  %944 = vmatpush.bf16.msra.mxu3 %v902_v31 }
  0x43   : > { %555 = vmatpush.bf16.msra.mxu1 %v910_v32 }
  0x44   : > { %574 = vmatpush.bf16.msra.mxu2 %v918_v34 }
  0x45   : > { %537 = vmatmul.bf16.vlgmr.msra.gmra.mxu0 %v771_v40  ;;  %542 = vmatmul.bf16.vlgmr.msra.gmra.mxu3 %v783_v43 }
  0x46   : > { %556 = vmatmul.bf16.vlgmr.msra.gmra.mxu1 %v775_v41 }
  0x47   : > { %575 = vmatmul.bf16.vlgmr.msra.gmra.mxu2 %v779_v42 }
  0x56   : > { %561 = vmatmul.bf16.gmra.mxu1 %v787_v48 }
  0x57   : > { %580 = vmatmul.bf16.gmra.mxu2 %v791_v49 }
  0xc2   : > { %v538_v51 = vpop.f32.mrf.mxu0 }
  0xc3   : > { %v557_v50 = vpop.f32.mrf.mxu1 }
  0xc4   : > { %v558_v52 = vadd.f32 %v557_v50, %v538_v51 }
  0xc8   : > { %v543_v61 = vpop.f32.mrf.mxu3 }
  0xca   : > { %v576_v53 = vpop.f32.mrf.mxu2  ;;  %v540_v56 = vpop.f32.mrf.mxu0 }
  0xcb   : > { %v577_v54 = vadd.f32 %v576_v53, %v558_v52  ;;  %v559_v55 = vpop.f32.mrf.mxu1 }
  0xcc   : > { %v560_v57 = vadd.f32 %v559_v55, %v540_v56 }
  0xd0   : > { %v545_v2 = vpop.f32.mrf.mxu3 }
  0xd2   : > { %v578_v58 = vpop.f32.mrf.mxu2 }
  0xd3   : > { %v579_v59 = vadd.f32 %v578_v58, %v560_v57  ;;  %v562_v60 = vpop.f32.mrf.mxu1 }
  0xd4   : > { %v563_v62 = vadd.f32 %v562_v60, %v543_v61 }
  0xda   : > { %v581_v63 = vpop.f32.mrf.mxu2 }
  0xdb   : > { %v582_v0 = vadd.f32 %v581_v63, %v563_v62  ;;  %v564_v1 = vpop.f32.mrf.mxu1 }
  0xdc   : > { %v565_v3 = vadd.f32 %v564_v1, %v545_v2 }
  0xdf   : > { %589 = sbr.rel (%p888_p10) target bundleno = 232 (0xe8), region = 62 }
  0xe2   : > { %v583_v4 = vpop.f32.mrf.mxu2 }
  0xe3   : > { %v584_v5 = vadd.f32 %v583_v4, %v565_v3 }
  0xe4   : > { %590 = vst [vmem:[#allocation2 + $0x10] sm:$0xff] %v577_v54 }
  0xe5   : > { %591 = vst [vmem:[#allocation2] sm:$0xff] %v579_v59 }
  0xe6   : > { %592 = vst [vmem:[#allocation2 + $0x18] sm:$0xff] %v582_v0 }
  0xe7   : > { %593 = vst [vmem:[#allocation2 + $0x8] sm:$0xff] %v584_v5 }
  0xe8 PF: > { %p889_p11 = scmp.le.s32.totalorder %s1018_s14, 0 }
  0xea   : > { %597 = sbr.rel (%p889_p11) target bundleno = 246 (0xf6), region = 66 }
  0xef   : > { %v598_v6 = vld [vmem:[#allocation2 + $0x10] sm:$0xff]  ;;  %v599_v7 = vld [vmem:[#allocation2] sm:$0xff]  ;;  %v600_v8 = vld [vmem:[#allocation2 + $0x18] sm:$0xff] }
  0xf0   : > { %v602_v9 = vadd.f32 %v598_v6, %v577_v54  ;;  %v603_v10 = vadd.f32 %v599_v7, %v579_v59  ;;  %v604_v11 = vadd.f32 %v600_v8, %v582_v0  ;;  %v601_v12 = vld [vmem:[#allocation2 + $0x8] sm:$0xff] }
  0xf1   : > { %v605_v13 = vadd.f32 %v601_v12, %v584_v5 }
  0xf2   : > { %606 = vst [vmem:[#allocation2 + $0x10] sm:$0xff] %v602_v9 }
  0xf3   : > { %607 = vst [vmem:[#allocation2] sm:$0xff] %v603_v10 }
  0xf4   : > { %608 = vst [vmem:[#allocation2 + $0x18] sm:$0xff] %v604_v11 }
  0xf5   : > { %609 = vst [vmem:[#allocation2 + $0x8] sm:$0xff] %v605_v13 }
  0xf6 PF: > { %p890_p12 = scmp.ne.s32.totalorder %s1018_s14, 2 }
  0xf8   : > { %613 = sbr.rel (%p890_p12) target bundleno = 263 (0x107), region = 70 }
  0xfd   : > { %v614_v14 = vld [vmem:[#allocation2 + $0x10] sm:$0xff]  ;;  %v615_v15 = vld [vmem:[#allocation2] sm:$0xff]  ;;  %v616_v17 = vld [vmem:[#allocation2 + $0x18] sm:$0xff] }
  0xfe   : > { %v987_v16 = vld [vmem:[%s1167_s2] ss:$0 sm:$0xff]  ;;  %v617_v18 = vld [vmem:[#allocation2 + $0x8] sm:$0xff] }
  0xff   : > { %v622_v19 = vadd.f32 %v987_v16, %v614_v14  ;;  %v623_v20 = vadd.f32 %v987_v16, %v615_v15  ;;  %v624_v21 = vadd.f32 %v987_v16, %v616_v17  ;;  %v625_v22 = vadd.f32 %v987_v16, %v617_v18 }
 0x101   : > { %v626_v23 = vmax.f32 %v622_v19, 0.0  ;;  %v627_v24 = vmax.f32 %v623_v20, 0.0  ;;  %v628_v25 = vmax.f32 %v624_v21, 0.0  ;;  %v629_v26 = vmax.f32 %v625_v22, 0.0 }
 0x103   : > { %v929_v27 = vpack.c.bf16 %v627_v24, %v626_v23  ;;  %v934_v28 = vpack.c.bf16 %v629_v26, %v628_v25 }
 0x105   : > { %930 = vst [vmem:[%s1168_s3] sm:$0xff] %v929_v27  }
 0x106   : > { %936 = vst [vmem:[%s1168_s3 + $0x8] sm:$0xff] %v934_v28  }
 0x107 PF: > { %s13_s16 = sadd.s32 1, %s1026_s16   ;;  %s1169_s12 = smov %s1014_s13 }
 0x108   : > { %p10_p13 = scmp.ge.s32.totalorder %s13_s16, 5   ;;  %s1170_s13 = smov %s1083_s20 }
 0x109   : > { %s1171_s14 = smov %s1022_s15  ;;  %s1172_s15 = smov %s1174_s17 }
 0x10a   :  { %12 = sbr.rel (!%p10_p13) target bundleno = 3 (0x3), region = 117 }

// kernel: _lambda_.68
= control target key start
LH: loop header
LB: loop body
LE: loop exit
PB: predicated region body
PF: predicated region fallthrough
CT: control target
= control target key end

     0   :  { %s262_s1 = inlined_call_operand.vmem [shape: bf16[128,128], index: 1, kind: input, shape index: {}]   ;;  %s263_s2 = inlined_call_operand.vmem [shape: f32[1,128], index: 2, kind: input, shape index: {}]   ;;  %s264_s0 = inlined_call_operand.vmem [shape: bf16[32,128], index: 0, kind: input, shape index: {}]   ;;  %s265_s3 = inlined_call_operand.vmem [shape: bf16[32,128], index: 3, kind: output, shape index: {}]  }
   0x1   :  { %v182_v0 = vld [vmem:[%s262_s1 + $0x38] sm:$0xff]  ;;  %v181_v1 = vld [vmem:[%s262_s1 + $0x30] sm:$0xff]  ;;  %v180_v2 = vld [vmem:[%s262_s1 + $0x28] sm:$0xff] }
   0x2   :  { %98 = vmatpush.bf16.msra.mxu0 %v182_v0  ;;  %194 = vmatpush.bf16.msra.mxu1 %v182_v0  ;;  %v179_v3 = vld [vmem:[%s262_s1 + $0x20] sm:$0xff]  ;;  %v178_v4 = vld [vmem:[%s262_s1 + $0x18] sm:$0xff]  ;;  %v177_v5 = vld [vmem:[%s262_s1 + $0x10] sm:$0xff] }
   0x3   :  { %v176_v6 = vld [vmem:[%s262_s1 + $0x8] sm:$0xff]  ;;  %v175_v7 = vld [vmem:[%s262_s1] sm:$0xff] }
   0x4   :  { %v173_v8 = vld [vmem:[%s264_s0] sm:$0xff]  ;;  %v174_v9 = vld [vmem:[%s264_s0 + $0x8] sm:$0xff] }
   0x5   :  { %v202_v12 = vld [vmem:[%s263_s2] ss:$0 sm:$0xff] }
   0x6   :  { %99 = vmatpush.bf16.msra.mxu0 %v181_v1  ;;  %195 = vmatpush.bf16.msra.mxu1 %v181_v1 }
   0xa   :  { %100 = vmatpush.bf16.msra.mxu0 %v180_v2  ;;  %196 = vmatpush.bf16.msra.mxu1 %v180_v2 }
   0xe   :  { %101 = vmatpush.bf16.msra.mxu0 %v179_v3  ;;  %197 = vmatpush.bf16.msra.mxu1 %v179_v3 }
  0x12   :  { %102 = vmatpush.bf16.msra.mxu0 %v178_v4  ;;  %198 = vmatpush.bf16.msra.mxu1 %v178_v4 }
  0x16   :  { %103 = vmatpush.bf16.msra.mxu0 %v177_v5  ;;  %199 = vmatpush.bf16.msra.mxu1 %v177_v5 }
  0x1a   :  { %104 = vmatpush.bf16.msra.mxu0 %v176_v6  ;;  %200 = vmatpush.bf16.msra.mxu1 %v176_v6 }
  0x1e   :  { %105 = vmatpush.bf16.msra.mxu0 %v175_v7  ;;  %201 = vmatpush.bf16.msra.mxu1 %v175_v7 }
  0x21   :  { %106 = vmatmul.bf16.vlgmr.msra.gmra.mxu0 %v173_v8  ;;  %111 = vmatmul.bf16.vlgmr.msra.gmra.mxu1 %v174_v9 }
  0x9e   :  { %v107_v10 = vpop.f32.mrf.mxu0  ;;  %v112_v11 = vpop.f32.mrf.mxu1 }
  0x9f   :  { %v108_v13 = vadd.f32 %v202_v12, %v107_v10  ;;  %v113_v14 = vadd.f32 %v202_v12, %v112_v11 }
  0xa1   :  { %v117_v19 = vmax.f32 %v108_v13, 0.0  ;;  %v119_v20 = vmax.f32 %v113_v14, 0.0 }
  0xa6   :  { %v109_v15 = vpop.f32.mrf.mxu0  ;;  %v114_v16 = vpop.f32.mrf.mxu1 }
  0xa7   :  { %v110_v17 = vadd.f32 %v202_v12, %v109_v15  ;;  %v115_v18 = vadd.f32 %v202_v12, %v114_v16 }
  0xa9   :  { %v118_v21 = vmax.f32 %v110_v17, 0.0  ;;  %v120_v22 = vmax.f32 %v115_v18, 0.0 }
  0xab   :  { %v186_v23 = vpack.c.bf16 %v118_v21, %v117_v19  ;;  %v191_v24 = vpack.c.bf16 %v120_v22, %v119_v20 }
  0xad   :  { %187 = vst [vmem:[%s265_s3] sm:$0xff] %v186_v23  }
  0xae   :  { %193 = vst [vmem:[%s265_s3 + $0x8] sm:$0xff] %v191_v24  }

// kernel: _lambda_.79
= control target key start
LH: loop header
LB: loop body
LE: loop exit
PB: predicated region body
PF: predicated region fallthrough
CT: control target
= control target key end

     0   :  { %s216_s1 = inlined_call_operand.vmem [shape: bf16[128,128], index: 1, kind: input, shape index: {}]   ;;  %s217_s2 = inlined_call_operand.vmem [shape: f32[1,128], index: 2, kind: input, shape index: {}]   ;;  %s218_s0 = inlined_call_operand.vmem [shape: bf16[16,128], index: 0, kind: input, shape index: {}]   ;;  %s219_s3 = inlined_call_operand.vmem [shape: bf16[16,128], index: 3, kind: output, shape index: {}]  }
   0x1   :  { %v156_v0 = vld [vmem:[%s216_s1 + $0x38] sm:$0xff]  ;;  %v155_v1 = vld [vmem:[%s216_s1 + $0x30] sm:$0xff]  ;;  %v154_v2 = vld [vmem:[%s216_s1 + $0x28] sm:$0xff] }
   0x2   :  { %90 = vmatpush.bf16.msra.mxu0 %v156_v0  ;;  %v153_v3 = vld [vmem:[%s216_s1 + $0x20] sm:$0xff]  ;;  %v152_v4 = vld [vmem:[%s216_s1 + $0x18] sm:$0xff]  ;;  %v151_v5 = vld [vmem:[%s216_s1 + $0x10] sm:$0xff] }
   0x3   :  { %v150_v6 = vld [vmem:[%s216_s1 + $0x8] sm:$0xff]  ;;  %v149_v7 = vld [vmem:[%s216_s1] sm:$0xff] }
   0x4   :  { %v148_v8 = vld [vmem:[%s218_s0] sm:$0xff] }
   0x5   :  { %v162_v10 = vld [vmem:[%s217_s2] ss:$0 sm:$0xff] }
   0x6   :  { %91 = vmatpush.bf16.msra.mxu0 %v155_v1 }
   0xa   :  { %92 = vmatpush.bf16.msra.mxu0 %v154_v2 }
   0xe   :  { %93 = vmatpush.bf16.msra.mxu0 %v153_v3 }
  0x12   :  { %94 = vmatpush.bf16.msra.mxu0 %v152_v4 }
  0x16   :  { %95 = vmatpush.bf16.msra.mxu0 %v151_v5 }
  0x1a   :  { %96 = vmatpush.bf16.msra.mxu0 %v150_v6 }
  0x1e   :  { %97 = vmatpush.bf16.msra.mxu0 %v149_v7 }
  0x21   :  { %98 = vmatmul.bf16.vlgmr.msra.gmra.mxu0 %v148_v8 }
  0x9e   :  { %v99_v9 = vpop.f32.mrf.mxu0 }
  0x9f   :  { %v100_v12 = vadd.f32 %v162_v10, %v99_v9 }
  0xa6   :  { %v101_v11 = vpop.f32.mrf.mxu0 }
  0xa7   :  { %v102_v13 = vadd.f32 %v162_v10, %v101_v11 }
  0xa9   :  { %v160_v14 = vpack.c.bf16 %v102_v13, %v100_v12 }
  0xab   :  { %161 = vst [vmem:[%s219_s3] sm:$0xff] %v160_v14  }

// kernel: _lambda_.80
= control target key start
LH: loop header
LB: loop body
LE: loop exit
PB: predicated region body
PF: predicated region fallthrough
CT: control target
= control target key end

     0   :  { %s239_s1 = inlined_call_operand.vmem [shape: bf16[128,128], index: 1, kind: input, shape index: {}]   ;;  %s240_s2 = inlined_call_operand.vmem [shape: f32[1,128], index: 2, kind: input, shape index: {}]   ;;  %s241_s0 = inlined_call_operand.vmem [shape: bf16[16,128], index: 0, kind: input, shape index: {}]   ;;  %s242_s3 = inlined_call_operand.vmem [shape: bf16[16,128], index: 3, kind: input, shape index: {}]   ;;  %s243_s4 = inlined_call_operand.vmem [shape: bf16[16,128], index: 4, kind: output, shape index: {}]  }
   0x1   :  { %v167_v0 = vld [vmem:[%s239_s1 + $0x38] sm:$0xff]  ;;  %v166_v1 = vld [vmem:[%s239_s1 + $0x30] sm:$0xff]  ;;  %v165_v2 = vld [vmem:[%s239_s1 + $0x28] sm:$0xff] }
   0x2   :  { %93 = vmatpush.bf16.msra.mxu0 %v167_v0  ;;  %v164_v3 = vld [vmem:[%s239_s1 + $0x20] sm:$0xff]  ;;  %v163_v4 = vld [vmem:[%s239_s1 + $0x18] sm:$0xff]  ;;  %v162_v5 = vld [vmem:[%s239_s1 + $0x10] sm:$0xff] }
   0x3   :  { %v161_v6 = vld [vmem:[%s239_s1 + $0x8] sm:$0xff]  ;;  %v160_v7 = vld [vmem:[%s239_s1] sm:$0xff] }
   0x4   :  { %v159_v8 = vld [vmem:[%s241_s0] sm:$0xff] }
   0x5   :  { %v177_v10 = vld [vmem:[%s240_s2] ss:$0 sm:$0xff] }
   0x6   :  { %94 = vmatpush.bf16.msra.mxu0 %v166_v1  ;;  %v169_v11 = vld [vmem:[%s242_s3] sm:$0xff]  }
   0x7   :  { %v170_v13 = vunpack.c.l.bf16 %v169_v11  ;;  %v171_v14 = vunpack.c.h.bf16 %v169_v11 }
   0xa   :  { %95 = vmatpush.bf16.msra.mxu0 %v165_v2 }
   0xe   :  { %96 = vmatpush.bf16.msra.mxu0 %v164_v3 }
  0x12   :  { %97 = vmatpush.bf16.msra.mxu0 %v163_v4 }
  0x16   :  { %98 = vmatpush.bf16.msra.mxu0 %v162_v5 }
  0x1a   :  { %99 = vmatpush.bf16.msra.mxu0 %v161_v6 }
  0x1e   :  { %100 = vmatpush.bf16.msra.mxu0 %v160_v7 }
  0x21   :  { %101 = vmatmul.bf16.vlgmr.msra.gmra.mxu0 %v159_v8 }
  0x9e   :  { %v102_v9 = vpop.f32.mrf.mxu0 }
  0x9f   :  { %v103_v12 = vadd.f32 %v177_v10, %v102_v9 }
  0xa1   :  { %v111_v16 = vadd.f32 %v170_v13, %v103_v12 }
  0xa3   :  { %v113_v19 = vmax.f32 %v111_v16, 0.0 }
  0xa6   :  { %v104_v15 = vpop.f32.mrf.mxu0 }
  0xa7   :  { %v105_v17 = vadd.f32 %v177_v10, %v104_v15 }
  0xa9   :  { %v112_v18 = vadd.f32 %v171_v14, %v105_v17 }
  0xab   :  { %v114_v20 = vmax.f32 %v112_v18, 0.0 }
  0xad   :  { %v175_v21 = vpack.c.bf16 %v114_v20, %v113_v19 }
  0xaf   :  { %176 = vst [vmem:[%s243_s4] sm:$0xff] %v175_v21  }

// kernel: _lambda_.78
= control target key start
LH: loop header
LB: loop body
LE: loop exit
PB: predicated region body
PF: predicated region fallthrough
CT: control target
= control target key end

     0   :  { %s954_s12 = smov 0   ;;  %s956_s13 = smov 0   ;;  %s1054_s0 = inlined_call_operand.vmem [shape: bf16[16,1152], index: 0, kind: input, shape index: {}]   ;;  %s1055_s1 = inlined_call_operand.vmem [shape: bf16[1152,128], index: 1, kind: input, shape index: {}]   ;;  %s1056_s2 = inlined_call_operand.vmem [shape: f32[1,128], index: 2, kind: input, shape index: {}]   ;;  %s1057_s3 = inlined_call_operand.vmem [shape: bf16[16,128], index: 3, kind: output, shape index: {}]  }
   0x1   :  { %s958_s14 = smov 0   ;;  %s960_s15 = smov 0  }
   0x2   :  { %s962_s16 = smov 0  }
   0x3 LB: > { %s25_s17 = sadd.s32 1, %s928_s15  ;;  %p48_p1 = scmp.ne.s32.totalorder %s920_s13, %s916_s12  ;;  %s932_s16 = sphi %s962_s16, %s13_s16   ;;  %s928_s15 = sphi %s960_s15, %s1061_s15   ;;  %s924_s14 = sphi %s958_s14, %s1060_s14   ;;  %s920_s13 = sphi %s956_s13, %s1059_s13   ;;  %s916_s12 = sphi %s954_s12, %s1058_s12  }
   0x4   : > { %p26_p0 = scmp.ge.s32.totalorder %s25_s17, 3  ;;  %p49_p2 = scmp.eq.s32.totalorder %s932_s16, 0 }
   0x5   : > { %s41_s19 = sadd.s32 1, %s920_s13  ;;  %p695_p5 = scmp.ge.s32.totalorder %s932_s16, 3 }
   0x6   : > { %s1063_s17 = smov (%p26_p0, %s25_s17), 0  ;;  %p50_p3 = por %p49_p2, %p48_p1 }
   0x7   : > { %s37_s18 = ssub.s32 %s928_s15, %s1063_s17  ;;  %162 = sbr.rel (%p695_p5) target bundleno = 21 (0x15), region = 20 }
   0x8   : > { %p39_p4 = scmp.eq.s32.totalorder %s37_s18, 0 }
   0xa   : > { %s989_s20 = scalar_select %p39_p4, %s920_s13, %s41_s19  }
   0xc   : > { %165 = sbr.rel (!%p50_p3) target bundleno = 21 (0x15), region = 24  ;;  %s167_s21 = sand.u32 (%p50_p3), 1, %s920_s13  }
   0xd   : > { %s818_s22 = smul.u32 (%p50_p3), 12, %s928_s15 }
   0xe   : > { %s851_s23 = smul.u32 (%p50_p3), 24, %s167_s21 }
   0xf   : > { %s175_s26 = scalar_lea.vmem (%p50_p3), %s1054_s0, %s818_s22 }
  0x10   : > { %v190_v0 = vld [vmem:[%s175_s26] sm:$0xff] (%p50_p3)  ;;  %v697_v2 = vld [vmem:[%s175_s26 + $0x8] sm:$0xf] (%p50_p3)  ;;  %s169_s27 = scalar_lea.vmem (%p50_p3), [#allocation3], %s851_s23  ;;  %v699_v3 = vld [vmem:[%s175_s26 + $0x2c] sm:$0xf] (%p50_p3) }
  0x11   : > { %v192_v1 = vld [vmem:[%s175_s26 + $0x24] sm:$0xff]  ;;  %191 = vst [vmem:[%s169_s27] sm:$0xff] %v190_v0 }
  0x12   : > { %193 = vst [vmem:[%s169_s27 + $0xc] sm:$0xff] %v192_v1 }
  0x13   : > { %698 = vst [vmem:[%s169_s27 + $0x8] sm:$0xf] %v697_v2 }
  0x14   : > { %700 = vst [vmem:[%s169_s27 + $0x14] sm:$0xf] %v699_v3 }
  0x15 PF: > { %p701_p6 = scmp.ge.s32.totalorder %s932_s16, 1  ;;  %p222_p7 = scmp.lt.s32.totalorder %s932_s16, 4 }
  0x17   : > { %p223_p8 = pnand %p701_p6, %p222_p7 }
  0x18   : > { %s268_s28 = smul.u32 (!%p223_p8), 48, %s924_s14  ;;  %s229_s6 = sand.u32 (!%p223_p8), 1, %s916_s12  }
  0x19   : > { %226 = sbr.rel (%p223_p8) target bundleno = 238 (0xee), region = 54  ;;  %p811_p10 = scmp.ne.s32.totalorder (!%p223_p8), %s924_s14, 0 }
  0x1a   : > { %p269_p9 = scmp.lt.s32.totalorder (!%p223_p8), %s268_s28, 143  ;;  %s852_s7 = smul.u32 (!%p223_p8), 24, %s229_s6 }
  0x1c   : > { %s231_s8 = scalar_lea.vmem (!%p223_p8), [#allocation3], %s852_s7 }
  0x1e   : > { %s1065_s28 = smov (!%p269_p9, %s268_s28), 143  ;;  %v705_v25 = vld [vmem:[%s231_s8] sm:$0xf]  ;;  %v820_v26 = vld [vmem:[%s231_s8 + $0x8] sm:$0xf0] }
  0x1f   : > { %s702_s29 = sshll.u32 %s1065_s28, 2  ;;  %v819_v27 = vld [vmem:[%s231_s8 + $0x4] sm:$0xf]  ;;  %v707_v30 = vld [vmem:[%s231_s8 + $0xc] sm:$0xf0]  ;;  %v706_v34 = vor.u32 %v820_v26, %v705_v25 }
  0x20   : > { %s1003_s5 = scalar_lea.vmem %s1055_s1, %s702_s29  ;;  %v713_v32 = vld [vmem:[%s231_s8 + $0x8] sm:$0xf]  ;;  %v821_v33 = vld [vmem:[%s231_s8 + $0x10] sm:$0xf0]  ;;  %v710_v35 = vor.u32 %v819_v27, %v707_v30 }
  0x21   : > { %v829_v4 = vld [vmem:[%s1003_s5 + $0x38] sm:$0xff]  ;;  %v828_v7 = vld [vmem:[%s1003_s5 + $0x30] sm:$0xff]  ;;  %v827_v10 = vld [vmem:[%s1003_s5 + $0x28] sm:$0xff]  ;;  %v714_v36 = vor.u32 %v821_v33, %v713_v32 }
  0x22   : > { %v837_v5 = vld [vmem:[%s1003_s5 + $0x78] sm:$0xff]  ;;  %501 = vmatpush.bf16.msra.mxu0 %v829_v4  ;;  %v836_v8 = vld [vmem:[%s1003_s5 + $0x70] sm:$0xff]  ;;  %v835_v11 = vld [vmem:[%s1003_s5 + $0x68] sm:$0xff] }
  0x23   : > { %v845_v6 = vld [vmem:[%s1003_s5 + $0xb8] sm:$0xff]  ;;  %515 = vmatpush.bf16.msra.mxu1 %v837_v5  ;;  %v844_v9 = vld [vmem:[%s1003_s5 + $0xb0] sm:$0xff]  ;;  %v843_v12 = vld [vmem:[%s1003_s5 + $0xa8] sm:$0xff] }
  0x24   : > { %529 = vmatpush.bf16.msra.mxu2 %v845_v6  ;;  %v826_v13 = vld [vmem:[%s1003_s5 + $0x20] sm:$0xff]  ;;  %v825_v16 = vld [vmem:[%s1003_s5 + $0x18] sm:$0xff]  ;;  %v824_v19 = vld [vmem:[%s1003_s5 + $0x10] sm:$0xff] }
  0x25   : > { %v834_v14 = vld [vmem:[%s1003_s5 + $0x60] sm:$0xff]  ;;  %v833_v17 = vld [vmem:[%s1003_s5 + $0x58] sm:$0xff]  ;;  %v832_v20 = vld [vmem:[%s1003_s5 + $0x50] sm:$0xff] }
  0x26   : > { %502 = vmatpush.bf16.msra.mxu0 %v828_v7  ;;  %v842_v15 = vld [vmem:[%s1003_s5 + $0xa0] sm:$0xff]  ;;  %v841_v18 = vld [vmem:[%s1003_s5 + $0x98] sm:$0xff]  ;;  %v840_v21 = vld [vmem:[%s1003_s5 + $0x90] sm:$0xff] }
  0x27   : > { %516 = vmatpush.bf16.msra.mxu1 %v836_v8  ;;  %v823_v22 = vld [vmem:[%s1003_s5 + $0x8] sm:$0xff]  ;;  %v822_v28 = vld [vmem:[%s1003_s5] sm:$0xff] }
  0x28   : > { %530 = vmatpush.bf16.msra.mxu2 %v844_v9  ;;  %v831_v23 = vld [vmem:[%s1003_s5 + $0x48] sm:$0xff]  ;;  %v830_v29 = vld [vmem:[%s1003_s5 + $0x40] sm:$0xff] }
  0x29   : > { %v839_v24 = vld [vmem:[%s1003_s5 + $0x88] sm:$0xff]  ;;  %v838_v31 = vld [vmem:[%s1003_s5 + $0x80] sm:$0xff] }
  0x2a   : > { %503 = vmatpush.bf16.msra.mxu0 %v827_v10 }
  0x2b   : > { %517 = vmatpush.bf16.msra.mxu1 %v835_v11 }
  0x2c   : > { %531 = vmatpush.bf16.msra.mxu2 %v843_v12 }
  0x2e   : > { %504 = vmatpush.bf16.msra.mxu0 %v826_v13 }
  0x2f   : > { %518 = vmatpush.bf16.msra.mxu1 %v834_v14 }
  0x30   : > { %532 = vmatpush.bf16.msra.mxu2 %v842_v15 }
  0x32   : > { %505 = vmatpush.bf16.msra.mxu0 %v825_v16 }
  0x33   : > { %519 = vmatpush.bf16.msra.mxu1 %v833_v17 }
  0x34   : > { %533 = vmatpush.bf16.msra.mxu2 %v841_v18 }
  0x36   : > { %506 = vmatpush.bf16.msra.mxu0 %v824_v19 }
  0x37   : > { %520 = vmatpush.bf16.msra.mxu1 %v832_v20 }
  0x38   : > { %534 = vmatpush.bf16.msra.mxu2 %v840_v21 }
  0x3a   : > { %507 = vmatpush.bf16.msra.mxu0 %v823_v22 }
  0x3b   : > { %521 = vmatpush.bf16.msra.mxu1 %v831_v23 }
  0x3c   : > { %535 = vmatpush.bf16.msra.mxu2 %v839_v24 }
  0x3e   : > { %508 = vmatpush.bf16.msra.mxu0 %v822_v28 }
  0x3f   : > { %522 = vmatpush.bf16.msra.mxu1 %v830_v29 }
  0x40   : > { %536 = vmatpush.bf16.msra.mxu2 %v838_v31 }
  0x41   : > { %509 = vmatmul.bf16.vlgmr.msra.gmra.mxu0 %v706_v34 }
  0x42   : > { %523 = vmatmul.bf16.vlgmr.msra.gmra.mxu1 %v710_v35 }
  0x43   : > { %537 = vmatmul.bf16.vlgmr.msra.gmra.mxu2 %v714_v36 }
  0xbe   : > { %v510_v37 = vpop.f32.mrf.mxu0 }
  0xbf   : > { %v524_v38 = vpop.f32.mrf.mxu1 }
  0xc0   : > { %v525_v39 = vadd.f32 %v524_v38, %v510_v37 }
  0xc6   : > { %v538_v40 = vpop.f32.mrf.mxu2  ;;  %v512_v42 = vpop.f32.mrf.mxu0 }
  0xc7   : > { %v539_v41 = vadd.f32 %v538_v40, %v525_v39  ;;  %v526_v43 = vpop.f32.mrf.mxu1 }
  0xc8   : > { %v527_v44 = vadd.f32 %v526_v43, %v512_v42 }
  0xcb   : > { %546 = sbr.rel (%p811_p10) target bundleno = 210 (0xd2), region = 62 }
  0xce   : > { %v540_v45 = vpop.f32.mrf.mxu2 }
  0xcf   : > { %v541_v46 = vadd.f32 %v540_v45, %v527_v44 }
  0xd0   : > { %547 = vst [vmem:[#allocation2] sm:$0xff] %v539_v41 }
  0xd1   : > { %548 = vst [vmem:[#allocation2 + $0x8] sm:$0xff] %v541_v46 }
  0xd2 PF: > { %p812_p11 = scmp.le.s32.totalorder %s924_s14, 0 }
  0xd4   : > { %552 = sbr.rel (%p812_p11) target bundleno = 222 (0xde), region = 66 }
  0xd9   : > { %v553_v47 = vld [vmem:[#allocation2] sm:$0xff]  ;;  %v554_v48 = vld [vmem:[#allocation2 + $0x8] sm:$0xff] }
  0xda   : > { %v555_v49 = vadd.f32 %v553_v47, %v539_v41  ;;  %v556_v50 = vadd.f32 %v554_v48, %v541_v46 }
  0xdc   : > { %557 = vst [vmem:[#allocation2] sm:$0xff] %v555_v49 }
  0xdd   : > { %558 = vst [vmem:[#allocation2 + $0x8] sm:$0xff] %v556_v50 }
  0xde PF: > { %p813_p12 = scmp.ne.s32.totalorder %s924_s14, 2 }
  0xe0   : > { %562 = sbr.rel (%p813_p12) target bundleno = 238 (0xee), region = 70 }
  0xe5   : > { %v563_v51 = vld [vmem:[#allocation2] sm:$0xff]  ;;  %v564_v52 = vld [vmem:[#allocation2 + $0x8] sm:$0xff] }
  0xe6   : > { %v893_v53 = vld [vmem:[%s1056_s2] ss:$0 sm:$0xff] }
  0xe7   : > { %v569_v54 = vadd.f32 %v893_v53, %v563_v51  ;;  %v570_v55 = vadd.f32 %v893_v53, %v564_v52 }
  0xe9   : > { %v571_v56 = vmax.f32 %v569_v54, 0.0  ;;  %v572_v57 = vmax.f32 %v570_v55, 0.0 }
  0xeb   : > { %v849_v58 = vpack.c.bf16 %v572_v57, %v571_v56 }
  0xed   : > { %850 = vst [vmem:[%s1057_s3] sm:$0xff] %v849_v58  }
  0xee PF: > { %s13_s16 = sadd.s32 1, %s932_s16   ;;  %s1058_s12 = smov %s920_s13 }
  0xef   : > { %p10_p13 = scmp.ge.s32.totalorder %s13_s16, 5   ;;  %s1059_s13 = smov %s989_s20 }
  0xf0   : > { %s1060_s14 = smov %s928_s15  ;;  %s1061_s15 = smov %s1063_s17 }
  0xf1   :  { %12 = sbr.rel (!%p10_p13) target bundleno = 3 (0x3), region = 117 }

// kernel: _lambda_.81
= control target key start
LH: loop header
LB: loop body
LE: loop exit
PB: predicated region body
PF: predicated region fallthrough
CT: control target
= control target key end

     0   :  { %s218_s1 = inlined_call_operand.vmem [shape: bf16[128,128], index: 1, kind: input, shape index: {}]   ;;  %s219_s2 = inlined_call_operand.vmem [shape: f32[1,128], index: 2, kind: input, shape index: {}]   ;;  %s220_s0 = inlined_call_operand.vmem [shape: bf16[16,128], index: 0, kind: input, shape index: {}]   ;;  %s221_s3 = inlined_call_operand.vmem [shape: bf16[16,128], index: 3, kind: output, shape index: {}]  }
   0x1   :  { %v158_v0 = vld [vmem:[%s218_s1 + $0x38] sm:$0xff]  ;;  %v157_v1 = vld [vmem:[%s218_s1 + $0x30] sm:$0xff]  ;;  %v156_v2 = vld [vmem:[%s218_s1 + $0x28] sm:$0xff] }
   0x2   :  { %90 = vmatpush.bf16.msra.mxu0 %v158_v0  ;;  %v155_v3 = vld [vmem:[%s218_s1 + $0x20] sm:$0xff]  ;;  %v154_v4 = vld [vmem:[%s218_s1 + $0x18] sm:$0xff]  ;;  %v153_v5 = vld [vmem:[%s218_s1 + $0x10] sm:$0xff] }
   0x3   :  { %v152_v6 = vld [vmem:[%s218_s1 + $0x8] sm:$0xff]  ;;  %v151_v7 = vld [vmem:[%s218_s1] sm:$0xff] }
   0x4   :  { %v150_v8 = vld [vmem:[%s220_s0] sm:$0xff] }
   0x5   :  { %v164_v10 = vld [vmem:[%s219_s2] ss:$0 sm:$0xff] }
   0x6   :  { %91 = vmatpush.bf16.msra.mxu0 %v157_v1 }
   0xa   :  { %92 = vmatpush.bf16.msra.mxu0 %v156_v2 }
   0xe   :  { %93 = vmatpush.bf16.msra.mxu0 %v155_v3 }
  0x12   :  { %94 = vmatpush.bf16.msra.mxu0 %v154_v4 }
  0x16   :  { %95 = vmatpush.bf16.msra.mxu0 %v153_v5 }
  0x1a   :  { %96 = vmatpush.bf16.msra.mxu0 %v152_v6 }
  0x1e   :  { %97 = vmatpush.bf16.msra.mxu0 %v151_v7 }
  0x21   :  { %98 = vmatmul.bf16.vlgmr.msra.gmra.mxu0 %v150_v8 }
  0x9e   :  { %v99_v9 = vpop.f32.mrf.mxu0 }
  0x9f   :  { %v100_v11 = vadd.f32 %v164_v10, %v99_v9 }
  0xa1   :  { %v104_v14 = vmax.f32 %v100_v11, 0.0 }
  0xa6   :  { %v101_v12 = vpop.f32.mrf.mxu0 }
  0xa7   :  { %v102_v13 = vadd.f32 %v164_v10, %v101_v12 }
  0xa9   :  { %v105_v15 = vmax.f32 %v102_v13, 0.0 }
  0xab   :  { %v162_v16 = vpack.c.bf16 %v105_v15, %v104_v14 }
  0xad   :  { %163 = vst [vmem:[%s221_s3] sm:$0xff] %v162_v16  }

// kernel: _lambda_.86
= control target key start
LH: loop header
LB: loop body
LE: loop exit
PB: predicated region body
PF: predicated region fallthrough
CT: control target
= control target key end

     0   :  { %9 = vsyncpa [#allocation3], 0  ;;  %s220_s18 = smov [#allocation2]   ;;  %s282_s0 = inlined_call_operand.vmem [shape: bf16[16,128], index: 0, kind: input, shape index: {}]   ;;  %s283_s1 = inlined_call_operand.vmem [shape: bf16[128,128], index: 1, kind: input, shape index: {}]   ;;  %s284_s2 = inlined_call_operand.hbm [shape: f32[1,128], index: 2, kind: input, shape index: {}]   ;;  %s285_s3 = inlined_call_operand.vmem [shape: bf16[16,128], index: 3, kind: input, shape index: {}]   ;;  %s286_s4 = inlined_call_operand.vmem [shape: bf16[16,128], index: 4, kind: output, shape index: {}]  }
   0x1   :  { %s19_s17 = sshll.u32 %s284_s2, 4  ;;  %s21_s19 = sshll.u32 %s220_s18, 4  ;;  %s20_s17 = int_to_ptr.hbm [resolvable:$true] %s19_s17  ;;  %s22_s19 = int_to_ptr.vmem [resolvable:$true] %s21_s19 }
   0x2   :  { %24 = dma.hbm_to_vmem [thread:$0]  %s20_s17, 16, %s22_s19, [#allocation3]  }
   0x3   :  { %218 = dma.done.wait [#allocation3], 16  }
   0x4   :  { %219 = vsyncadd [#allocation3], 4294967280  ;;  %v182_v0 = vld [vmem:[%s283_s1 + $0x38] sm:$0xff]  ;;  %v181_v1 = vld [vmem:[%s283_s1 + $0x30] sm:$0xff] }
   0x5   :  { %107 = vmatpush.bf16.msra.mxu0 %v182_v0  ;;  %v180_v2 = vld [vmem:[%s283_s1 + $0x28] sm:$0xff]  ;;  %v179_v3 = vld [vmem:[%s283_s1 + $0x20] sm:$0xff]  ;;  %v178_v4 = vld [vmem:[%s283_s1 + $0x18] sm:$0xff] }
   0x6   :  { %v177_v5 = vld [vmem:[%s283_s1 + $0x10] sm:$0xff]  ;;  %v176_v6 = vld [vmem:[%s283_s1 + $0x8] sm:$0xff]  ;;  %v175_v7 = vld [vmem:[%s283_s1] sm:$0xff] }
   0x7   :  { %v174_v8 = vld [vmem:[%s282_s0] sm:$0xff] }
   0x8   :  { %v193_v10 = vld [vmem:[#allocation2] ss:$0 sm:$0xff] }
   0x9   :  { %108 = vmatpush.bf16.msra.mxu0 %v181_v1  ;;  %v184_v11 = vld [vmem:[%s285_s3] sm:$0xff]  }
   0xa   :  { %v185_v13 = vunpack.c.l.bf16 %v184_v11  ;;  %v186_v14 = vunpack.c.h.bf16 %v184_v11 }
   0xd   :  { %109 = vmatpush.bf16.msra.mxu0 %v180_v2 }
  0x11   :  { %110 = vmatpush.bf16.msra.mxu0 %v179_v3 }
  0x15   :  { %111 = vmatpush.bf16.msra.mxu0 %v178_v4 }
  0x19   :  { %112 = vmatpush.bf16.msra.mxu0 %v177_v5 }
  0x1d   :  { %113 = vmatpush.bf16.msra.mxu0 %v176_v6 }
  0x21   :  { %114 = vmatpush.bf16.msra.mxu0 %v175_v7 }
  0x24   :  { %115 = vmatmul.bf16.vlgmr.msra.gmra.mxu0 %v174_v8 }
  0xa1   :  { %v116_v9 = vpop.f32.mrf.mxu0 }
  0xa2   :  { %v117_v12 = vadd.f32 %v193_v10, %v116_v9 }
  0xa4   :  { %v125_v16 = vadd.f32 %v185_v13, %v117_v12 }
  0xa6   :  { %v127_v19 = vmax.f32 %v125_v16, 0.0 }
  0xa9   :  { %v118_v15 = vpop.f32.mrf.mxu0 }
  0xaa   :  { %v119_v17 = vadd.f32 %v193_v10, %v118_v15 }
  0xac   :  { %v126_v18 = vadd.f32 %v186_v14, %v119_v17 }
  0xae   :  { %v128_v20 = vmax.f32 %v126_v18, 0.0 }
  0xb0   :  { %v190_v21 = vpack.c.bf16 %v128_v20, %v127_v19 }
  0xb2   :  { %191 = vst [vmem:[%s286_s4] sm:$0xff] %v190_v21  }
  0xb3   :  { %137 = vsyncpa [#allocation3], 1 }

// kernel: _lambda_.98
= control target key start
LH: loop header
LB: loop body
LE: loop exit
PB: predicated region body
PF: predicated region fallthrough
CT: control target
= control target key end

     0   :  { %s373_s1 = inlined_call_operand.vmem [shape: bf16[128,256], index: 1, kind: input, shape index: {}]   ;;  %s374_s0 = inlined_call_operand.vmem [shape: bf16[16,128], index: 0, kind: input, shape index: {}]   ;;  %s375_s2 = inlined_call_operand.vmem [shape: f32[1,256], index: 2, kind: input, shape index: {}]   ;;  %s376_s3 = inlined_call_operand.vmem [shape: bf16[16,256], index: 3, kind: output, shape index: {}]  }
   0x1   :  { %v222_v0 = vld [vmem:[%s373_s1 + $0x70] sm:$0xf]  ;;  %v244_v1 = vld [vmem:[%s373_s1 + $0x74] sm:$0xf0]  ;;  %v243_v2 = vld [vmem:[%s373_s1 + $0x74] sm:$0xf] }
   0x2   :  { %v223_v3 = vor.u32 %v244_v1, %v222_v0  ;;  %v224_v4 = vld [vmem:[%s373_s1 + $0x78] sm:$0xf0]  ;;  %v214_v5 = vld [vmem:[%s373_s1 + $0x60] sm:$0xf]  ;;  %v242_v6 = vld [vmem:[%s373_s1 + $0x64] sm:$0xf0] }
   0x3   :  { %v227_v7 = vor.u32 %v243_v2, %v224_v4  ;;  %v241_v8 = vld [vmem:[%s373_s1 + $0x64] sm:$0xf]  ;;  %v216_v9 = vld [vmem:[%s373_s1 + $0x68] sm:$0xf0]  ;;  %v215_v10 = vor.u32 %v242_v6, %v214_v5  ;;  %v206_v12 = vld [vmem:[%s373_s1 + $0x50] sm:$0xf] }
   0x4   :  { %124 = vmatpush.bf16.msra.mxu0 %v223_v3  ;;  %v219_v11 = vor.u32 %v241_v8, %v216_v9  ;;  %v240_v13 = vld [vmem:[%s373_s1 + $0x54] sm:$0xf0]  ;;  %v239_v14 = vld [vmem:[%s373_s1 + $0x54] sm:$0xf]  ;;  %v208_v15 = vld [vmem:[%s373_s1 + $0x58] sm:$0xf0] }
   0x5   :  { %138 = vmatpush.bf16.msra.mxu1 %v227_v7  ;;  %v207_v16 = vor.u32 %v240_v13, %v206_v12  ;;  %v211_v17 = vor.u32 %v239_v14, %v208_v15  ;;  %v198_v18 = vld [vmem:[%s373_s1 + $0x40] sm:$0xf]  ;;  %v238_v19 = vld [vmem:[%s373_s1 + $0x44] sm:$0xf0]  ;;  %v237_v20 = vld [vmem:[%s373_s1 + $0x44] sm:$0xf] }
   0x6   :  { %v200_v21 = vld [vmem:[%s373_s1 + $0x48] sm:$0xf0]  ;;  %v199_v22 = vor.u32 %v238_v19, %v198_v18  ;;  %v190_v24 = vld [vmem:[%s373_s1 + $0x30] sm:$0xf]  ;;  %v236_v25 = vld [vmem:[%s373_s1 + $0x34] sm:$0xf0] }
   0x7   :  { %v203_v23 = vor.u32 %v237_v20, %v200_v21  ;;  %v235_v26 = vld [vmem:[%s373_s1 + $0x34] sm:$0xf]  ;;  %v192_v27 = vld [vmem:[%s373_s1 + $0x38] sm:$0xf0]  ;;  %v191_v28 = vor.u32 %v236_v25, %v190_v24  ;;  %v182_v30 = vld [vmem:[%s373_s1 + $0x20] sm:$0xf] }
   0x8   :  { %125 = vmatpush.bf16.msra.mxu0 %v215_v10  ;;  %v195_v29 = vor.u32 %v235_v26, %v192_v27  ;;  %v234_v31 = vld [vmem:[%s373_s1 + $0x24] sm:$0xf0]  ;;  %v233_v32 = vld [vmem:[%s373_s1 + $0x24] sm:$0xf]  ;;  %v184_v33 = vld [vmem:[%s373_s1 + $0x28] sm:$0xf0] }
   0x9   :  { %139 = vmatpush.bf16.msra.mxu1 %v219_v11  ;;  %v183_v34 = vor.u32 %v234_v31, %v182_v30  ;;  %v187_v35 = vor.u32 %v233_v32, %v184_v33  ;;  %v174_v36 = vld [vmem:[%s373_s1 + $0x10] sm:$0xf]  ;;  %v232_v37 = vld [vmem:[%s373_s1 + $0x14] sm:$0xf0]  ;;  %v231_v38 = vld [vmem:[%s373_s1 + $0x14] sm:$0xf] }
   0xa   :  { %v176_v39 = vld [vmem:[%s373_s1 + $0x18] sm:$0xf0]  ;;  %v175_v40 = vor.u32 %v232_v37, %v174_v36  ;;  %v166_v42 = vld [vmem:[%s373_s1] sm:$0xf]  ;;  %v230_v43 = vld [vmem:[%s373_s1 + $0x4] sm:$0xf0] }
   0xb   :  { %v179_v41 = vor.u32 %v231_v38, %v176_v39  ;;  %v229_v44 = vld [vmem:[%s373_s1 + $0x4] sm:$0xf]  ;;  %v168_v45 = vld [vmem:[%s373_s1 + $0x8] sm:$0xf0]  ;;  %v167_v46 = vor.u32 %v230_v43, %v166_v42  ;;  %v32_v49 = vld [vmem:[%s375_s2] sm:$0x3] }
   0xc   :  { %126 = vmatpush.bf16.msra.mxu0 %v207_v16  ;;  %v171_v47 = vor.u32 %v229_v44, %v168_v45  ;;  %v228_v48 = vld [vmem:[%s374_s0] sm:$0xff]  ;;  %v34_v50 = vperm.slane %v32_v49, 0  ;;  %v35_v51 = vperm.slane %v32_v49, 1 }
   0xd   :  { %140 = vmatpush.bf16.msra.mxu1 %v211_v17 }
  0x10   :  { %127 = vmatpush.bf16.msra.mxu0 %v199_v22 }
  0x11   :  { %141 = vmatpush.bf16.msra.mxu1 %v203_v23 }
  0x14   :  { %128 = vmatpush.bf16.msra.mxu0 %v191_v28 }
  0x15   :  { %142 = vmatpush.bf16.msra.mxu1 %v195_v29 }
  0x18   :  { %129 = vmatpush.bf16.msra.mxu0 %v183_v34 }
  0x19   :  { %143 = vmatpush.bf16.msra.mxu1 %v187_v35 }
  0x1c   :  { %130 = vmatpush.bf16.msra.mxu0 %v175_v40 }
  0x1d   :  { %144 = vmatpush.bf16.msra.mxu1 %v179_v41 }
  0x20   :  { %131 = vmatpush.bf16.msra.mxu0 %v167_v46 }
  0x21   :  { %145 = vmatpush.bf16.msra.mxu1 %v171_v47 }
  0x23   :  { %132 = vmatmul.bf16.vlgmr.msra.gmra.mxu0 %v228_v48 }
  0x24   :  { %146 = vmatmul.bf16.vlgmr.msra.gmra.mxu1 %v228_v48 }
  0xa0   :  { %v133_v52 = vpop.f32.mrf.mxu0 }
  0xa1   :  { %v134_v53 = vadd.f32 %v133_v52, %v34_v50  ;;  %v147_v54 = vpop.f32.mrf.mxu1 }
  0xa2   :  { %v148_v55 = vadd.f32 %v147_v54, %v35_v51 }
  0xa4   :  { %v152_v56 = vpack.c.bf16 %v148_v55, %v134_v53 }
  0xa6   :  { %154 = vst [vmem:[%s376_s3] sm:$0xff] %v152_v56 }
  0xa8   :  { %v135_v57 = vpop.f32.mrf.mxu0 }
  0xa9   :  { %v136_v58 = vadd.f32 %v135_v57, %v34_v50  ;;  %v149_v59 = vpop.f32.mrf.mxu1 }
  0xaa   :  { %v150_v60 = vadd.f32 %v149_v59, %v35_v51 }
  0xac   :  { %v153_v61 = vpack.c.bf16 %v150_v60, %v136_v58 }
  0xae   :  { %155 = vst [vmem:[%s376_s3 + $0x8] sm:$0xff] %v153_v61 }

// kernel: _lambda_.99
= control target key start
LH: loop header
LB: loop body
LE: loop exit
PB: predicated region body
PF: predicated region fallthrough
CT: control target
= control target key end

     0   :  { %s401_s1 = inlined_call_operand.vmem [shape: bf16[128,256], index: 1, kind: input, shape index: {}]   ;;  %s402_s0 = inlined_call_operand.vmem [shape: bf16[16,128], index: 0, kind: input, shape index: {}]   ;;  %s403_s2 = inlined_call_operand.vmem [shape: f32[1,256], index: 2, kind: input, shape index: {}]   ;;  %s404_s3 = inlined_call_operand.vmem [shape: bf16[16,256], index: 3, kind: input, shape index: {}]   ;;  %s405_s4 = inlined_call_operand.vmem [shape: bf16[16,256], index: 4, kind: output, shape index: {}]  }
   0x1   :  { %v239_v0 = vld [vmem:[%s401_s1 + $0x70] sm:$0xf]  ;;  %v261_v1 = vld [vmem:[%s401_s1 + $0x74] sm:$0xf0]  ;;  %v260_v2 = vld [vmem:[%s401_s1 + $0x74] sm:$0xf] }
   0x2   :  { %v240_v3 = vor.u32 %v261_v1, %v239_v0  ;;  %v241_v4 = vld [vmem:[%s401_s1 + $0x78] sm:$0xf0]  ;;  %v231_v5 = vld [vmem:[%s401_s1 + $0x60] sm:$0xf]  ;;  %v259_v6 = vld [vmem:[%s401_s1 + $0x64] sm:$0xf0] }
   0x3   :  { %v244_v7 = vor.u32 %v260_v2, %v241_v4  ;;  %v258_v8 = vld [vmem:[%s401_s1 + $0x64] sm:$0xf]  ;;  %v233_v9 = vld [vmem:[%s401_s1 + $0x68] sm:$0xf0]  ;;  %v232_v10 = vor.u32 %v259_v6, %v231_v5  ;;  %v223_v12 = vld [vmem:[%s401_s1 + $0x50] sm:$0xf] }
   0x4   :  { %127 = vmatpush.bf16.msra.mxu0 %v240_v3  ;;  %v236_v11 = vor.u32 %v258_v8, %v233_v9  ;;  %v257_v13 = vld [vmem:[%s401_s1 + $0x54] sm:$0xf0]  ;;  %v256_v14 = vld [vmem:[%s401_s1 + $0x54] sm:$0xf]  ;;  %v225_v15 = vld [vmem:[%s401_s1 + $0x58] sm:$0xf0] }
   0x5   :  { %141 = vmatpush.bf16.msra.mxu1 %v244_v7  ;;  %v224_v16 = vor.u32 %v257_v13, %v223_v12  ;;  %v228_v17 = vor.u32 %v256_v14, %v225_v15  ;;  %v215_v18 = vld [vmem:[%s401_s1 + $0x40] sm:$0xf]  ;;  %v255_v19 = vld [vmem:[%s401_s1 + $0x44] sm:$0xf0]  ;;  %v254_v20 = vld [vmem:[%s401_s1 + $0x44] sm:$0xf] }
   0x6   :  { %v217_v21 = vld [vmem:[%s401_s1 + $0x48] sm:$0xf0]  ;;  %v216_v22 = vor.u32 %v255_v19, %v215_v18  ;;  %v207_v24 = vld [vmem:[%s401_s1 + $0x30] sm:$0xf]  ;;  %v253_v25 = vld [vmem:[%s401_s1 + $0x34] sm:$0xf0] }
   0x7   :  { %v220_v23 = vor.u32 %v254_v20, %v217_v21  ;;  %v252_v26 = vld [vmem:[%s401_s1 + $0x34] sm:$0xf]  ;;  %v209_v27 = vld [vmem:[%s401_s1 + $0x38] sm:$0xf0]  ;;  %v208_v28 = vor.u32 %v253_v25, %v207_v24  ;;  %v199_v30 = vld [vmem:[%s401_s1 + $0x20] sm:$0xf] }
   0x8   :  { %128 = vmatpush.bf16.msra.mxu0 %v232_v10  ;;  %v212_v29 = vor.u32 %v252_v26, %v209_v27  ;;  %v251_v31 = vld [vmem:[%s401_s1 + $0x24] sm:$0xf0]  ;;  %v250_v32 = vld [vmem:[%s401_s1 + $0x24] sm:$0xf]  ;;  %v201_v33 = vld [vmem:[%s401_s1 + $0x28] sm:$0xf0] }
   0x9   :  { %142 = vmatpush.bf16.msra.mxu1 %v236_v11  ;;  %v200_v34 = vor.u32 %v251_v31, %v199_v30  ;;  %v204_v35 = vor.u32 %v250_v32, %v201_v33  ;;  %v191_v36 = vld [vmem:[%s401_s1 + $0x10] sm:$0xf]  ;;  %v249_v37 = vld [vmem:[%s401_s1 + $0x14] sm:$0xf0]  ;;  %v248_v38 = vld [vmem:[%s401_s1 + $0x14] sm:$0xf] }
   0xa   :  { %v193_v39 = vld [vmem:[%s401_s1 + $0x18] sm:$0xf0]  ;;  %v192_v40 = vor.u32 %v249_v37, %v191_v36  ;;  %v183_v42 = vld [vmem:[%s401_s1] sm:$0xf]  ;;  %v247_v43 = vld [vmem:[%s401_s1 + $0x4] sm:$0xf0] }
   0xb   :  { %v196_v41 = vor.u32 %v248_v38, %v193_v39  ;;  %v246_v44 = vld [vmem:[%s401_s1 + $0x4] sm:$0xf]  ;;  %v185_v45 = vld [vmem:[%s401_s1 + $0x8] sm:$0xf0]  ;;  %v184_v46 = vor.u32 %v247_v43, %v183_v42  ;;  %v35_v49 = vld [vmem:[%s403_s2] sm:$0x3] }
   0xc   :  { %129 = vmatpush.bf16.msra.mxu0 %v224_v16  ;;  %v188_v47 = vor.u32 %v246_v44, %v185_v45  ;;  %v245_v48 = vld [vmem:[%s402_s0] sm:$0xff]  ;;  %v37_v51 = vperm.slane %v35_v49, 0  ;;  %v38_v52 = vperm.slane %v35_v49, 1  ;;  %v156_v61 = vld [vmem:[%s404_s3 + $0x8] sm:$0xff] }
   0xd   :  { %143 = vmatpush.bf16.msra.mxu1 %v228_v17  ;;  %v155_v50 = vld [vmem:[%s404_s3] sm:$0xff]  ;;  %v159_v0 = vunpack.c.l.bf16 %v156_v61  ;;  %v160_v3 = vunpack.c.h.bf16 %v156_v61 }
   0xe   :  { %v157_v53 = vunpack.c.l.bf16 %v155_v50  ;;  %v158_v55 = vunpack.c.h.bf16 %v155_v50 }
  0x10   :  { %130 = vmatpush.bf16.msra.mxu0 %v216_v22 }
  0x11   :  { %144 = vmatpush.bf16.msra.mxu1 %v220_v23 }
  0x14   :  { %131 = vmatpush.bf16.msra.mxu0 %v208_v28 }
  0x15   :  { %145 = vmatpush.bf16.msra.mxu1 %v212_v29 }
  0x18   :  { %132 = vmatpush.bf16.msra.mxu0 %v200_v34 }
  0x19   :  { %146 = vmatpush.bf16.msra.mxu1 %v204_v35 }
  0x1c   :  { %133 = vmatpush.bf16.msra.mxu0 %v192_v40 }
  0x1d   :  { %147 = vmatpush.bf16.msra.mxu1 %v196_v41 }
  0x20   :  { %134 = vmatpush.bf16.msra.mxu0 %v184_v46 }
  0x21   :  { %148 = vmatpush.bf16.msra.mxu1 %v188_v47 }
  0x23   :  { %135 = vmatmul.bf16.vlgmr.msra.gmra.mxu0 %v245_v48 }
  0x24   :  { %149 = vmatmul.bf16.vlgmr.msra.gmra.mxu1 %v245_v48 }
  0xa0   :  { %v136_v54 = vpop.f32.mrf.mxu0 }
  0xa1   :  { %v137_v56 = vadd.f32 %v136_v54, %v37_v51  ;;  %v150_v57 = vpop.f32.mrf.mxu1 }
  0xa2   :  { %v151_v58 = vadd.f32 %v150_v57, %v38_v52 }
  0xa3   :  { %v161_v59 = vadd.f32 %v157_v53, %v137_v56 }
  0xa4   :  { %v162_v60 = vadd.f32 %v158_v55, %v151_v58 }
  0xa5   :  { %v165_v62 = vmax.f32 %v161_v59, 0.0 }
  0xa6   :  { %v166_v63 = vmax.f32 %v162_v60, 0.0 }
  0xa8   :  { %v169_v1 = vpack.c.bf16 %v166_v63, %v165_v62  ;;  %v138_v2 = vpop.f32.mrf.mxu0 }
  0xa9   :  { %v139_v4 = vadd.f32 %v138_v2, %v37_v51  ;;  %v152_v5 = vpop.f32.mrf.mxu1 }
  0xaa   :  { %171 = vst [vmem:[%s405_s4] sm:$0xff] %v169_v1  ;;  %v153_v6 = vadd.f32 %v152_v5, %v38_v52 }
  0xab   :  { %v163_v7 = vadd.f32 %v159_v0, %v139_v4 }
  0xac   :  { %v164_v8 = vadd.f32 %v160_v3, %v153_v6 }
  0xad   :  { %v167_v9 = vmax.f32 %v163_v7, 0.0 }
  0xae   :  { %v168_v10 = vmax.f32 %v164_v8, 0.0 }
  0xb0   :  { %v170_v11 = vpack.c.bf16 %v168_v10, %v167_v9 }
  0xb2   :  { %172 = vst [vmem:[%s405_s4 + $0x8] sm:$0xff] %v170_v11 }

// kernel: _lambda_.100
= control target key start
LH: loop header
LB: loop body
LE: loop exit
PB: predicated region body
PF: predicated region fallthrough
CT: control target
= control target key end

     0   :  { %s378_s1 = inlined_call_operand.vmem [shape: bf16[256,128], index: 1, kind: input, shape index: {}]   ;;  %s379_s2 = inlined_call_operand.vmem [shape: f32[1,128], index: 2, kind: input, shape index: {}]   ;;  %s380_s0 = inlined_call_operand.vmem [shape: bf16[16,256], index: 0, kind: input, shape index: {}]   ;;  %s381_s3 = inlined_call_operand.vmem [shape: bf16[16,128], index: 3, kind: output, shape index: {}]  }
   0x1   :  { %v277_v0 = vld [vmem:[%s378_s1 + $0x38] sm:$0xff]  ;;  %v276_v2 = vld [vmem:[%s378_s1 + $0x30] sm:$0xff]  ;;  %v275_v4 = vld [vmem:[%s378_s1 + $0x28] sm:$0xff] }
   0x2   :  { %v285_v1 = vld [vmem:[%s378_s1 + $0x78] sm:$0xff]  ;;  %158 = vmatpush.bf16.msra.mxu0 %v277_v0  ;;  %v284_v3 = vld [vmem:[%s378_s1 + $0x70] sm:$0xff]  ;;  %v283_v5 = vld [vmem:[%s378_s1 + $0x68] sm:$0xff] }
   0x3   :  { %172 = vmatpush.bf16.msra.mxu1 %v285_v1  ;;  %v274_v6 = vld [vmem:[%s378_s1 + $0x20] sm:$0xff]  ;;  %v273_v8 = vld [vmem:[%s378_s1 + $0x18] sm:$0xff]  ;;  %v272_v10 = vld [vmem:[%s378_s1 + $0x10] sm:$0xff] }
   0x4   :  { %v282_v7 = vld [vmem:[%s378_s1 + $0x60] sm:$0xff]  ;;  %v281_v9 = vld [vmem:[%s378_s1 + $0x58] sm:$0xff]  ;;  %v280_v11 = vld [vmem:[%s378_s1 + $0x50] sm:$0xff] }
   0x5   :  { %v271_v12 = vld [vmem:[%s378_s1 + $0x8] sm:$0xff]  ;;  %v270_v14 = vld [vmem:[%s378_s1] sm:$0xff] }
   0x6   :  { %159 = vmatpush.bf16.msra.mxu0 %v276_v2  ;;  %v279_v13 = vld [vmem:[%s378_s1 + $0x48] sm:$0xff]  ;;  %v278_v15 = vld [vmem:[%s378_s1 + $0x40] sm:$0xff] }
   0x7   :  { %173 = vmatpush.bf16.msra.mxu1 %v284_v3  ;;  %v198_v16 = vld [vmem:[%s380_s0] sm:$0xf]  ;;  %v269_v17 = vld [vmem:[%s380_s0 + $0x4] sm:$0xf0]  ;;  %v268_v18 = vld [vmem:[%s380_s0 + $0x4] sm:$0xf] }
   0x8   :  { %v200_v19 = vld [vmem:[%s380_s0 + $0x8] sm:$0xf0]  ;;  %v199_v20 = vor.u32 %v269_v17, %v198_v16  ;;  %v291_v24 = vld [vmem:[%s379_s2] ss:$0 sm:$0xff] }
   0x9   :  { %v203_v21 = vor.u32 %v268_v18, %v200_v19 }
   0xa   :  { %160 = vmatpush.bf16.msra.mxu0 %v275_v4 }
   0xb   :  { %174 = vmatpush.bf16.msra.mxu1 %v283_v5 }
   0xe   :  { %161 = vmatpush.bf16.msra.mxu0 %v274_v6 }
   0xf   :  { %175 = vmatpush.bf16.msra.mxu1 %v282_v7 }
  0x12   :  { %162 = vmatpush.bf16.msra.mxu0 %v273_v8 }
  0x13   :  { %176 = vmatpush.bf16.msra.mxu1 %v281_v9 }
  0x16   :  { %163 = vmatpush.bf16.msra.mxu0 %v272_v10 }
  0x17   :  { %177 = vmatpush.bf16.msra.mxu1 %v280_v11 }
  0x1a   :  { %164 = vmatpush.bf16.msra.mxu0 %v271_v12 }
  0x1b   :  { %178 = vmatpush.bf16.msra.mxu1 %v279_v13 }
  0x1e   :  { %165 = vmatpush.bf16.msra.mxu0 %v270_v14 }
  0x1f   :  { %179 = vmatpush.bf16.msra.mxu1 %v278_v15 }
  0x21   :  { %166 = vmatmul.bf16.vlgmr.msra.gmra.mxu0 %v199_v20 }
  0x22   :  { %180 = vmatmul.bf16.vlgmr.msra.gmra.mxu1 %v203_v21 }
  0x9e   :  { %v167_v22 = vpop.f32.mrf.mxu0 }
  0x9f   :  { %v181_v23 = vpop.f32.mrf.mxu1  ;;  %v168_v25 = vadd.f32 %v291_v24, %v167_v22 }
  0xa1   :  { %v182_v27 = vadd.f32 %v181_v23, %v168_v25 }
  0xa3   :  { %v186_v31 = vmax.f32 %v182_v27, 0.0 }
  0xa6   :  { %v169_v26 = vpop.f32.mrf.mxu0 }
  0xa7   :  { %v170_v28 = vadd.f32 %v291_v24, %v169_v26  ;;  %v183_v29 = vpop.f32.mrf.mxu1 }
  0xa9   :  { %v184_v30 = vadd.f32 %v183_v29, %v170_v28 }
  0xab   :  { %v187_v32 = vmax.f32 %v184_v30, 0.0 }
  0xad   :  { %v289_v33 = vpack.c.bf16 %v187_v32, %v186_v31 }
  0xaf   :  { %290 = vst [vmem:[%s381_s3] sm:$0xff] %v289_v33  }

</bundles_post_ra>
